<compile_context>
chip_gen: v7x
topology: tpu7x:2x2x1
jax: 0.10.0
libtpu: 0.0.40
codegen_flags: <defaults>
</compile_context>

<pallas_src>
import functools

import jax
import jax.numpy as jnp
from jax.experimental import pallas as pl
from jax.experimental.pallas import tpu as pltpu

CP = 128  # channel padding / lane width


# --------------------------------------------------------------------------
# Kernel A: fused stem conv (as im2col matmul) + MBConv expand 1x1, both +SiLU
# --------------------------------------------------------------------------
def _stem_expand_kernel(p_ref, ws_ref, bs_ref, we_ref, be_ref, o_ref):
    y = jnp.dot(p_ref[...], ws_ref[...], preferred_element_type=jnp.float32)
    y = y + bs_ref[...]
    y = y * jax.nn.sigmoid(y)                                  # SiLU (f32, EUP)
    y = jnp.dot(y.astype(jnp.bfloat16), we_ref[...],
                preferred_element_type=jnp.float32)
    y = y + be_ref[...]
    y = y * jax.nn.sigmoid(y)
    o_ref[...] = y.astype(o_ref.dtype)                         # bf16, 128 lanes


def pallas_stem_expand(patches, params, tm=64):
    M, K = patches.shape                                       # K == CP
    N = params["exp_w"].shape[1]                               # CP
    tm = min(tm, M)
    assert M % tm == 0 and tm % 8 == 0
    return pl.pallas_call(
        _stem_expand_kernel,
        out_shape=jax.ShapeDtypeStruct((M, N), jnp.bfloat16),
        grid=(M // tm,),
        in_specs=[
            pl.BlockSpec((tm, K), lambda i: (i, 0)),
            pl.BlockSpec((K, CP), lambda i: (0, 0)),
            pl.BlockSpec((1, CP), lambda i: (0, 0)),
            pl.BlockSpec((CP, N), lambda i: (0, 0)),
            pl.BlockSpec((1, N), lambda i: (0, 0)),
        ],
        out_specs=pl.BlockSpec((tm, N), lambda i: (i, 0)),
        compiler_params=pltpu.CompilerParams(
            dimension_semantics=("parallel",),
            vmem_limit_bytes=32 * 1024 * 1024),
    )(patches, params["stem_w"], params["stem_b"],
      params["exp_w"], params["exp_b"])


# --------------------------------------------------------------------------
# Kernel B: fused dwconv3x3+SiLU -> SE -> project 1x1 -> head 1x1+SiLU
#           -> DETR projection Conv2d(384,256,1).  One image per grid step;
#           everything stays in VMEM between ops.
# --------------------------------------------------------------------------
def _mbconv_head_kernel(x_ref, swm_ref, swp_ref, dww_ref, dwb_ref,
                        sew1_ref, seb1_ref, sew2_ref, seb2_ref,
                        pw_ref, pb_ref, hw_ref, hb_ref, ow_ref, ob_ref,
                        o_ref, *, Ho, Wo):
    HW = Ho * Wo
    x_bf = x_ref[0]                                  # (HW, CP) bf16
    x = x_bf.astype(jnp.float32)

    # ---- depthwise 3x3, stride 1, pad 1 -----------------------------------
    # column (+-1 in w) shift via banded 0/1 matmul (exact: one term per row)
    y_m1 = jnp.dot(swm_ref[...], x_bf, preferred_element_type=jnp.float32)
    y_p1 = jnp.dot(swp_ref[...], x_bf, preferred_element_type=jnp.float32)
    dww = dww_ref[...]                               # (9, CP) f32, row = 3*a+dj
    u = []
    for a in range(3):                               # per-row-of-kernel weighted sum
        u.append(y_m1 * dww[3 * a + 0] + x * dww[3 * a + 1] + y_p1 * dww[3 * a + 2])
    # row (+-1 in h) shift = shift by Wo flattened rows (vreg-aligned concat)
    zrow = jnp.zeros((Wo, x.shape[-1]), jnp.float32)
    dn = jnp.concatenate([zrow, u[0][:HW - Wo]], axis=0)   # u0 evaluated at h-1
    up = jnp.concatenate([u[2][Wo:], zrow], axis=0)        # u2 evaluated at h+1
    s = dn + u[1] + up + dwb_ref[...]
    s = s * jax.nn.sigmoid(s)                              # SiLU, (HW, CP) f32

    # ---- squeeze-excite (pool stays in VMEM) ------------------------------
    m = jnp.mean(s, axis=0, keepdims=True)                 # (1, CP)
    g = jnp.dot(m.astype(jnp.bfloat16), sew1_ref[...],
                preferred_element_type=jnp.float32) + seb1_ref[...]
    g = g * jax.nn.sigmoid(g)
    g = jnp.dot(g.astype(jnp.bfloat16), sew2_ref[...],
                preferred_element_type=jnp.float32) + seb2_ref[...]
    g = jax.nn.sigmoid(g)                                  # (1, CP) gate
    s = s * g

    # ---- project 1x1 (linear) ---------------------------------------------
    p = jnp.dot(s.astype(jnp.bfloat16), pw_ref[...],
                preferred_element_type=jnp.float32) + pb_ref[...]
    # ---- head 1x1 -> 384 + SiLU -------------------------------------------
    h = jnp.dot(p.astype(jnp.bfloat16), hw_ref[...],
                preferred_element_type=jnp.float32) + hb_ref[...]
    h = h * jax.nn.sigmoid(h)
    # ---- DETR projection Conv2d(384, 256, kernel_size=1) -------------------
    o = jnp.dot(h.astype(jnp.bfloat16), ow_ref[...],
                preferred_element_type=jnp.float32) + ob_ref[...]
    o_ref[0] = o.astype(o_ref.dtype)                       # (HW, 256) f32


def pallas_mbconv_head(x_exp, s_wm, s_wp, params, Ho, Wo):
    B, HW, cp = x_exp.shape
    C_HEAD = params["head_w"].shape[1]
    C_OUT = params["out_w"].shape[1]
    kern = functools.partial(_mbconv_head_kernel, Ho=Ho, Wo=Wo)
    in_specs = [
        pl.BlockSpec((1, HW, cp), lambda b: (b, 0, 0)),        # expanded map
        pl.BlockSpec((HW, HW), lambda b: (0, 0)),              # w-1 shift matrix
        pl.BlockSpec((HW, HW), lambda b: (0, 0)),              # w+1 shift matrix
        pl.BlockSpec((9, cp), lambda b: (0, 0)),               # dw weights
        pl.BlockSpec((1, cp), lambda b: (0, 0)),               # dw bias
        pl.BlockSpec((cp, cp), lambda b: (0, 0)),              # se_w1
        pl.BlockSpec((1, cp), lambda b: (0, 0)),               # se_b1
        pl.BlockSpec((cp, cp), lambda b: (0, 0)),              # se_w2
        pl.BlockSpec((1, cp), lambda b: (0, 0)),               # se_b2
        pl.BlockSpec((cp, cp), lambda b: (0, 0)),              # proj_w
        pl.BlockSpec((1, cp), lambda b: (0, 0)),               # proj_b
        pl.BlockSpec((cp, C_HEAD), lambda b: (0, 0)),          # head_w
        pl.BlockSpec((1, C_HEAD), lambda b: (0, 0)),           # head_b
        pl.BlockSpec((C_HEAD, C_OUT), lambda b: (0, 0)),       # out_w
        pl.BlockSpec((1, C_OUT), lambda b: (0, 0)),            # out_b
    ]
    return pl.pallas_call(
        kern,
        out_shape=jax.ShapeDtypeStruct((B, HW, C_OUT), jnp.float32),
        grid=(B,),
        in_specs=in_specs,
        out_specs=pl.BlockSpec((1, HW, C_OUT), lambda b: (b, 0, 0)),
        compiler_params=pltpu.CompilerParams(
            dimension_semantics=("parallel",),
            vmem_limit_bytes=32 * 1024 * 1024),
    )(x_exp, s_wm, s_wp,
      params["dw_w"], params["dw_b"],
      params["se_w1"], params["se_b1"], params["se_w2"], params["se_b2"],
      params["proj_w"], params["proj_b"],
      params["head_w"], params["head_b"],
      params["out_w"], params["out_b"])


# --------------------------------------------------------------------------
# Wrapper-side layout plumbing (no compute)
# --------------------------------------------------------------------------
def _stem_patches(x_nhwc):
    """3x3 / stride-2 / pad-1 im2col patches, zero-padded to CP lanes, bf16."""
    # TODO(synk): at real resolutions do the stem in-kernel (strided shift-
    #             accumulate) instead of materializing im2col patches in HBM.
    B, H, W, C = x_nhwc.shape
    xp = jnp.pad(x_nhwc, ((0, 0), (1, 1), (1, 1), (0, 0)))
    Ho = (H + 2 - 3) // 2 + 1
    Wo = (W + 2 - 3) // 2 + 1
    cols = [xp[:, di:di + 2 * Ho:2, dj:dj + 2 * Wo:2, :]
            for di in range(3) for dj in range(3)]
    p = jnp.concatenate(cols, axis=-1)                         # (B,Ho,Wo,9C)
    p = jnp.pad(p, ((0, 0), (0, 0), (0, 0), (0, CP - 9 * C)))
    return p.reshape(B * Ho * Wo, CP).astype(jnp.bfloat16), Ho, Wo


def _w_shift_matrices(Ho, Wo, dtype=jnp.bfloat16):
    """Banded 0/1 matrices selecting x[., w-1] / x[., w+1] on the flattened map."""
    HW = Ho * Wo
    ii = jnp.arange(HW)[:, None]
    jj = jnp.arange(HW)[None, :]
    w_i = ii % Wo
    s_wm = ((jj == ii - 1) & (w_i != 0)).astype(dtype)         # picks x[w-1]
    s_wp = ((jj == ii + 1) & (w_i != Wo - 1)).astype(dtype)    # picks x[w+1]
    return s_wm, s_wp


# --------------------------------------------------------------------------
# Parameters (deterministic synthetic; BN folded into conv+bias; channels
# zero-padded to 128 so every HBM tensor is lane-dense).
# --------------------------------------------------------------------------
def init_params(key):
    C_IN, C_STEM, C_EXP, C_SE, C_PROJ, C_HEAD, C_OUT = 3, 24, 96, 8, 48, 384, 256
    ks = jax.random.split(key, 16)
    bf16 = jnp.bfloat16

    def dense(k, fan_in, shape):
        return jax.random.normal(k, shape, jnp.float32) / jnp.sqrt(fan_in)

    def pad2(w, rows, cols):
        return jnp.zeros((rows, cols), jnp.float32).at[:w.shape[0], :w.shape[1]].set(w)

    def padb(k, n_real, n_tot, scale=0.05):
        b = jax.random.normal(k, (1, n_real), jnp.float32) * scale
        return jnp.pad(b, ((0, 0), (0, n_tot - n_real)))       # pad bias MUST be 0

    p = {
        # stem 3x3 s2: (9*3 -> 24), laid out for im2col matmul, padded to 128x128
        "stem_w": pad2(dense(ks[0], 9 * C_IN, (9 * C_IN, C_STEM)), CP, CP).astype(bf16),
        "stem_b": padb(ks[1], C_STEM, CP),
        # MBConv expand 1x1: 24 -> 96
        "exp_w": pad2(dense(ks[2], C_STEM, (C_STEM, C_EXP)), CP, CP).astype(bf16),
        "exp_b": padb(ks[3], C_EXP, CP),
        # depthwise 3x3 (rows ordered (a, dj) = 3*a + dj), f32 for VPU FMA
        "dw_w": pad2(dense(ks[4], 9, (9, C_EXP)), 9, CP),
        "dw_b": padb(ks[5], C_EXP, CP),
        # Squeeze-Excite 96 -> 8 -> 96
        "se_w1": pad2(dense(ks[6], C_EXP, (C_EXP, C_SE)), CP, CP).astype(bf16),
        "se_b1": padb(ks[7], C_SE, CP),
        "se_w2": pad2(dense(ks[8], C_SE, (C_SE, C_EXP)), CP, CP).astype(bf16),
        "se_b2": padb(ks[9], C_EXP, CP),
        # MBConv project 1x1: 96 -> 48 (linear)
        "proj_w": pad2(dense(ks[10], C_EXP, (C_EXP, C_PROJ)), CP, CP).astype(bf16),
        "proj_b": padb(ks[11], C_PROJ, CP),
        # head 1x1: 48 -> 384 + SiLU (B3 feature width)
        "head_w": pad2(dense(ks[12], C_PROJ, (C_PROJ, C_HEAD)), CP, C_HEAD).astype(bf16),
        "head_b": padb(ks[13], C_HEAD, C_HEAD),
        # DETR projection Conv2d(384, 256, kernel_size=1)
        "out_w": dense(ks[14], C_HEAD, (C_HEAD, C_OUT)).astype(bf16),
        "out_b": padb(ks[15], C_OUT, C_OUT),
    }
    return p


# --------------------------------------------------------------------------
# Forward (matches EfficientNetBackbone.forward: body -> projection -> {'0': x})
# --------------------------------------------------------------------------
def efficientnet_backbone_forward(x_nchw, params):
    x = jnp.transpose(x_nchw, (0, 2, 3, 1)).astype(jnp.float32)    # NCHW -> NHWC
    B = x.shape[0]

    patches, Ho, Wo = _stem_patches(x)
    exp = pallas_stem_expand(patches, params)                      # (B*HW, 128) bf16
    exp = exp.reshape(B, Ho * Wo, CP)

    s_wm, s_wp = _w_shift_matrices(Ho, Wo)
    out = pallas_mbconv_head(exp, s_wm, s_wp, params, Ho, Wo)      # (B, HW, 256) f32

    out = out.reshape(B, Ho, Wo, 256).transpose(0, 3, 1, 2)        # NHWC -> NCHW
    return {"0": out}


# --------------------------------------------------------------------------
# Pure-JAX reference (same math, same bf16 cast points, independent dwconv)
# --------------------------------------------------------------------------
def _ref_forward(x_nchw, params):
    bf16, f32 = jnp.bfloat16, jnp.float32

    def mm(a, w):
        return jnp.dot(a.astype(bf16), w, preferred_element_type=f32)

    def silu(v):
        return v * jax.nn.sigmoid(v)

    x = jnp.transpose(x_nchw, (0, 2, 3, 1)).astype(f32)
    B = x.shape[0]
    patches, Ho, Wo = _stem_patches(x)
    y = silu(mm(patches, params["stem_w"]) + params["stem_b"])
    y = silu(mm(y, params["exp_w"]) + params["exp_b"])
    y = y.astype(bf16).astype(f32).reshape(B, Ho, Wo, CP)

    xp = jnp.pad(y, ((0, 0), (1, 1), (1, 1), (0, 0)))
    acc = jnp.zeros_like(y)
    for a in range(3):
        for dj in range(3):
            acc = acc + xp[:, a:a + Ho, dj:dj + Wo, :] * params["dw_w"][3 * a + dj]
    s = silu(acc + params["dw_b"])

    m = jnp.mean(s, axis=(1, 2)).reshape(B, 1, CP)
    g = silu(mm(m, params["se_w1"]) + params["se_b1"])
    g = jax.nn.sigmoid(mm(g, params["se_w2"]) + params["se_b2"])
    s = s * g.reshape(B, 1, 1, CP)

    p = mm(s.reshape(B * Ho * Wo, CP), params["proj_w"]) + params["proj_b"]
    h = silu(mm(p, params["head_w"]) + params["head_b"])
    o = mm(h, params["out_w"]) + params["out_b"]
    return o.reshape(B, Ho, Wo, 256).transpose(0, 3, 1, 2)


# --------------------------------------------------------------------------
if __name__ == "__main__":
    key = jax.random.PRNGKey(0)
    k_p, k_x = jax.random.split(key)
    params = init_params(k_p)

    # small RGB images, NCHW like the PyTorch module
    x = jax.random.normal(k_x, (2, 3, 32, 32), jnp.float32)

    fwd = jax.jit(efficientnet_backbone_forward)
    out = fwd(x, params)
    feat = jax.block_until_ready(out["0"])

    assert feat.shape == (2, 256, 16, 16), feat.shape
    assert feat.dtype == jnp.float32
    assert bool(jnp.all(jnp.isfinite(feat)))

    ref = jax.block_until_ready(jax.jit(_ref_forward)(x, params))
    err = float(jnp.max(jnp.abs(feat - ref)))
    assert err < 5e-2, f"max abs err vs reference: {err}"

    print("KERNEL_OK")
</pallas_src>

<mosaic_0001>
module attributes {stable_mosaic.version = 11 : i64} {
  func.func @_stem_expand_kernel(%arg0: i32, %arg1: memref<64x128xbf16, #tpu.memory_space<vmem>>, %arg2: memref<128x128xbf16, #tpu.memory_space<vmem>>, %arg3: memref<1x128xf32, #tpu.memory_space<vmem>>, %arg4: memref<128x128xbf16, #tpu.memory_space<vmem>>, %arg5: memref<1x128xf32, #tpu.memory_space<vmem>>, %arg6: memref<64x128xbf16, #tpu.memory_space<vmem>>) attributes {dimension_semantics = [#tpu.dimension_semantics<parallel>], iteration_bounds = array<i64: 8>, scalar_prefetch = 0 : i64, scratch_operands = 0 : i64, tpu.core_type = #tpu.core_type<tc>, window_params = [{transform_indices = @transform_0, window_bounds = array<i64: 64, 128>}, {pipeline_mode = #tpu.pipeline_mode<synchronous>, transform_indices = @transform_1, window_bounds = array<i64: 128, 128>}, {pipeline_mode = #tpu.pipeline_mode<synchronous>, transform_indices = @transform_2, window_bounds = array<i64: 1, 128>}, {pipeline_mode = #tpu.pipeline_mode<synchronous>, transform_indices = @transform_3, window_bounds = array<i64: 128, 128>}, {pipeline_mode = #tpu.pipeline_mode<synchronous>, transform_indices = @transform_4, window_bounds = array<i64: 1, 128>}, {transform_indices = @transform_5, window_bounds = array<i64: 64, 128>}]} {
    %c0 = arith.constant 0 : index
    %c0_0 = arith.constant 0 : index
    %0 = vector.load %arg1[%c0, %c0_0] : memref<64x128xbf16, #tpu.memory_space<vmem>>, vector<64x128xbf16>
    %c0_1 = arith.constant 0 : index
    %c0_2 = arith.constant 0 : index
    %1 = vector.load %arg2[%c0_1, %c0_2] : memref<128x128xbf16, #tpu.memory_space<vmem>>, vector<128x128xbf16>
    %cst = arith.constant dense<0.000000e+00> : vector<64x128xf32>
    %2 = tpu.matmul %0, %1, %cst {dimension_numbers = #tpu.dot_dimension_numbers<[1], [0], [0], [1], [0, 0, 1, 1], [], []>} : vector<64x128xbf16>, vector<128x128xbf16>, vector<64x128xf32> -> vector<64x128xf32>
    %c0_3 = arith.constant 0 : index
    %c0_4 = arith.constant 0 : index
    %3 = vector.load %arg3[%c0_3, %c0_4] : memref<1x128xf32, #tpu.memory_space<vmem>>, vector<1x128xf32>
    %4 = vector.broadcast %3 : vector<1x128xf32> to vector<64x128xf32>
    %5 = arith.addf %2, %4 : vector<64x128xf32>
    %6 = arith.negf %5 : vector<64x128xf32>
    %7 = math.exp %6 : vector<64x128xf32>
    %cst_5 = arith.constant 1.000000e+00 : f32
    %8 = vector.broadcast %cst_5 : f32 to vector<64x128xf32>
    %9 = arith.addf %8, %7 : vector<64x128xf32>
    %10 = arith.divf %8, %9 : vector<64x128xf32>
    %11 = arith.mulf %5, %10 : vector<64x128xf32>
    %12 = arith.truncf %11 : vector<64x128xf32> to vector<64x128xbf16>
    %c0_6 = arith.constant 0 : index
    %c0_7 = arith.constant 0 : index
    %13 = vector.load %arg4[%c0_6, %c0_7] : memref<128x128xbf16, #tpu.memory_space<vmem>>, vector<128x128xbf16>
    %cst_8 = arith.constant dense<0.000000e+00> : vector<64x128xf32>
    %14 = tpu.matmul %12, %13, %cst_8 {dimension_numbers = #tpu.dot_dimension_numbers<[1], [0], [0], [1], [0, 0, 1, 1], [], []>} : vector<64x128xbf16>, vector<128x128xbf16>, vector<64x128xf32> -> vector<64x128xf32>
    %c0_9 = arith.constant 0 : index
    %c0_10 = arith.constant 0 : index
    %15 = vector.load %arg5[%c0_9, %c0_10] : memref<1x128xf32, #tpu.memory_space<vmem>>, vector<1x128xf32>
    %16 = vector.broadcast %15 : vector<1x128xf32> to vector<64x128xf32>
    %17 = arith.addf %14, %16 : vector<64x128xf32>
    %18 = arith.negf %17 : vector<64x128xf32>
    %19 = math.exp %18 : vector<64x128xf32>
    %cst_11 = arith.constant 1.000000e+00 : f32
    %20 = vector.broadcast %cst_11 : f32 to vector<64x128xf32>
    %21 = arith.addf %20, %19 : vector<64x128xf32>
    %22 = arith.divf %20, %21 : vector<64x128xf32>
    %23 = arith.mulf %17, %22 : vector<64x128xf32>
    %24 = arith.truncf %23 : vector<64x128xf32> to vector<64x128xbf16>
    %c0_12 = arith.constant 0 : index
    %c0_13 = arith.constant 0 : index
    %25 = vector.load %arg6[%c0_12, %c0_13] : memref<64x128xbf16, #tpu.memory_space<vmem>>, vector<64x128xbf16>
    tpu.vector_store %arg6[%c0_12, %c0_13], %24 {strides = array<i32>} : memref<64x128xbf16, #tpu.memory_space<vmem>>, vector<64x128xbf16>,
    return
  }
  func.func @transform_0(%arg0: i32) -> (i32, i32) {
    %c0_i32 = arith.constant 0 : i32
    %c0_i32_0 = arith.constant 0 : i32
    return %arg0, %c0_i32 : i32, i32
  }
  func.func @transform_1(%arg0: i32) -> (i32, i32) {
    %c0_i32 = arith.constant 0 : i32
    %c0_i32_0 = arith.constant 0 : i32
    %c0_i32_1 = arith.constant 0 : i32
    return %c0_i32, %c0_i32_0 : i32, i32
  }
  func.func @transform_2(%arg0: i32) -> (i32, i32) {
    %c0_i32 = arith.constant 0 : i32
    %c0_i32_0 = arith.constant 0 : i32
    %c0_i32_1 = arith.constant 0 : i32
    return %c0_i32, %c0_i32_0 : i32, i32
  }
  func.func @transform_3(%arg0: i32) -> (i32, i32) {
    %c0_i32 = arith.constant 0 : i32
    %c0_i32_0 = arith.constant 0 : i32
    %c0_i32_1 = arith.constant 0 : i32
    return %c0_i32, %c0_i32_0 : i32, i32
  }
  func.func @transform_4(%arg0: i32) -> (i32, i32) {
    %c0_i32 = arith.constant 0 : i32
    %c0_i32_0 = arith.constant 0 : i32
    %c0_i32_1 = arith.constant 0 : i32
    return %c0_i32, %c0_i32_0 : i32, i32
  }
  func.func @transform_5(%arg0: i32) -> (i32, i32) {
    %c0_i32 = arith.constant 0 : i32
    %c0_i32_0 = arith.constant 0 : i32
    return %arg0, %c0_i32 : i32, i32
  }
}

module attributes {stable_mosaic.version = 11 : i64} {
  func.func @_mbconv_head_kernel(%arg0: i32, %arg1: memref<1x256x128xbf16, #tpu.memory_space<vmem>>, %arg2: memref<256x256xbf16, #tpu.memory_space<vmem>>, %arg3: memref<256x256xbf16, #tpu.memory_space<vmem>>, %arg4: memref<9x128xf32, #tpu.memory_space<vmem>>, %arg5: memref<1x128xf32, #tpu.memory_space<vmem>>, %arg6: memref<128x128xbf16, #tpu.memory_space<vmem>>, %arg7: memref<1x128xf32, #tpu.memory_space<vmem>>, %arg8: memref<128x128xbf16, #tpu.memory_space<vmem>>, %arg9: memref<1x128xf32, #tpu.memory_space<vmem>>, %arg10: memref<128x128xbf16, #tpu.memory_space<vmem>>, %arg11: memref<1x128xf32, #tpu.memory_space<vmem>>, %arg12: memref<128x384xbf16, #tpu.memory_space<vmem>>, %arg13: memref<1x384xf32, #tpu.memory_space<vmem>>, %arg14: memref<384x256xbf16, #tpu.memory_space<vmem>>, %arg15: memref<1x256xf32, #tpu.memory_space<vmem>>, %arg16: memref<1x256x256xf32, #tpu.memory_space<vmem>>) attributes {dimension_semantics = [#tpu.dimension_semantics<parallel>], iteration_bounds = array<i64: 2>, scalar_prefetch = 0 : i64, scratch_operands = 0 : i64, tpu.core_type = #tpu.core_type<tc>, window_params = [{transform_indices = @transform_0, window_bounds = array<i64: 1, 256, 128>}, {pipeline_mode = #tpu.pipeline_mode<synchronous>, transform_indices = @transform_1, window_bounds = array<i64: 256, 256>}, {pipeline_mode = #tpu.pipeline_mode<synchronous>, transform_indices = @transform_2, window_bounds = array<i64: 256, 256>}, {pipeline_mode = #tpu.pipeline_mode<synchronous>, transform_indices = @transform_3, window_bounds = array<i64: 9, 128>}, {pipeline_mode = #tpu.pipeline_mode<synchronous>, transform_indices = @transform_4, window_bounds = array<i64: 1, 128>}, {pipeline_mode = #tpu.pipeline_mode<synchronous>, transform_indices = @transform_5, window_bounds = array<i64: 128, 128>}, {pipeline_mode = #tpu.pipeline_mode<synchronous>, transform_indices = @transform_6, window_bounds = array<i64: 1, 128>}, {pipeline_mode = #tpu.pipeline_mode<synchronous>, transform_indices = @transform_7, window_bounds = array<i64: 128, 128>}, {pipeline_mode = #tpu.pipeline_mode<synchronous>, transform_indices = @transform_8, window_bounds = array<i64: 1, 128>}, {pipeline_mode = #tpu.pipeline_mode<synchronous>, transform_indices = @transform_9, window_bounds = array<i64: 128, 128>}, {pipeline_mode = #tpu.pipeline_mode<synchronous>, transform_indices = @transform_10, window_bounds = array<i64: 1, 128>}, {pipeline_mode = #tpu.pipeline_mode<synchronous>, transform_indices = @transform_11, window_bounds = array<i64: 128, 384>}, {pipeline_mode = #tpu.pipeline_mode<synchronous>, transform_indices = @transform_12, window_bounds = array<i64: 1, 384>}, {pipeline_mode = #tpu.pipeline_mode<synchronous>, transform_indices = @transform_13, window_bounds = array<i64: 384, 256>}, {pipeline_mode = #tpu.pipeline_mode<synchronous>, transform_indices = @transform_14, window_bounds = array<i64: 1, 256>}, {transform_indices = @transform_15, window_bounds = array<i64: 1, 256, 256>}]} {
    %c0 = arith.constant 0 : index
    %c0_0 = arith.constant 0 : index
    %c0_1 = arith.constant 0 : index
    %0 = vector.load %arg1[%c0, %c0_0, %c0_1] : memref<1x256x128xbf16, #tpu.memory_space<vmem>>, vector<1x256x128xbf16>
    %1 = vector.shape_cast %0 : vector<1x256x128xbf16> to vector<256x128xbf16>
    %2 = arith.extf %1 : vector<256x128xbf16> to vector<256x128xf32>
    %c0_2 = arith.constant 0 : index
    %c0_3 = arith.constant 0 : index
    %3 = vector.load %arg2[%c0_2, %c0_3] : memref<256x256xbf16, #tpu.memory_space<vmem>>, vector<256x256xbf16>
    %cst = arith.constant dense<0.000000e+00> : vector<256x128xf32>
    %4 = tpu.matmul %3, %1, %cst {dimension_numbers = #tpu.dot_dimension_numbers<[1], [0], [0], [1], [0, 0, 1, 1], [], []>} : vector<256x256xbf16>, vector<256x128xbf16>, vector<256x128xf32> -> vector<256x128xf32>
    %c0_4 = arith.constant 0 : index
    %c0_5 = arith.constant 0 : index
    %5 = vector.load %arg3[%c0_4, %c0_5] : memref<256x256xbf16, #tpu.memory_space<vmem>>, vector<256x256xbf16>
    %cst_6 = arith.constant dense<0.000000e+00> : vector<256x128xf32>
    %6 = tpu.matmul %5, %1, %cst_6 {dimension_numbers = #tpu.dot_dimension_numbers<[1], [0], [0], [1], [0, 0, 1, 1], [], []>} : vector<256x256xbf16>, vector<256x128xbf16>, vector<256x128xf32> -> vector<256x128xf32>
    %c0_7 = arith.constant 0 : index
    %c0_8 = arith.constant 0 : index
    %7 = vector.load %arg4[%c0_7, %c0_8] : memref<9x128xf32, #tpu.memory_space<vmem>>, vector<9x128xf32>
    %8 = vector.extract_strided_slice %7 {offsets = [0, 0], sizes = [1, 128], strides = [1, 1]} : vector<9x128xf32> to vector<1x128xf32>
    %9 = vector.shape_cast %8 : vector<1x128xf32> to vector<128xf32>
    %10 = vector.shape_cast %9 : vector<128xf32> to vector<1x128xf32>
    %11 = vector.broadcast %10 : vector<1x128xf32> to vector<256x128xf32>
    %12 = arith.mulf %4, %11 : vector<256x128xf32>
    %13 = vector.extract_strided_slice %7 {offsets = [1, 0], sizes = [1, 128], strides = [1, 1]} : vector<9x128xf32> to vector<1x128xf32>
    %14 = vector.shape_cast %13 : vector<1x128xf32> to vector<128xf32>
    %15 = vector.shape_cast %14 : vector<128xf32> to vector<1x128xf32>
    %16 = vector.broadcast %15 : vector<1x128xf32> to vector<256x128xf32>
    %17 = arith.mulf %2, %16 : vector<256x128xf32>
    %18 = arith.addf %12, %17 : vector<256x128xf32>
    %19 = vector.extract_strided_slice %7 {offsets = [2, 0], sizes = [1, 128], strides = [1, 1]} : vector<9x128xf32> to vector<1x128xf32>
    %20 = vector.shape_cast %19 : vector<1x128xf32> to vector<128xf32>
    %21 = vector.shape_cast %20 : vector<128xf32> to vector<1x128xf32>
    %22 = vector.broadcast %21 : vector<1x128xf32> to vector<256x128xf32>
    %23 = arith.mulf %6, %22 : vector<256x128xf32>
    %24 = arith.addf %18, %23 : vector<256x128xf32>
    %25 = vector.extract_strided_slice %7 {offsets = [3, 0], sizes = [1, 128], strides = [1, 1]} : vector<9x128xf32> to vector<1x128xf32>
    %26 = vector.shape_cast %25 : vector<1x128xf32> to vector<128xf32>
    %27 = vector.shape_cast %26 : vector<128xf32> to vector<1x128xf32>
    %28 = vector.broadcast %27 : vector<1x128xf32> to vector<256x128xf32>
    %29 = arith.mulf %4, %28 : vector<256x128xf32>
    %30 = vector.extract_strided_slice %7 {offsets = [4, 0], sizes = [1, 128], strides = [1, 1]} : vector<9x128xf32> to vector<1x128xf32>
    %31 = vector.shape_cast %30 : vector<1x128xf32> to vector<128xf32>
    %32 = vector.shape_cast %31 : vector<128xf32> to vector<1x128xf32>
    %33 = vector.broadcast %32 : vector<1x128xf32> to vector<256x128xf32>
    %34 = arith.mulf %2, %33 : vector<256x128xf32>
    %35 = arith.addf %29, %34 : vector<256x128xf32>
    %36 = vector.extract_strided_slice %7 {offsets = [5, 0], sizes = [1, 128], strides = [1, 1]} : vector<9x128xf32> to vector<1x128xf32>
    %37 = vector.shape_cast %36 : vector<1x128xf32> to vector<128xf32>
    %38 = vector.shape_cast %37 : vector<128xf32> to vector<1x128xf32>
    %39 = vector.broadcast %38 : vector<1x128xf32> to vector<256x128xf32>
    %40 = arith.mulf %6, %39 : vector<256x128xf32>
    %41 = arith.addf %35, %40 : vector<256x128xf32>
    %42 = vector.extract_strided_slice %7 {offsets = [6, 0], sizes = [1, 128], strides = [1, 1]} : vector<9x128xf32> to vector<1x128xf32>
    %43 = vector.shape_cast %42 : vector<1x128xf32> to vector<128xf32>
    %44 = vector.shape_cast %43 : vector<128xf32> to vector<1x128xf32>
    %45 = vector.broadcast %44 : vector<1x128xf32> to vector<256x128xf32>
    %46 = arith.mulf %4, %45 : vector<256x128xf32>
    %47 = vector.extract_strided_slice %7 {offsets = [7, 0], sizes = [1, 128], strides = [1, 1]} : vector<9x128xf32> to vector<1x128xf32>
    %48 = vector.shape_cast %47 : vector<1x128xf32> to vector<128xf32>
    %49 = vector.shape_cast %48 : vector<128xf32> to vector<1x128xf32>
    %50 = vector.broadcast %49 : vector<1x128xf32> to vector<256x128xf32>
    %51 = arith.mulf %2, %50 : vector<256x128xf32>
    %52 = arith.addf %46, %51 : vector<256x128xf32>
    %53 = vector.extract_strided_slice %7 {offsets = [8, 0], sizes = [1, 128], strides = [1, 1]} : vector<9x128xf32> to vector<1x128xf32>
    %54 = vector.shape_cast %53 : vector<1x128xf32> to vector<128xf32>
    %55 = vector.shape_cast %54 : vector<128xf32> to vector<1x128xf32>
    %56 = vector.broadcast %55 : vector<1x128xf32> to vector<256x128xf32>
    %57 = arith.mulf %6, %56 : vector<256x128xf32>
    %58 = arith.addf %52, %57 : vector<256x128xf32>
    %cst_9 = arith.constant 0.000000e+00 : f32
    %59 = vector.broadcast %cst_9 : f32 to vector<16x128xf32>
    %60 = vector.extract_strided_slice %24 {offsets = [0, 0], sizes = [240, 128], strides = [1, 1]} : vector<256x128xf32> to vector<240x128xf32>
    %61 = tpu.concatenate %59, %60 in 0 : vector<16x128xf32>, vector<240x128xf32> -> vector<256x128xf32>
    %62 = vector.extract_strided_slice %58 {offsets = [16, 0], sizes = [240, 128], strides = [1, 1]} : vector<256x128xf32> to vector<240x128xf32>
    %63 = tpu.concatenate %62, %59 in 0 : vector<240x128xf32>, vector<16x128xf32> -> vector<256x128xf32>
    %64 = arith.addf %61, %41 : vector<256x128xf32>
    %65 = arith.addf %64, %63 : vector<256x128xf32>
    %c0_10 = arith.constant 0 : index
    %c0_11 = arith.constant 0 : index
    %66 = vector.load %arg5[%c0_10, %c0_11] : memref<1x128xf32, #tpu.memory_space<vmem>>, vector<1x128xf32>
    %67 = vector.broadcast %66 : vector<1x128xf32> to vector<256x128xf32>
    %68 = arith.addf %65, %67 : vector<256x128xf32>
    %69 = arith.negf %68 : vector<256x128xf32>
    %70 = math.exp %69 : vector<256x128xf32>
    %cst_12 = arith.constant 1.000000e+00 : f32
    %71 = vector.broadcast %cst_12 : f32 to vector<256x128xf32>
    %72 = arith.addf %71, %70 : vector<256x128xf32>
    %73 = arith.divf %71, %72 : vector<256x128xf32>
    %74 = arith.mulf %68, %73 : vector<256x128xf32>
    %cst_13 = arith.constant dense<0.000000e+00> : vector<128xf32>
    %75 = vector.multi_reduction <add>, %74, %cst_13 [0] : vector<256x128xf32> to vector<128xf32>
    %76 = vector.shape_cast %75 : vector<128xf32> to vector<1x128xf32>
    %cst_14 = arith.constant 2.560000e+02 : f32
    %77 = vector.broadcast %cst_14 : f32 to vector<1x128xf32>
    %78 = arith.divf %76, %77 : vector<1x128xf32>
    %79 = arith.truncf %78 : vector<1x128xf32> to vector<1x128xbf16>
    %c0_15 = arith.constant 0 : index
    %c0_16 = arith.constant 0 : index
    %80 = vector.load %arg6[%c0_15, %c0_16] : memref<128x128xbf16, #tpu.memory_space<vmem>>, vector<128x128xbf16>
    %cst_17 = arith.constant dense<0.000000e+00> : vector<1x128xf32>
    %81 = tpu.matmul %79, %80, %cst_17 {dimension_numbers = #tpu.dot_dimension_numbers<[1], [0], [0], [1], [0, 0, 1, 1], [], []>} : vector<1x128xbf16>, vector<128x128xbf16>, vector<1x128xf32> -> vector<1x128xf32>
    %c0_18 = arith.constant 0 : index
    %c0_19 = arith.constant 0 : index
    %82 = vector.load %arg7[%c0_18, %c0_19] : memref<1x128xf32, #tpu.memory_space<vmem>>, vector<1x128xf32>
    %83 = arith.addf %81, %82 : vector<1x128xf32>
    %84 = arith.negf %83 : vector<1x128xf32>
    %85 = math.exp %84 : vector<1x128xf32>
    %cst_20 = arith.constant 1.000000e+00 : f32
    %86 = vector.broadcast %cst_20 : f32 to vector<1x128xf32>
    %87 = arith.addf %86, %85 : vector<1x128xf32>
    %88 = arith.divf %86, %87 : vector<1x128xf32>
    %89 = arith.mulf %83, %88 : vector<1x128xf32>
    %90 = arith.truncf %89 : vector<1x128xf32> to vector<1x128xbf16>
    %c0_21 = arith.constant 0 : index
    %c0_22 = arith.constant 0 : index
    %91 = vector.load %arg8[%c0_21, %c0_22] : memref<128x128xbf16, #tpu.memory_space<vmem>>, vector<128x128xbf16>
    %cst_23 = arith.constant dense<0.000000e+00> : vector<1x128xf32>
    %92 = tpu.matmul %90, %91, %cst_23 {dimension_numbers = #tpu.dot_dimension_numbers<[1], [0], [0], [1], [0, 0, 1, 1], [], []>} : vector<1x128xbf16>, vector<128x128xbf16>, vector<1x128xf32> -> vector<1x128xf32>
    %c0_24 = arith.constant 0 : index
    %c0_25 = arith.constant 0 : index
    %93 = vector.load %arg9[%c0_24, %c0_25] : memref<1x128xf32, #tpu.memory_space<vmem>>, vector<1x128xf32>
    %94 = arith.addf %92, %93 : vector<1x128xf32>
    %95 = arith.negf %94 : vector<1x128xf32>
    %96 = math.exp %95 : vector<1x128xf32>
    %cst_26 = arith.constant 1.000000e+00 : f32
    %97 = vector.broadcast %cst_26 : f32 to vector<1x128xf32>
    %98 = arith.addf %97, %96 : vector<1x128xf32>
    %99 = arith.divf %97, %98 : vector<1x128xf32>
    %100 = vector.broadcast %99 : vector<1x128xf32> to vector<256x128xf32>
    %101 = arith.mulf %74, %100 : vector<256x128xf32>
    %102 = arith.truncf %101 : vector<256x128xf32> to vector<256x128xbf16>
    %c0_27 = arith.constant 0 : index
    %c0_28 = arith.constant 0 : index
    %103 = vector.load %arg10[%c0_27, %c0_28] : memref<128x128xbf16, #tpu.memory_space<vmem>>, vector<128x128xbf16>
    %cst_29 = arith.constant dense<0.000000e+00> : vector<256x128xf32>
    %104 = tpu.matmul %102, %103, %cst_29 {dimension_numbers = #tpu.dot_dimension_numbers<[1], [0], [0], [1], [0, 0, 1, 1], [], []>} : vector<256x128xbf16>, vector<128x128xbf16>, vector<256x128xf32> -> vector<256x128xf32>
    %c0_30 = arith.constant 0 : index
    %c0_31 = arith.constant 0 : index
    %105 = vector.load %arg11[%c0_30, %c0_31] : memref<1x128xf32, #tpu.memory_space<vmem>>, vector<1x128xf32>
    %106 = vector.broadcast %105 : vector<1x128xf32> to vector<256x128xf32>
    %107 = arith.addf %104, %106 : vector<256x128xf32>
    %108 = arith.truncf %107 : vector<256x128xf32> to vector<256x128xbf16>
    %c0_32 = arith.constant 0 : index
    %c0_33 = arith.constant 0 : index
    %109 = vector.load %arg12[%c0_32, %c0_33] : memref<128x384xbf16, #tpu.memory_space<vmem>>, vector<128x384xbf16>
    %cst_34 = arith.constant dense<0.000000e+00> : vector<256x384xf32>
    %110 = tpu.matmul %108, %109, %cst_34 {dimension_numbers = #tpu.dot_dimension_numbers<[1], [0], [0], [1], [0, 0, 1, 1], [], []>} : vector<256x128xbf16>, vector<128x384xbf16>, vector<256x384xf32> -> vector<256x384xf32>
    %c0_35 = arith.constant 0 : index
    %c0_36 = arith.constant 0 : index
    %111 = vector.load %arg13[%c0_35, %c0_36] : memref<1x384xf32, #tpu.memory_space<vmem>>, vector<1x384xf32>
    %112 = vector.broadcast %111 : vector<1x384xf32> to vector<256x384xf32>
    %113 = arith.addf %110, %112 : vector<256x384xf32>
    %114 = arith.negf %113 : vector<256x384xf32>
    %115 = math.exp %114 : vector<256x384xf32>
    %cst_37 = arith.constant 1.000000e+00 : f32
    %116 = vector.broadcast %cst_37 : f32 to vector<256x384xf32>
    %117 = arith.addf %116, %115 : vector<256x384xf32>
    %118 = arith.divf %116, %117 : vector<256x384xf32>
    %119 = arith.mulf %113, %118 : vector<256x384xf32>
    %120 = arith.truncf %119 : vector<256x384xf32> to vector<256x384xbf16>
    %c0_38 = arith.constant 0 : index
    %c0_39 = arith.constant 0 : index
    %121 = vector.load %arg14[%c0_38, %c0_39] : memref<384x256xbf16, #tpu.memory_space<vmem>>, vector<384x256xbf16>
    %cst_40 = arith.constant dense<0.000000e+00> : vector<256x256xf32>
    %122 = tpu.matmul %120, %121, %cst_40 {dimension_numbers = #tpu.dot_dimension_numbers<[1], [0], [0], [1], [0, 0, 1, 1], [], []>} : vector<256x384xbf16>, vector<384x256xbf16>, vector<256x256xf32> -> vector<256x256xf32>
    %c0_41 = arith.constant 0 : index
    %c0_42 = arith.constant 0 : index
    %123 = vector.load %arg15[%c0_41, %c0_42] : memref<1x256xf32, #tpu.memory_space<vmem>>, vector<1x256xf32>
    %124 = vector.broadcast %123 : vector<1x256xf32> to vector<256x256xf32>
    %125 = arith.addf %122, %124 : vector<256x256xf32>
    %c0_43 = arith.constant 0 : index
    %c0_44 = arith.constant 0 : index
    %c0_45 = arith.constant 0 : index
    %126 = vector.load %arg16[%c0_43, %c0_44, %c0_45] : memref<1x256x256xf32, #tpu.memory_space<vmem>>, vector<1x256x256xf32>
    %127 = vector.shape_cast %126 : vector<1x256x256xf32> to vector<256x256xf32>
    %128 = vector.shape_cast %125 : vector<256x256xf32> to vector<1x256x256xf32>
    tpu.vector_store %arg16[%c0_43, %c0_44, %c0_45], %128 {strides = array<i32>} : memref<1x256x256xf32, #tpu.memory_space<vmem>>, vector<1x256x256xf32>,
    return
  }
  func.func @transform_0(%arg0: i32) -> (i32, i32, i32) {
    %c0_i32 = arith.constant 0 : i32
    %c0_i32_0 = arith.constant 0 : i32
    %c0_i32_1 = arith.constant 0 : i32
    return %arg0, %c0_i32, %c0_i32_0 : i32, i32, i32
  }
  func.func @transform_1(%arg0: i32) -> (i32, i32) {
    %c0_i32 = arith.constant 0 : i32
    %c0_i32_0 = arith.constant 0 : i32
    %c0_i32_1 = arith.constant 0 : i32
    return %c0_i32, %c0_i32_0 : i32, i32
  }
  func.func @transform_2(%arg0: i32) -> (i32, i32) {
    %c0_i32 = arith.constant 0 : i32
    %c0_i32_0 = arith.constant 0 : i32
    %c0_i32_1 = arith.constant 0 : i32
    return %c0_i32, %c0_i32_0 : i32, i32
  }
  func.func @transform_3(%arg0: i32) -> (i32, i32) {
    %c0_i32 = arith.constant 0 : i32
    %c0_i32_0 = arith.constant 0 : i32
    %c0_i32_1 = arith.constant 0 : i32
    return %c0_i32, %c0_i32_0 : i32, i32
  }
  func.func @transform_4(%arg0: i32) -> (i32, i32) {
    %c0_i32 = arith.constant 0 : i32
    %c0_i32_0 = arith.constant 0 : i32
    %c0_i32_1 = arith.constant 0 : i32
    return %c0_i32, %c0_i32_0 : i32, i32
  }
  func.func @transform_5(%arg0: i32) -> (i32, i32) {
    %c0_i32 = arith.constant 0 : i32
    %c0_i32_0 = arith.constant 0 : i32
    %c0_i32_1 = arith.constant 0 : i32
    return %c0_i32, %c0_i32_0 : i32, i32
  }
  func.func @transform_6(%arg0: i32) -> (i32, i32) {
    %c0_i32 = arith.constant 0 : i32
    %c0_i32_0 = arith.constant 0 : i32
    %c0_i32_1 = arith.constant 0 : i32
    return %c0_i32, %c0_i32_0 : i32, i32
  }
  func.func @transform_7(%arg0: i32) -> (i32, i32) {
    %c0_i32 = arith.constant 0 : i32
    %c0_i32_0 = arith.constant 0 : i32
    %c0_i32_1 = arith.constant 0 : i32
    return %c0_i32, %c0_i32_0 : i32, i32
  }
  func.func @transform_8(%arg0: i32) -> (i32, i32) {
    %c0_i32 = arith.constant 0 : i32
    %c0_i32_0 = arith.constant 0 : i32
    %c0_i32_1 = arith.constant 0 : i32
    return %c0_i32, %c0_i32_0 : i32, i32
  }
  func.func @transform_9(%arg0: i32) -> (i32, i32) {
    %c0_i32 = arith.constant 0 : i32
    %c0_i32_0 = arith.constant 0 : i32
    %c0_i32_1 = arith.constant 0 : i32
    return %c0_i32, %c0_i32_0 : i32, i32
  }
  func.func @transform_10(%arg0: i32) -> (i32, i32) {
    %c0_i32 = arith.constant 0 : i32
    %c0_i32_0 = arith.constant 0 : i32
    %c0_i32_1 = arith.constant 0 : i32
    return %c0_i32, %c0_i32_0 : i32, i32
  }
  func.func @transform_11(%arg0: i32) -> (i32, i32) {
    %c0_i32 = arith.constant 0 : i32
    %c0_i32_0 = arith.constant 0 : i32
    %c0_i32_1 = arith.constant 0 : i32
    return %c0_i32, %c0_i32_0 : i32, i32
  }
  func.func @transform_12(%arg0: i32) -> (i32, i32) {
    %c0_i32 = arith.constant 0 : i32
    %c0_i32_0 = arith.constant 0 : i32
    %c0_i32_1 = arith.constant 0 : i32
    return %c0_i32, %c0_i32_0 : i32, i32
  }
  func.func @transform_13(%arg0: i32) -> (i32, i32) {
    %c0_i32 = arith.constant 0 : i32
    %c0_i32_0 = arith.constant 0 : i32
    %c0_i32_1 = arith.constant 0 : i32
    return %c0_i32, %c0_i32_0 : i32, i32
  }
  func.func @transform_14(%arg0: i32) -> (i32, i32) {
    %c0_i32 = arith.constant 0 : i32
    %c0_i32_0 = arith.constant 0 : i32
    %c0_i32_1 = arith.constant 0 : i32
    return %c0_i32, %c0_i32_0 : i32, i32
  }
  func.func @transform_15(%arg0: i32) -> (i32, i32, i32) {
    %c0_i32 = arith.constant 0 : i32
    %c0_i32_0 = arith.constant 0 : i32
    %c0_i32_1 = arith.constant 0 : i32
    return %arg0, %c0_i32, %c0_i32_0 : i32, i32, i32
  }
}

</mosaic_0001>

<bundles_post_ra>
// kernel: efficientnet_backbone_forward.2
= control target key start
LH: loop header
LB: loop body
LE: loop exit
PB: predicated region body
PF: predicated region fallthrough
CT: control target
= control target key end

     0   :  { %s1035_s18 = smov 0   ;;  %s1113_s0 = inlined_call_operand.vmem [shape: bf16[512,128], index: 0, kind: input, shape index: {}]   ;;  %s1114_s1 = inlined_call_operand.vmem [shape: bf16[128,128], index: 1, kind: input, shape index: {}]   ;;  %s1115_s2 = inlined_call_operand.vmem [shape: f32[1,128], index: 2, kind: input, shape index: {}]   ;;  %s1116_s3 = inlined_call_operand.vmem [shape: bf16[128,128], index: 3, kind: input, shape index: {}]   ;;  %s1117_s4 = inlined_call_operand.vmem [shape: f32[1,128], index: 4, kind: input, shape index: {}]   ;;  %s1118_s5 = inlined_call_operand.vmem [shape: bf16[512,128], index: 5, kind: output, shape index: {}]  }
   0x1 LB: > { %s745_s19 = sadd.s32 4294967295, %s1003_s18   ;;  %p749_p0 = scmp.ge.s32.totalorder %s1003_s18, 1  ;;  %s1003_s18 = sphi %s1035_s18, %s15_s18  }
   0x2   : > { %p188_p1 = scmp.lt.s32.totalorder %s1003_s18, 9 }
   0x4   : > { %p189_p2 = pnand %p749_p0, %p188_p1 }
   0x5   : > { %v913_v0 = vld [vmem:[%s1114_s1] sm:$0xff] (!%p189_p2)   ;;  %s750_s22 = sshll.u32 (!%p189_p2), %s745_s19, 3  ;;  %v914_v1 = vld [vmem:[%s1114_s1 + $0x8] sm:$0xff] (!%p189_p2)   ;;  %v915_v2 = vld [vmem:[%s1114_s1 + $0x10] sm:$0xff] (!%p189_p2)  }
   0x6   : > { %192 = sbr.rel (%p189_p2) target bundleno = 542 (0x21e), region = 40  ;;  %p217_p3 = scmp.lt.s32.totalorder (!%p189_p2), %s750_s22, 63  ;;  %857 = vmatprep.subr.bf16.mxu0 (!%p189_p2), %v913_v0  ;;  %v916_v3 = vld [vmem:[%s1114_s1 + $0x18] sm:$0xff] (!%p189_p2)   ;;  %v917_v5 = vld [vmem:[%s1114_s1 + $0x20] sm:$0xff] (!%p189_p2)   ;;  %v918_v6 = vld [vmem:[%s1114_s1 + $0x28] sm:$0xff] (!%p189_p2)  }
   0x7   : > { %858 = vmatpush3.bf16.msra.mxu0 (!%p189_p2), %v913_v0  ;;  %v919_v7 = vld [vmem:[%s1114_s1 + $0x30] sm:$0xff] (!%p189_p2)   ;;  %v920_v8 = vld [vmem:[%s1114_s1 + $0x38] sm:$0xff] (!%p189_p2)   ;;  %v925_v12 = vld [vmem:[%s1116_s3] sm:$0xff] (!%p189_p2)  }
   0x8   : > { %859 = vmatprep.subr.bf16.mxu0 (!%p189_p2), %v914_v1  ;;  %881 = vmatprep.subr.bf16.mxu1 (!%p189_p2), %v925_v12  ;;  %v926_v13 = vld [vmem:[%s1116_s3 + $0x8] sm:$0xff] (!%p189_p2)   ;;  %v927_v14 = vld [vmem:[%s1116_s3 + $0x10] sm:$0xff] (!%p189_p2)   ;;  %v928_v15 = vld [vmem:[%s1116_s3 + $0x18] sm:$0xff] (!%p189_p2)  }
   0x9   : > { %882 = vmatpush3.bf16.msra.mxu1 (!%p189_p2), %v925_v12  ;;  %v929_v16 = vld [vmem:[%s1116_s3 + $0x20] sm:$0xff] (!%p189_p2)   ;;  %v930_v17 = vld [vmem:[%s1116_s3 + $0x28] sm:$0xff] (!%p189_p2)   ;;  %v931_v18 = vld [vmem:[%s1116_s3 + $0x30] sm:$0xff] (!%p189_p2)  }
   0xa   : > { %883 = vmatprep.subr.bf16.mxu1 (!%p189_p2), %v926_v13  ;;  %v932_v19 = vld [vmem:[%s1116_s3 + $0x38] sm:$0xff] (!%p189_p2)   ;;  %v754_v20 = vld [vmem:[%s1115_s2] ss:$0 sm:$0xff] (!%p189_p2) }
   0xb   : > { %860 = vmatpush3.bf16.msra.mxu0 (!%p189_p2), %v914_v1 }
   0xc   : > { %861 = vmatprep.subr.bf16.mxu0 (!%p189_p2), %v915_v2 }
   0xd   : > { %s1120_s22 = smov (!%p217_p3, %s750_s22), 63  ;;  %884 = vmatpush3.bf16.msra.mxu1 %v926_v13 }
   0xe   : > { %s751_s27 = sshll.u32 %s1120_s22, 2  ;;  %885 = vmatprep.subr.bf16.mxu1 %v927_v14 }
   0xf   : > { %s220_s30 = scalar_lea.vmem %s1113_s0, %s751_s27  ;;  %862 = vmatpush3.bf16.msra.mxu0 %v915_v2  ;;  %s226_s16 = scalar_lea.vmem %s1118_s5, %s751_s27 }
  0x10   : > { %v921_v4 = vld [vmem:[%s220_s30] sm:$0xff]   ;;  %863 = vmatprep.subr.bf16.mxu0 %v916_v3  ;;  %v922_v9 = vld [vmem:[%s220_s30 + $0x8] sm:$0xff]   ;;  %v923_v10 = vld [vmem:[%s220_s30 + $0x10] sm:$0xff]  }
  0x11   : > { %873 = vmatprep.mubr.bf16.mxu0 %v921_v4  ;;  %v924_v11 = vld [vmem:[%s220_s30 + $0x18] sm:$0xff]   ;;  %886 = vmatpush3.bf16.msra.mxu1 %v927_v14 }
  0x12   : > { %887 = vmatprep.subr.bf16.mxu1 %v928_v15 }
  0x13   : > { %864 = vmatpush3.bf16.msra.mxu0 %v916_v3 }
  0x14   : > { %865 = vmatprep.subr.bf16.mxu0 %v917_v5 }
  0x15   : > { %888 = vmatpush3.bf16.msra.mxu1 %v928_v15 }
  0x16   : > { %889 = vmatprep.subr.bf16.mxu1 %v929_v16 }
  0x17   : > { %866 = vmatpush3.bf16.msra.mxu0 %v917_v5 }
  0x18   : > { %867 = vmatprep.subr.bf16.mxu0 %v918_v6 }
  0x19   : > { %890 = vmatpush3.bf16.msra.mxu1 %v929_v16 }
  0x1a   : > { %891 = vmatprep.subr.bf16.mxu1 %v930_v17 }
  0x1b   : > { %868 = vmatpush3.bf16.msra.mxu0 %v918_v6 }
  0x1c   : > { %869 = vmatprep.subr.bf16.mxu0 %v919_v7 }
  0x1d   : > { %892 = vmatpush3.bf16.msra.mxu1 %v930_v17  ;;  %v775_v17 = vld [vmem:[%s1117_s4] ss:$0 sm:$0xff] }
  0x1e   : > { %893 = vmatprep.subr.bf16.mxu1 %v931_v18 }
  0x1f   : > { %870 = vmatpush3.bf16.msra.mxu0 %v919_v7 }
  0x20   : > { %871 = vmatprep.subr.bf16.mxu0 %v920_v8 }
  0x21   : > { %894 = vmatpush3.bf16.msra.mxu1 %v931_v18 }
  0x22   : > { %895 = vmatprep.subr.bf16.mxu1 %v932_v19 }
  0x23   : > { %872 = vmatpush3.bf16.msra.mxu0 %v920_v8 }
  0x25   : > { %896 = vmatpush3.bf16.msra.mxu1 %v932_v19 }
  0x26   : > { %874 = vmatmul.mubr.bf16.vlgmr.msra.gmra.mrb[0].mxu0 %v922_v9 }
  0x27   : > { %877 = vmatprep.mubr.bf16.mxu0 %v923_v10 }
  0x2e   : > { %878 = vmatmul.mubr.bf16.gmra.mrb[4].mxu0 %v924_v11 }
  0xf9   : > { %v875_v21 = vpop.f32.mrb[0].mxu0 }
  0xfa   : > { %v375_v22 = vadd.f32 %v875_v21, %v754_v20  ;;  %v366_v23 = vpop.f32.mrb[1].mxu0 }
  0xfb   : > { %v367_v24 = vadd.f32 %v754_v20, %v366_v23  ;;  %v876_v25 = vpop.f32.mrb[2].mxu0 }
  0xfc   : > { %v769_v26 = vmul.f32 -1.442695, %v375_v22  ;;  %v378_v27 = vadd.f32 %v876_v25, %v754_v20  ;;  %v369_v28 = vpop.f32.mrb[3].mxu0 }
  0xfd   : > { %v767_v29 = vmul.f32 -1.442695, %v367_v24  ;;  %v370_v30 = vadd.f32 %v754_v20, %v369_v28 }
  0xfe   : > { %933 = vpow2.f32 %v769_v26  ;;  %v770_v31 = vmul.f32 -1.442695, %v378_v27 }
  0xff   : > { %935 = vpow2.f32 %v767_v29  ;;  %v768_v32 = vmul.f32 -1.442695, %v370_v30 }
 0x100   : > { %937 = vpow2.f32 %v770_v31 }
 0x101   : > { %939 = vpow2.f32 %v768_v32  ;;  %v879_v33 = vpop.f32.mrb[4].mxu0 }
 0x102   : > { %v391_v34 = vadd.f32 %v879_v33, %v754_v20  ;;  %v382_v35 = vpop.f32.mrb[5].mxu0 }
 0x103   : > { %v383_v36 = vadd.f32 %v754_v20, %v382_v35  ;;  %v880_v37 = vpop.f32.mrb[6].mxu0 }
 0x104   : > { %v773_v38 = vmul.f32 -1.442695, %v391_v34  ;;  %v394_v39 = vadd.f32 %v880_v37, %v754_v20  ;;  %v385_v40 = vpop.f32.mrb[7].mxu0 }
 0x105   : > { %v771_v41 = vmul.f32 -1.442695, %v383_v36  ;;  %v386_v42 = vadd.f32 %v754_v20, %v385_v40 }
 0x106   : > { %941 = vpow2.f32 %v773_v38  ;;  %v774_v43 = vmul.f32 -1.442695, %v394_v39 }
 0x107   : > { %943 = vpow2.f32 %v771_v41  ;;  %v772_v44 = vmul.f32 -1.442695, %v386_v42 }
 0x108   : > { %v934_v45 = vpop.eup %933  ;;  %945 = vpow2.f32 %v774_v43 }
 0x109   : > { %v936_v46 = vpop.eup %935  ;;  %v423_v47 = vadd.f32 1.0, %v934_v45  ;;  %947 = vpow2.f32 %v772_v44 }
 0x10a   : > { %v938_v48 = vpop.eup %937  ;;  %v421_v49 = vadd.f32 1.0, %v936_v46 }
 0x10b   : > { %v940_v50 = vpop.eup %939  ;;  %949 = vrcp.f32 %v423_v47  ;;  %v424_v51 = vadd.f32 1.0, %v938_v48 }
 0x10c   : > { %951 = vrcp.f32 %v421_v49  ;;  %v422_v52 = vadd.f32 1.0, %v940_v50 }
 0x10d   : > { %953 = vrcp.f32 %v424_v51 }
 0x10e   : > { %955 = vrcp.f32 %v422_v52 }
 0x110   : > { %v942_v53 = vpop.eup %941 }
 0x111   : > { %v944_v54 = vpop.eup %943  ;;  %v427_v55 = vadd.f32 1.0, %v942_v53 }
 0x112   : > { %v946_v56 = vpop.eup %945  ;;  %v425_v57 = vadd.f32 1.0, %v944_v54 }
 0x113   : > { %v948_v58 = vpop.eup %947  ;;  %957 = vrcp.f32 %v427_v55  ;;  %v428_v59 = vadd.f32 1.0, %v946_v56 }
 0x114   : > { %959 = vrcp.f32 %v425_v57  ;;  %v426_v60 = vadd.f32 1.0, %v948_v58 }
 0x115   : > { %v950_v61 = vpop.eup %949  ;;  %961 = vrcp.f32 %v428_v59 }
 0x116   : > { %v952_v62 = vpop.eup %951  ;;  %963 = vrcp.f32 %v426_v60  ;;  %v447_v1 = vmul.f32 %v950_v61, %v375_v22 }
 0x117   : > { %v954_v63 = vpop.eup %953  ;;  %v445_v3 = vmul.f32 %v952_v62, %v367_v24 }
 0x118   : > { %v956_v0 = vpop.eup %955  ;;  %v448_v2 = vmul.f32 %v954_v63, %v378_v27 }
 0x119   : > { %v446_v4 = vmul.f32 %v956_v0, %v370_v30 }
 0x11a   : > { %v454_v5 = vpack.c.bf16 %v448_v2, %v447_v1 }
 0x11b   : > { %v453_v6 = vpack.c.bf16 %v446_v4, %v445_v3 }
 0x11d   : > { %v958_v7 = vpop.eup %957  ;;  %897 = vmatprep.mubr.bf16.mxu1 %v453_v6 }
 0x11e   : > { %v960_v8 = vpop.eup %959  ;;  %898 = vmatmul.mubr.bf16.vlgmr.msra.gmra.mrb[0].mxu1 %v454_v5  ;;  %v451_v11 = vmul.f32 %v958_v7, %v391_v34 }
 0x11f   : > { %v962_v9 = vpop.eup %961  ;;  %v449_v13 = vmul.f32 %v960_v8, %v383_v36 }
 0x120   : > { %v964_v10 = vpop.eup %963  ;;  %v452_v12 = vmul.f32 %v962_v9, %v394_v39 }
 0x121   : > { %v450_v14 = vmul.f32 %v964_v10, %v386_v42 }
 0x122   : > { %v456_v15 = vpack.c.bf16 %v452_v12, %v451_v11 }
 0x123   : > { %v455_v16 = vpack.c.bf16 %v450_v14, %v449_v13 }
 0x125   : > { %901 = vmatprep.mubr.bf16.mxu1 %v455_v16 }
 0x126   : > { %902 = vmatmul.mubr.bf16.gmra.mrb[4].mxu1 %v456_v15 }
 0x1f1   : > { %v899_v18 = vpop.f32.mrb[0].mxu1 }
 0x1f2   : > { %v571_v19 = vadd.f32 %v899_v18, %v775_v17  ;;  %v562_v20 = vpop.f32.mrb[1].mxu1 }
 0x1f3   : > { %v563_v21 = vadd.f32 %v775_v17, %v562_v20  ;;  %v900_v22 = vpop.f32.mrb[2].mxu1 }
 0x1f4   : > { %v786_v23 = vmul.f32 -1.442695, %v571_v19  ;;  %v574_v24 = vadd.f32 %v900_v22, %v775_v17  ;;  %v565_v25 = vpop.f32.mrb[3].mxu1 }
 0x1f5   : > { %v784_v26 = vmul.f32 -1.442695, %v563_v21  ;;  %v566_v27 = vadd.f32 %v775_v17, %v565_v25 }
 0x1f6   : > { %965 = vpow2.f32 %v786_v23  ;;  %v787_v28 = vmul.f32 -1.442695, %v574_v24 }
 0x1f7   : > { %967 = vpow2.f32 %v784_v26  ;;  %v785_v29 = vmul.f32 -1.442695, %v566_v27 }
 0x1f8   : > { %969 = vpow2.f32 %v787_v28 }
 0x1f9   : > { %971 = vpow2.f32 %v785_v29  ;;  %v903_v30 = vpop.f32.mrb[4].mxu1 }
 0x1fa   : > { %v587_v31 = vadd.f32 %v903_v30, %v775_v17  ;;  %v578_v32 = vpop.f32.mrb[5].mxu1 }
 0x1fb   : > { %v579_v33 = vadd.f32 %v775_v17, %v578_v32  ;;  %v904_v34 = vpop.f32.mrb[6].mxu1 }
 0x1fc   : > { %v790_v35 = vmul.f32 -1.442695, %v587_v31  ;;  %v590_v36 = vadd.f32 %v904_v34, %v775_v17  ;;  %v581_v37 = vpop.f32.mrb[7].mxu1 }
 0x1fd   : > { %v788_v38 = vmul.f32 -1.442695, %v579_v33  ;;  %v582_v39 = vadd.f32 %v775_v17, %v581_v37 }
 0x1fe   : > { %973 = vpow2.f32 %v790_v35  ;;  %v791_v40 = vmul.f32 -1.442695, %v590_v36 }
 0x1ff   : > { %975 = vpow2.f32 %v788_v38  ;;  %v789_v41 = vmul.f32 -1.442695, %v582_v39 }
 0x200   : > { %v966_v42 = vpop.eup %965  ;;  %977 = vpow2.f32 %v791_v40 }
 0x201   : > { %v968_v43 = vpop.eup %967  ;;  %v619_v44 = vadd.f32 1.0, %v966_v42  ;;  %979 = vpow2.f32 %v789_v41 }
 0x202   : > { %v970_v45 = vpop.eup %969  ;;  %v617_v46 = vadd.f32 1.0, %v968_v43 }
 0x203   : > { %v972_v47 = vpop.eup %971  ;;  %981 = vrcp.f32 %v619_v44  ;;  %v620_v48 = vadd.f32 1.0, %v970_v45 }
 0x204   : > { %983 = vrcp.f32 %v617_v46  ;;  %v618_v49 = vadd.f32 1.0, %v972_v47 }
 0x205   : > { %985 = vrcp.f32 %v620_v48 }
 0x206   : > { %987 = vrcp.f32 %v618_v49 }
 0x208   : > { %v974_v50 = vpop.eup %973 }
 0x209   : > { %v976_v51 = vpop.eup %975  ;;  %v623_v52 = vadd.f32 1.0, %v974_v50 }
 0x20a   : > { %v978_v53 = vpop.eup %977  ;;  %v621_v54 = vadd.f32 1.0, %v976_v51 }
 0x20b   : > { %v980_v55 = vpop.eup %979  ;;  %989 = vrcp.f32 %v623_v52  ;;  %v624_v56 = vadd.f32 1.0, %v978_v53 }
 0x20c   : > { %991 = vrcp.f32 %v621_v54  ;;  %v622_v57 = vadd.f32 1.0, %v980_v55 }
 0x20d   : > { %v982_v58 = vpop.eup %981  ;;  %993 = vrcp.f32 %v624_v56 }
 0x20e   : > { %v984_v59 = vpop.eup %983  ;;  %995 = vrcp.f32 %v622_v57  ;;  %v643_v62 = vmul.f32 %v982_v58, %v571_v19 }
 0x20f   : > { %v986_v60 = vpop.eup %985  ;;  %v641_v0 = vmul.f32 %v984_v59, %v563_v21 }
 0x210   : > { %v988_v61 = vpop.eup %987  ;;  %v644_v63 = vmul.f32 %v986_v60, %v574_v24 }
 0x211   : > { %v642_v1 = vmul.f32 %v988_v61, %v566_v27 }
 0x212   : > { %v818_v2 = vpack.c.bf16 %v644_v63, %v643_v62 }
 0x213   : > { %v813_v3 = vpack.c.bf16 %v642_v1, %v641_v0 }
 0x214   : > { %830 = vst [vmem:[%s226_s16 + $0x8] sm:$0xff] %v818_v2  }
 0x215   : > { %v990_v4 = vpop.eup %989  ;;  %814 = vst [vmem:[%s226_s16] sm:$0xff] %v813_v3  }
 0x216   : > { %v992_v5 = vpop.eup %991  ;;  %v647_v8 = vmul.f32 %v990_v4, %v587_v31 }
 0x217   : > { %v994_v6 = vpop.eup %993  ;;  %v645_v10 = vmul.f32 %v992_v5, %v579_v33 }
 0x218   : > { %v996_v7 = vpop.eup %995  ;;  %v648_v9 = vmul.f32 %v994_v6, %v590_v36 }
 0x219   : > { %v646_v11 = vmul.f32 %v996_v7, %v582_v39 }
 0x21a   : > { %v828_v12 = vpack.c.bf16 %v648_v9, %v647_v8 }
 0x21b   : > { %v823_v13 = vpack.c.bf16 %v646_v11, %v645_v10 }
 0x21c   : > { %832 = vst [vmem:[%s226_s16 + $0x18] sm:$0xff] %v828_v12  }
 0x21d   : > { %831 = vst [vmem:[%s226_s16 + $0x10] sm:$0xff] %v823_v13  }
 0x21e PF: > { %s15_s18 = sadd.s32 1, %s1003_s18  }
 0x21f   : > { %p12_p4 = scmp.ge.s32.totalorder %s15_s18, 10  }
 0x221   :  { %14 = sbr.rel (!%p12_p4) target bundleno = 1 (0x1), region = 70 }

// kernel: efficientnet_backbone_forward.3
= control target key start
LH: loop header
LB: loop body
LE: loop exit
PB: predicated region body
PF: predicated region fallthrough
CT: control target
= control target key end

     0   :  { %s9429_s0 = inlined_call_operand.vmem [shape: bf16[2,256,128], index: 0, kind: input, shape index: {}]   ;;  %s9430_s1 = inlined_call_operand.vmem [shape: bf16[256,256], index: 1, kind: input, shape index: {}]   ;;  %s9431_s2 = inlined_call_operand.vmem [shape: bf16[256,256], index: 2, kind: input, shape index: {}]   ;;  %s9432_s3 = inlined_call_operand.vmem [shape: f32[9,128], index: 3, kind: input, shape index: {}]   ;;  %s9433_s4 = inlined_call_operand.vmem [shape: f32[1,128], index: 4, kind: input, shape index: {}]   ;;  %s9434_s5 = inlined_call_operand.vmem [shape: bf16[128,128], index: 5, kind: input, shape index: {}]   ;;  %s9435_s6 = inlined_call_operand.vmem [shape: f32[1,128], index: 6, kind: input, shape index: {}]   ;;  %s9436_s7 = inlined_call_operand.vmem [shape: bf16[128,128], index: 7, kind: input, shape index: {}]   ;;  %s9437_s8 = inlined_call_operand.vmem [shape: f32[1,128], index: 8, kind: input, shape index: {}]   ;;  %s9438_s9 = inlined_call_operand.vmem [shape: bf16[128,128], index: 9, kind: input, shape index: {}]   ;;  %s9439_s10 = inlined_call_operand.vmem [shape: f32[1,128], index: 10, kind: input, shape index: {}]   ;;  %s9440_s11 = inlined_call_operand.vmem [shape: bf16[128,384], index: 11, kind: input, shape index: {}]   ;;  %s9441_s12 = inlined_call_operand.vmem [shape: f32[1,384], index: 12, kind: input, shape index: {}]   ;;  %s9442_s13 = inlined_call_operand.vmem [shape: bf16[384,256], index: 13, kind: input, shape index: {}]   ;;  %s9443_s14 = inlined_call_operand.vmem [shape: f32[1,256], index: 14, kind: input, shape index: {}]   ;;  %s9444_s15 = inlined_call_operand.hbm [shape: f32[2,256,256], index: 15, kind: output, shape index: {}]  }
   0x1   :  { %9488 = sst [smem:[#allocation61_spill]] %s9429_s0 }
   0x2   :  { %20 = vsyncpa [#allocation3], 0 }
   0x3   :  { %22 = vsyncpa [#allocation3 + $0x1], 0  ;;  %s6683_s18 = smov 0   ;;  %s6685_s19 = smov 0  }
   0x4   :  { %s6687_s20 = smov 0   ;;  %s6689_s21 = smov 0  }
   0x5 LB: > { %9489 = sst [smem:[#allocation5_spill]] %s6591_s20  ;;  %s6704_s22 = sadd.s32 4294967295, %s6595_s21   ;;  %s6595_s21 = sphi %s6689_s21, %s9720_s21   ;;  %s6591_s20 = sphi %s6687_s20, %s9725_s20   ;;  %s6587_s19 = sphi %s6685_s19, %s9724_s19   ;;  %s6583_s18 = sphi %s6683_s18, %s9723_s18  }
   0x6   : > { %s4826_s23 = sadd.s32 4294967294, %s6595_s21   ;;  %s6708_s24 = sadd.s32 1, %s6595_s21  }
   0x7   : > { %9490 = sst [smem:[#allocation6_spill]] %s6708_s24  ;;  %s355_s25 = sadd.s32 1, %s6591_s20 }
   0x8   : > { %s352_s26 = ssub.s32 %s6595_s21, %s6708_s24  ;;  %p365_p0 = scmp.ne.s32.totalorder %s6591_s20, %s6587_s19 }
   0x9   : > { %p353_p1 = scmp.eq.s32.totalorder %s352_s26, 0  ;;  %p366_p2 = scmp.eq.s32.totalorder %s6704_s22, 1 }
   0xa   : > { %p371_p3 = scmp.ne.s32.totalorder %s6587_s19, %s6583_s18  ;;  %p372_p4 = scmp.eq.s32.totalorder %s4826_s23, 1 }
   0xb   : > { %s6719_s27 = scalar_select %p353_p1, %s6591_s20, %s355_s25  }
   0xc   : > { %p6721_p5 = por %p366_p2, %p365_p0  ;;  %p6725_p6 = por %p372_p4, %p371_p3 }
   0xd   : > { %9491 = sst [smem:[#allocation7_spill]] %s6719_s27  ;;  %p4829_p7 = scmp.ge.s32.totalorder %s6595_s21, 1 }
   0xe   : > { %s9493_s29 = scalar_select %p6725_p6, 1, 0 }
   0xf   : > { %p440_p8 = scmp.lt.s32.totalorder %s6595_s21, 3 }
  0x10   : > { %9494 = sst [smem:[#allocation8_spill]] %s9493_s29 }
  0x11   : > { %p441_p9 = pnand %p4829_p7, %p440_p8 }
  0x13   : > { %444 = sbr.rel (%p441_p9) target bundleno = 2097 (0x831), region = 80 }
  0x1a   : > { %p488_p10 = scmp.lt.s32.totalorder %s6704_s22, 1  ;;  %v5765_v0 = vld [vmem:[%s9430_s1 + $0x4] ss:$8 sps:$4 sm:$0xff]   ;;  %s9495_s0 = sld [smem:[#allocation61_spill]]  ;;  %v5763_v17 = vld [vmem:[%s9430_s1] ss:$8 sps:$4 sm:$0xff]  }
  0x1b   : > { %878 = vmatprep.mubr.bf16.mxu1 %v5765_v0  ;;  %v5766_v18 = vld [vmem:[%s9430_s1 + $0x14] ss:$8 sps:$4 sm:$0xff]   ;;  %v5768_v19 = vld [vmem:[%s9430_s1 + $0x10] ss:$8 sps:$4 sm:$0xff]   ;;  %v5769_v20 = vld [vmem:[%s9430_s1 + $0x24] ss:$8 sps:$4 sm:$0xff]  }
  0x1c   : > { %s489_s17 = scalar_select %p488_p10, %s6704_s22, 1  ;;  %v5771_v21 = vld [vmem:[%s9430_s1 + $0x20] ss:$8 sps:$4 sm:$0xff]   ;;  %v5772_v22 = vld [vmem:[%s9430_s1 + $0x34] ss:$8 sps:$4 sm:$0xff]   ;;  %vm6598_vm0 = vmmov 0  }
  0x1d   : > { %v5774_v23 = vld [vmem:[%s9430_s1 + $0x30] ss:$8 sps:$4 sm:$0xff]   ;;  %v5775_v24 = vld [vmem:[%s9430_s1 + $0x44] ss:$8 sps:$4 sm:$0xff]   ;;  %v5777_v25 = vld [vmem:[%s9430_s1 + $0x40] ss:$8 sps:$4 sm:$0xff]  }
  0x1e   : > { %s5147_s23 = sshll.u32 %s489_s17, 7  ;;  %v5778_v26 = vld [vmem:[%s9430_s1 + $0x54] ss:$8 sps:$4 sm:$0xff]   ;;  %v5780_v27 = vld [vmem:[%s9430_s1 + $0x50] ss:$8 sps:$4 sm:$0xff]   ;;  %s485_s24 = sand.u32 1, %s6587_s19  }
  0x1f   : > { %v5781_v28 = vld [vmem:[%s9430_s1 + $0x64] ss:$8 sps:$4 sm:$0xff]   ;;  %v5783_v29 = vld [vmem:[%s9430_s1 + $0x60] ss:$8 sps:$4 sm:$0xff]   ;;  %v5784_v30 = vld [vmem:[%s9430_s1 + $0x74] ss:$8 sps:$4 sm:$0xff]  }
  0x20   : > { %s6739_s27 = scalar_lea.vmem %s9495_s0, %s5147_s23  ;;  %v5786_v31 = vld [vmem:[%s9430_s1 + $0x70] ss:$8 sps:$4 sm:$0xff]   ;;  %v5787_v32 = vld [vmem:[%s9430_s1 + $0x84] ss:$8 sps:$4 sm:$0xff]   ;;  %v5789_v33 = vld [vmem:[%s9430_s1 + $0x80] ss:$8 sps:$4 sm:$0xff]  }
  0x21   : > { %v510_v1 = vld [vmem:[%s6739_s27 + $0x40] sm:$0xff]   ;;  %v512_v3 = vld [vmem:[%s6739_s27 + $0x48] sm:$0xff]   ;;  %v514_v5 = vld [vmem:[%s6739_s27 + $0x50] sm:$0xff]   ;;  %s4830_s29 = sshll.u32 %s485_s24, 9  ;;  %s5148_s20 = sshll.u32 %s6704_s22, 13 }
  0x22   : > { %v6743_v2 = vld [vmem:[%s6739_s27] sm:$0xff]   ;;  %5149 = vmatprep.subr.bf16.mxu1 %v510_v1  ;;  %v6747_v4 = vld [vmem:[%s6739_s27 + $0x8] sm:$0xff]   ;;  %v6752_v6 = vld [vmem:[%s6739_s27 + $0x10] sm:$0xff]   ;;  %s9249_s0 = scalar_lea.vmem [#allocation2], %s4830_s29  ;;  %s9378_s16 = scalar_lea.hbm %s9444_s15, %s5148_s20 }
  0x23   : > { %5150 = vmatpush3.bf16.msra.mxu1 %v6743_v2  ;;  %v516_v7 = vld [vmem:[%s6739_s27 + $0x58] sm:$0xff]   ;;  %v518_v9 = vld [vmem:[%s6739_s27 + $0x60] sm:$0xff]   ;;  %v520_v11 = vld [vmem:[%s6739_s27 + $0x68] sm:$0xff]   ;;  %s4764_s25 = sshll.u32 %s9249_s0, 4  ;;  %s9388_s22 = scalar_lea.sflag [#allocation3], %s485_s24  ;;  %s9380_s25 = int_to_ptr.vmem [resolvable:$true] %s4764_s25 }
  0x24   : > { %5151 = vmatprep.subr.bf16.mxu1 %v512_v3  ;;  %v6757_v8 = vld [vmem:[%s6739_s27 + $0x18] sm:$0xff]   ;;  %v6762_v10 = vld [vmem:[%s6739_s27 + $0x20] sm:$0xff]   ;;  %v6767_v12 = vld [vmem:[%s6739_s27 + $0x28] sm:$0xff]   ;;  %s6533_s17 = scalar_lea.vmem %s9380_s25, 8192  ;;  %s6600_s23 = smov [#allocation2]  }
  0x25   : > { %v522_v13 = vld [vmem:[%s6739_s27 + $0x70] sm:$0xff]   ;;  %v524_v15 = vld [vmem:[%s6739_s27 + $0x78] sm:$0xff]   ;;  %v5793_v36 = vld [vmem:[%s9430_s1 + $0xa4] ss:$8 sps:$4 sm:$0xff]   ;;  %p6534_p11 = scmp.ne.s32.totalorder %s9380_s25, %s6533_s17 }
  0x26   : > { %v6772_v14 = vld [vmem:[%s6739_s27 + $0x30] sm:$0xff]   ;;  %v6776_v16 = vld [vmem:[%s6739_s27 + $0x38] sm:$0xff]   ;;  %v5795_v37 = vld [vmem:[%s9430_s1 + $0xa0] ss:$8 sps:$4 sm:$0xff]  }
  0x27   : > { %5152 = vmatpush3.bf16.msra.mxu1 %v6747_v4  ;;  %v5790_v34 = vld [vmem:[%s9430_s1 + $0x94] ss:$8 sps:$4 sm:$0xff]   ;;  %v5792_v35 = vld [vmem:[%s9430_s1 + $0x90] ss:$8 sps:$4 sm:$0xff]   ;;  %v5799_v40 = vld [vmem:[%s9430_s1 + $0xc4] ss:$8 sps:$4 sm:$0xff]   ;;  %p6535_p12 = pnand %p6534_p11, %p6721_p5 }
  0x28   : > { %5153 = vmatprep.subr.bf16.mxu1 %v514_v5  ;;  %v5796_v38 = vld [vmem:[%s9430_s1 + $0xb4] ss:$8 sps:$4 sm:$0xff]   ;;  %v5798_v39 = vld [vmem:[%s9430_s1 + $0xb0] ss:$8 sps:$4 sm:$0xff]   ;;  %v5801_v41 = vld [vmem:[%s9430_s1 + $0xc0] ss:$8 sps:$4 sm:$0xff]  }
  0x29   : > { %v5802_v42 = vld [vmem:[%s9430_s1 + $0xd4] ss:$8 sps:$4 sm:$0xff]   ;;  %v5804_v43 = vld [vmem:[%s9430_s1 + $0xd0] ss:$8 sps:$4 sm:$0xff]   ;;  %v5805_v44 = vld [vmem:[%s9430_s1 + $0xe4] ss:$8 sps:$4 sm:$0xff]   ;;  %p6536_p13 = pneg %p6535_p12 }
  0x2a   : > { %v5807_v45 = vld [vmem:[%s9430_s1 + $0xe0] ss:$8 sps:$4 sm:$0xff]   ;;  %v5808_v46 = vld [vmem:[%s9430_s1 + $0xf4] ss:$8 sps:$4 sm:$0xff]   ;;  %v5810_v47 = vld [vmem:[%s9430_s1 + $0xf0] ss:$8 sps:$4 sm:$0xff]  }
  0x2b   : > { %5154 = vmatpush3.bf16.msra.mxu1 %v6752_v6  ;;  %v5813_v48 = vld [vmem:[%s9431_s2 + $0x4] ss:$8 sps:$4 sm:$0xff]   ;;  %v5811_v49 = vld [vmem:[%s9431_s2] ss:$8 sps:$4 sm:$0xff]   ;;  %v5814_v50 = vld [vmem:[%s9431_s2 + $0x14] ss:$8 sps:$4 sm:$0xff]  }
  0x2c   : > { %5155 = vmatprep.subr.bf16.mxu1 %v516_v7  ;;  %v5816_v51 = vld [vmem:[%s9431_s2 + $0x10] ss:$8 sps:$4 sm:$0xff]   ;;  %v5817_v52 = vld [vmem:[%s9431_s2 + $0x24] ss:$8 sps:$4 sm:$0xff]   ;;  %v5819_v53 = vld [vmem:[%s9431_s2 + $0x20] ss:$8 sps:$4 sm:$0xff]  }
  0x2d   : > { %v5820_v54 = vld [vmem:[%s9431_s2 + $0x34] ss:$8 sps:$4 sm:$0xff]   ;;  %v5822_v55 = vld [vmem:[%s9431_s2 + $0x30] ss:$8 sps:$4 sm:$0xff]   ;;  %v5823_v56 = vld [vmem:[%s9431_s2 + $0x44] ss:$8 sps:$4 sm:$0xff]  }
  0x2e   : > { %v5825_v57 = vld [vmem:[%s9431_s2 + $0x40] ss:$8 sps:$4 sm:$0xff]   ;;  %v5826_v58 = vld [vmem:[%s9431_s2 + $0x54] ss:$8 sps:$4 sm:$0xff]   ;;  %v5828_v59 = vld [vmem:[%s9431_s2 + $0x50] ss:$8 sps:$4 sm:$0xff]  }
  0x2f   : > { %5156 = vmatpush3.bf16.msra.mxu1 %v6757_v8  ;;  %v5829_v60 = vld [vmem:[%s9431_s2 + $0x64] ss:$8 sps:$4 sm:$0xff]   ;;  %v5831_v61 = vld [vmem:[%s9431_s2 + $0x60] ss:$8 sps:$4 sm:$0xff]   ;;  %v5832_v62 = vld [vmem:[%s9431_s2 + $0x74] ss:$8 sps:$4 sm:$0xff]  }
  0x30   : > { %5157 = vmatprep.subr.bf16.mxu1 %v518_v9  ;;  %v5834_v63 = vld [vmem:[%s9431_s2 + $0x70] ss:$8 sps:$4 sm:$0xff]   ;;  %v5835_v0 = vld [vmem:[%s9431_s2 + $0x84] ss:$8 sps:$4 sm:$0xff]  }
  0x33   : > { %5158 = vmatpush3.bf16.msra.mxu1 %v6762_v10 }
  0x34   : > { %5159 = vmatprep.subr.bf16.mxu1 %v520_v11 }
  0x37   : > { %5160 = vmatpush3.bf16.msra.mxu1 %v6767_v12 }
  0x38   : > { %5161 = vmatprep.subr.bf16.mxu1 %v522_v13 }
  0x3b   : > { %5162 = vmatpush3.bf16.msra.mxu1 %v6772_v14 }
  0x3c   : > { %5163 = vmatprep.subr.bf16.mxu1 %v524_v15 }
  0x3f   : > { %5164 = vmatpush3.bf16.msra.mxu1 %v6776_v16 }
  0x40   : > { %5261 = vmatprep.subr.bf16.mxu1 %v510_v1  ;;  %v5837_v1 = vld [vmem:[%s9431_s2 + $0x80] ss:$8 sps:$4 sm:$0xff]  }
  0x42   : > { %879 = vmatmul.mubr.bf16.vlgmr.msra.gmra.mrb[0].mxu1 %v5763_v17 }
  0x43   : > { %5262 = vmatpush3.bf16.msra.mxu1 %v6743_v2  ;;  %886 = vmatprep.mubr.bf16.mxu1 %v5766_v18  ;;  %v5844_v18 = vld [vmem:[%s9431_s2 + $0xb4] ss:$8 sps:$4 sm:$0xff]  }
  0x44   : > { %5263 = vmatprep.subr.bf16.mxu1 %v512_v3  ;;  %v5838_v3 = vld [vmem:[%s9431_s2 + $0x94] ss:$8 sps:$4 sm:$0xff]  }
  0x47   : > { %5264 = vmatpush3.bf16.msra.mxu1 %v6747_v4 }
  0x48   : > { %5265 = vmatprep.subr.bf16.mxu1 %v514_v5  ;;  %v5840_v5 = vld [vmem:[%s9431_s2 + $0x90] ss:$8 sps:$4 sm:$0xff]  }
  0x4a   : > { %887 = vmatmul.mubr.bf16.gmra.mrb[4].mxu1 %v5768_v19  ;;  %v6960_v19 = vld [vmem:[%s9432_s3] sm:$0xff] }
  0x4b   : > { %894 = vmatprep.mubr.bf16.mxu1 %v5769_v20  ;;  %5266 = vmatpush3.bf16.msra.mxu1 %v6752_v6 }
  0x4c   : > { %5267 = vmatprep.subr.bf16.mxu1 %v516_v7  ;;  %v1362_v7 = vlaneseq }
  0x4f   : > { %5268 = vmatpush3.bf16.msra.mxu1 %v6757_v8 }
  0x50   : > { %5269 = vmatprep.subr.bf16.mxu1 %v518_v9  ;;  %v5841_v9 = vld [vmem:[%s9431_s2 + $0xa4] ss:$8 sps:$4 sm:$0xff]  }
  0x52   : > { %895 = vmatmul.mubr.bf16.gmra.mrb[8].mxu1 %v5771_v21 }
  0x53   : > { %902 = vmatprep.mubr.bf16.mxu1 %v5772_v22  ;;  %5270 = vmatpush3.bf16.msra.mxu1 %v6762_v10 }
  0x54   : > { %5271 = vmatprep.subr.bf16.mxu1 %v520_v11  ;;  %v6945_v11 = vshrl.u32 %v1362_v7, 7 }
  0x56   : > { %9496 = vst [vmem:[#allocation9_spill] sm:$0xff] %v6945_v11  ;;  %v1562_v17 = vsub.s32 4, %v6945_v11  ;;  %v6963_v20 = vsub.s32 0, %v6945_v11  ;;  %v1526_v21 = vsub.s32 3, %v6945_v11 }
  0x57   : > { %5272 = vmatpush3.bf16.msra.mxu1 %v6767_v12 }
  0x58   : > { %5273 = vmatprep.subr.bf16.mxu1 %v522_v13  ;;  %v5843_v13 = vld [vmem:[%s9431_s2 + $0xa0] ss:$8 sps:$4 sm:$0xff]   ;;  %9498 = vst [vmem:[#allocation11_spill] sm:$0xff] %v6963_v20 }
  0x5a   : > { %903 = vmatmul.mubr.bf16.gmra.mrb[12].mxu1 %v5774_v23  ;;  %v6971_v23 = vrot.slane %v6960_v19, %v1562_v17 }
  0x5b   : > { %910 = vmatprep.mubr.bf16.mxu1 %v5775_v24  ;;  %5274 = vmatpush3.bf16.msra.mxu1 %v6772_v14  ;;  %v526_v24 = vunpack.c.l.bf16 %v6743_v2 }
  0x5c   : > { %5275 = vmatprep.subr.bf16.mxu1 %v524_v15  ;;  %v6951_v15 = vsub.s32 1, %v6945_v11 }
  0x5e   : > { %9497 = vst [vmem:[#allocation10_spill] sm:$0xff] %v6951_v15  ;;  %v6968_v22 = vrot.slane %v6960_v19, %v6951_v15  ;;  %v541_v15 = vunpack.c.h.bf16 %v6776_v16 }
  0x5f   : > { %5276 = vmatpush3.bf16.msra.mxu1 %v6776_v16 }
  0x62   : > { %911 = vmatmul.mubr.bf16.gmra.mrb[16].mxu1 %v5777_v25  ;;  %v527_v25 = vunpack.c.h.bf16 %v6743_v2 }
  0x63   : > { %918 = vmatprep.mubr.bf16.mxu1 %v5778_v26 }
  0x6a   : > { %919 = vmatmul.mubr.bf16.gmra.mrb[20].mxu1 %v5780_v27  ;;  %v6977_v27 = vrot.slane %v6960_v19, %v6963_v20 }
  0x6b   : > { %926 = vmatprep.mubr.bf16.mxu1 %v5781_v28  ;;  %v6980_v28 = vrot.slane %v6960_v19, %v1526_v21 }
  0x72   : > { %927 = vmatmul.mubr.bf16.gmra.mrb[24].mxu1 %v5783_v29  ;;  %v1732_v29 = vsub.s32 7, %v6945_v11 }
  0x73   : > { %934 = vmatprep.mubr.bf16.mxu1 %v5784_v30 }
  0x7a   : > { %935 = vmatmul.mubr.bf16.gmra.mrb[28].mxu1 %v5786_v31  ;;  %v5846_v31 = vld [vmem:[%s9431_s2 + $0xb0] ss:$8 sps:$4 sm:$0xff]  }
  0x7b   : > { %942 = vmatprep.mubr.bf16.mxu1 %v5787_v32  ;;  %v1400_v32 = vmul.f32 %v6968_v22, %v526_v24 }
  0x82   : > { %943 = vmatmul.mubr.bf16.gmra.mrb[32].mxu1 %v5789_v33  ;;  %v1564_v33 = vmul.f32 %v6971_v23, %v526_v24  ;;  %v531_v24 = vunpack.c.h.bf16 %v6752_v6 }
  0x83   : > { %950 = vmatprep.mubr.bf16.mxu1 %v5790_v34 }
  0x8a   : > { %951 = vmatmul.mubr.bf16.gmra.mrb[36].mxu1 %v5792_v35  ;;  %v5847_v35 = vld [vmem:[%s9431_s2 + $0xc4] ss:$8 sps:$4 sm:$0xff]  }
  0x8b   : > { %958 = vmatprep.mubr.bf16.mxu1 %v5793_v36  ;;  %v1401_v36 = vmul.f32 %v6968_v22, %v527_v25 }
  0x92   : > { %959 = vmatmul.mubr.bf16.gmra.mrb[40].mxu1 %v5795_v37  ;;  %v1565_v37 = vmul.f32 %v6971_v23, %v527_v25 }
  0x93   : > { %966 = vmatprep.mubr.bf16.mxu1 %v5796_v38 }
  0x9a   : > { %967 = vmatmul.mubr.bf16.gmra.mrb[44].mxu1 %v5798_v39 }
  0x9b   : > { %974 = vmatprep.mubr.bf16.mxu1 %v5799_v40 }
  0xa2   : > { %975 = vmatmul.mubr.bf16.gmra.mrb[48].mxu1 %v5801_v41 }
  0xa3   : > { %982 = vmatprep.mubr.bf16.mxu1 %v5802_v42  ;;  %v1698_v42 = vsub.s32 6, %v6945_v11 }
  0xaa   : > { %983 = vmatmul.mubr.bf16.gmra.mrb[52].mxu1 %v5804_v43  ;;  %v6997_v43 = vrot.slane %v6960_v19, %v1732_v29 }
  0xab   : > { %990 = vmatprep.mubr.bf16.mxu1 %v5805_v44  ;;  %v528_v44 = vunpack.c.l.bf16 %v6747_v4 }
  0xb2   : > { %991 = vmatmul.mubr.bf16.gmra.mrb[56].mxu1 %v5807_v45 }
  0xb3   : > { %998 = vmatprep.mubr.bf16.mxu1 %v5808_v46 }
  0xba   : > { %999 = vmatmul.mubr.bf16.gmra.mrb[60].mxu1 %v5810_v47 }
  0xbb   : > { %1231 = vmatprep.mubr.bf16.mxu1 %v5813_v48 }
  0xc2   : > { %1232 = vmatmul.mubr.bf16.vlgmr.msra.gmra.mrb[64].mxu1 %v5811_v49  ;;  %v529_v49 = vunpack.c.h.bf16 %v6747_v4  ;;  %v1734_v4 = vmul.f32 %v6997_v43, %v528_v44 }
  0xc3   : > { %1239 = vmatprep.mubr.bf16.mxu1 %v5814_v50 }
  0xc4   : > { %v1567_v7 = vmul.f32 %v6971_v23, %v529_v49 }
  0xca   : > { %1240 = vmatmul.mubr.bf16.gmra.mrb[68].mxu1 %v5816_v51 }
  0xcb   : > { %1247 = vmatprep.mubr.bf16.mxu1 %v5817_v52 }
  0xd2   : > { %1248 = vmatmul.mubr.bf16.gmra.mrb[72].mxu1 %v5819_v53  ;;  %v7012_v53 = vrot.slane %v6960_v19, %v1698_v42 }
  0xd3   : > { %1255 = vmatprep.mubr.bf16.mxu1 %v5820_v54 }
  0xda   : > { %1256 = vmatmul.mubr.bf16.gmra.mrb[76].mxu1 %v5822_v55  ;;  %v5849_v55 = vld [vmem:[%s9431_s2 + $0xc0] ss:$8 sps:$4 sm:$0xff]  }
  0xdb   : > { %1263 = vmatprep.mubr.bf16.mxu1 %v5823_v56 }
  0xe2   : > { %1264 = vmatmul.mubr.bf16.gmra.mrb[80].mxu1 %v5825_v57  ;;  %v1402_v57 = vmul.f32 %v6968_v22, %v528_v44 }
  0xe3   : > { %1271 = vmatprep.mubr.bf16.mxu1 %v5826_v58  ;;  %v1566_v58 = vmul.f32 %v6971_v23, %v528_v44 }
  0xea   : > { %1272 = vmatmul.mubr.bf16.gmra.mrb[84].mxu1 %v5828_v59 }
  0xeb   : > { %1279 = vmatprep.mubr.bf16.mxu1 %v5829_v60  ;;  %v5850_v60 = vld [vmem:[%s9431_s2 + $0xd4] ss:$8 sps:$4 sm:$0xff]  }
  0xf2   : > { %1280 = vmatmul.mubr.bf16.gmra.mrb[88].mxu1 %v5831_v61 }
  0xf3   : > { %1287 = vmatprep.mubr.bf16.mxu1 %v5832_v62  ;;  %v1403_v62 = vmul.f32 %v6968_v22, %v529_v49 }
  0xfa   : > { %1288 = vmatmul.mubr.bf16.gmra.mrb[92].mxu1 %v5834_v63 }
  0xfb   : > { %1295 = vmatprep.mubr.bf16.mxu1 %v5835_v0 }
 0x102   : > { %1296 = vmatmul.mubr.bf16.gmra.mrb[96].mxu1 %v5837_v1 }
 0x103   : > { %1303 = vmatprep.mubr.bf16.mxu1 %v5838_v3 }
 0x10a   : > { %1304 = vmatmul.mubr.bf16.gmra.mrb[100].mxu1 %v5840_v5  ;;  %v530_v5 = vunpack.c.l.bf16 %v6752_v6 }
 0x10b   : > { %1311 = vmatprep.mubr.bf16.mxu1 %v5841_v9  ;;  %v1735_v9 = vmul.f32 %v6997_v43, %v529_v49  ;;  %v1569_v49 = vmul.f32 %v6971_v23, %v531_v24 }
 0x10c   : > { %v1568_v6 = vmul.f32 %v6971_v23, %v530_v5 }
 0x112   : > { %1312 = vmatmul.mubr.bf16.gmra.mrb[104].mxu1 %v5843_v13 }
 0x113   : > { %1319 = vmatprep.mubr.bf16.mxu1 %v5844_v18 }
 0x115   : > { %v5165_v26 = vpop.f32.mrb[0].mxu1 }
 0x116   : > { %v5166_v30 = vpop.f32.mrb[1].mxu1 }
 0x117   : > { %v5167_v2 = vadd.f32 %v5166_v30, %v5165_v26  ;;  %v5168_v34 = vpop.f32.mrb[2].mxu1 }
 0x118   : > { %v5169_v38 = vpop.f32.mrb[3].mxu1 }
 0x119   : > { %v1366_v39 = vmul.f32 %v5167_v2, %v6977_v27  ;;  %v1528_v40 = vmul.f32 %v5167_v2, %v6980_v28  ;;  %v5170_v41 = vadd.f32 %v5169_v38, %v5168_v34  ;;  %v5852_v2 = vld [vmem:[%s9431_s2 + $0xd0] ss:$8 sps:$4 sm:$0xff]   ;;  %v5853_v38 = vld [vmem:[%s9431_s2 + $0xe4] ss:$8 sps:$4 sm:$0xff]  }
 0x11a   : > { %1320 = vmatmul.mubr.bf16.gmra.mrb[108].mxu1 %v5846_v31 }
 0x11b   : > { %v7000_v45 = vadd.f32 %v1400_v32, %v1366_v39  ;;  %v7002_v46 = vadd.f32 %v1564_v33, %v1528_v40  ;;  %v1367_v47 = vmul.f32 %v5170_v41, %v6977_v27  ;;  %v1529_v48 = vmul.f32 %v5170_v41, %v6980_v28  ;;  %1327 = vmatprep.mubr.bf16.mxu1 %v5847_v35 }
 0x11c   : > { %v1404_v35 = vmul.f32 %v6968_v22, %v530_v5  ;;  %v1405_v40 = vmul.f32 %v6968_v22, %v531_v24 }
 0x11d   : > { %v7007_v50 = vadd.f32 %v1401_v36, %v1367_v47  ;;  %v7009_v51 = vadd.f32 %v1565_v37, %v1529_v48  ;;  %v5171_v52 = vpop.f32.mrb[4].mxu1  ;;  %v1736_v36 = vmul.f32 %v6997_v43, %v530_v5  ;;  %v532_v48 = vunpack.c.l.bf16 %v6757_v8 }
 0x11e   : > { %v5172_v54 = vpop.f32.mrb[5].mxu1 }
 0x11f   : > { %v5173_v56 = vadd.f32 %v5172_v54, %v5171_v52  ;;  %v5174_v59 = vpop.f32.mrb[6].mxu1  ;;  %v1737_v52 = vmul.f32 %v6997_v43, %v531_v24  ;;  %v1406_v5 = vmul.f32 %v6968_v22, %v532_v48 }
 0x120   : > { %v5175_v61 = vpop.f32.mrb[7].mxu1 }
 0x121   : > { %v1368_v63 = vmul.f32 %v5173_v56, %v6977_v27  ;;  %v1530_v0 = vmul.f32 %v5173_v56, %v6980_v28  ;;  %v1700_v1 = vmul.f32 %v5173_v56, %v7012_v53  ;;  %v5176_v3 = vadd.f32 %v5175_v61, %v5174_v59 }
 0x122   : > { %1328 = vmatmul.mubr.bf16.gmra.mrb[112].mxu1 %v5849_v55 }
 0x123   : > { %v7030_v13 = vadd.f32 %v1402_v57, %v1368_v63  ;;  %v7032_v17 = vadd.f32 %v1566_v58, %v1530_v0  ;;  %v7034_v18 = vadd.f32 %v1734_v4, %v1700_v1  ;;  %v1369_v21 = vmul.f32 %v5176_v3, %v6977_v27  ;;  %1335 = vmatprep.mubr.bf16.mxu1 %v5850_v60  ;;  %v5855_v1 = vld [vmem:[%s9431_s2 + $0xe0] ss:$8 sps:$4 sm:$0xff]  }
 0x124   : > { %v1531_v25 = vmul.f32 %v5176_v3, %v6980_v28  ;;  %v1701_v26 = vmul.f32 %v5176_v3, %v7012_v53  ;;  %v533_v58 = vunpack.c.h.bf16 %v6757_v8  ;;  %v1570_v8 = vmul.f32 %v6971_v23, %v532_v48 }
 0x125   : > { %v7040_v29 = vadd.f32 %v1403_v62, %v1369_v21  ;;  %v5177_v30 = vpop.f32.mrb[8].mxu1  ;;  %v5856_v21 = vld [vmem:[%s9431_s2 + $0xf4] ss:$8 sps:$4 sm:$0xff]  }
 0x126   : > { %v7042_v31 = vadd.f32 %v1567_v7, %v1531_v25  ;;  %v7044_v32 = vadd.f32 %v1735_v9, %v1701_v26  ;;  %v5178_v33 = vpop.f32.mrb[9].mxu1  ;;  %v1738_v7 = vmul.f32 %v6997_v43, %v532_v48  ;;  %v1407_v25 = vmul.f32 %v6968_v22, %v533_v58 }
 0x127   : > { %v5179_v34 = vadd.f32 %v5178_v33, %v5177_v30  ;;  %v5180_v37 = vpop.f32.mrb[10].mxu1 }
 0x128   : > { %v5181_v39 = vpop.f32.mrb[11].mxu1 }
 0x129   : > { %v1370_v41 = vmul.f32 %v5179_v34, %v6977_v27  ;;  %v1532_v42 = vmul.f32 %v5179_v34, %v6980_v28  ;;  %v1702_v44 = vmul.f32 %v5179_v34, %v7012_v53  ;;  %v5182_v47 = vadd.f32 %v5181_v39, %v5180_v37 }
 0x12a   : > { %1336 = vmatmul.mubr.bf16.gmra.mrb[116].mxu1 %v5852_v2  ;;  %v534_v34 = vunpack.c.l.bf16 %v6762_v10 }
 0x12b   : > { %v7062_v54 = vadd.f32 %v1404_v35, %v1370_v41  ;;  %v7064_v55 = vadd.f32 %v1568_v6, %v1532_v42  ;;  %v7066_v56 = vadd.f32 %v1736_v36, %v1702_v44  ;;  %v1371_v57 = vmul.f32 %v5182_v47, %v6977_v27  ;;  %1343 = vmatprep.mubr.bf16.mxu1 %v5853_v38 }
 0x12c   : > { %v1533_v4 = vmul.f32 %v5182_v47, %v6980_v28  ;;  %v1703_v59 = vmul.f32 %v5182_v47, %v7012_v53  ;;  %v1571_v35 = vmul.f32 %v6971_v23, %v533_v58  ;;  %v1739_v6 = vmul.f32 %v6997_v43, %v533_v58 }
 0x12d   : > { %v7072_v60 = vadd.f32 %v1405_v40, %v1371_v57  ;;  %v5183_v61 = vpop.f32.mrb[12].mxu1  ;;  %v535_v40 = vunpack.c.h.bf16 %v6762_v10  ;;  %v5858_v57 = vld [vmem:[%s9431_s2 + $0xf0] ss:$8 sps:$4 sm:$0xff]   ;;  %v1572_v10 = vmul.f32 %v6971_v23, %v534_v34 }
 0x12e   : > { %v7074_v62 = vadd.f32 %v1569_v49, %v1533_v4  ;;  %v7076_v63 = vadd.f32 %v1737_v52, %v1703_v59  ;;  %v5184_v0 = vpop.f32.mrb[13].mxu1  ;;  %v1408_v4 = vmul.f32 %v6968_v22, %v534_v34  ;;  %v1740_v59 = vmul.f32 %v6997_v43, %v534_v34 }
 0x12f   : > { %v5185_v3 = vadd.f32 %v5184_v0, %v5183_v61  ;;  %v5186_v9 = vpop.f32.mrb[14].mxu1 }
 0x130   : > { %v5187_v24 = vpop.f32.mrb[15].mxu1 }
 0x131   : > { %v1372_v26 = vmul.f32 %v5185_v3, %v6977_v27  ;;  %v1534_v30 = vmul.f32 %v5185_v3, %v6980_v28  ;;  %v1704_v33 = vmul.f32 %v5185_v3, %v7012_v53  ;;  %v5188_v2 = vadd.f32 %v5187_v24, %v5186_v9 }
 0x132   : > { %1344 = vmatmul.mubr.bf16.gmra.mrb[120].mxu1 %v5855_v1  ;;  %v1409_v1 = vmul.f32 %v6968_v22, %v535_v40  ;;  %v536_v9 = vunpack.c.l.bf16 %v6767_v12  ;;  %v1741_v24 = vmul.f32 %v6997_v43, %v535_v40 }
 0x133   : > { %v7094_v36 = vadd.f32 %v1406_v5, %v1372_v26  ;;  %v7096_v37 = vadd.f32 %v1570_v8, %v1534_v30  ;;  %v7098_v38 = vadd.f32 %v1738_v7, %v1704_v33  ;;  %v1373_v39 = vmul.f32 %v5188_v2, %v6977_v27  ;;  %1351 = vmatprep.mubr.bf16.mxu1 %v5856_v21 }
 0x134   : > { %v1535_v41 = vmul.f32 %v5188_v2, %v6980_v28  ;;  %v1705_v42 = vmul.f32 %v5188_v2, %v7012_v53  ;;  %v1573_v21 = vmul.f32 %v6971_v23, %v535_v40  ;;  %v537_v2 = vunpack.c.h.bf16 %v6767_v12 }
 0x135   : > { %v7104_v44 = vadd.f32 %v1407_v25, %v1373_v39  ;;  %v5189_v47 = vpop.f32.mrb[16].mxu1 }
 0x136   : > { %v7106_v48 = vadd.f32 %v1571_v35, %v1535_v41  ;;  %v7108_v49 = vadd.f32 %v1739_v6, %v1705_v42  ;;  %v5190_v52 = vpop.f32.mrb[17].mxu1 }
 0x137   : > { %v5191_v58 = vadd.f32 %v5190_v52, %v5189_v47  ;;  %v5192_v61 = vpop.f32.mrb[18].mxu1  ;;  %v1410_v52 = vmul.f32 %v6968_v22, %v536_v9 }
 0x138   : > { %v5193_v0 = vpop.f32.mrb[19].mxu1 }
 0x139   : > { %v1374_v3 = vmul.f32 %v5191_v58, %v6977_v27  ;;  %v1536_v5 = vmul.f32 %v5191_v58, %v6980_v28  ;;  %v1706_v8 = vmul.f32 %v5191_v58, %v7012_v53  ;;  %v5194_v7 = vadd.f32 %v5193_v0, %v5192_v61 }
 0x13a   : > { %1352 = vmatmul.mubr.bf16.gmra.mrb[124].mxu1 %v5858_v57  ;;  %v1574_v57 = vmul.f32 %v6971_v23, %v536_v9  ;;  %v1742_v58 = vmul.f32 %v6997_v43, %v536_v9 }
 0x13b   : > { %v7123_v25 = vadd.f32 %v1408_v4, %v1374_v3  ;;  %v7125_v26 = vadd.f32 %v1572_v10, %v1536_v5  ;;  %v7127_v30 = vadd.f32 %v1740_v59, %v1706_v8  ;;  %v1375_v33 = vmul.f32 %v5194_v7, %v6977_v27 }
 0x13c   : > { %v1537_v34 = vmul.f32 %v5194_v7, %v6980_v28  ;;  %v1707_v35 = vmul.f32 %v5194_v7, %v7012_v53  ;;  %v1411_v10 = vmul.f32 %v6968_v22, %v537_v2  ;;  %v538_v3 = vunpack.c.l.bf16 %v6772_v14 }
 0x13d   : > { %v7133_v6 = vadd.f32 %v1409_v1, %v1375_v33  ;;  %v5195_v39 = vpop.f32.mrb[20].mxu1  ;;  %v1575_v5 = vmul.f32 %v6971_v23, %v537_v2  ;;  %v1743_v8 = vmul.f32 %v6997_v43, %v537_v2  ;;  %v539_v33 = vunpack.c.h.bf16 %v6772_v14 }
 0x13e   : > { %v7135_v41 = vadd.f32 %v1573_v21, %v1537_v34  ;;  %v7137_v40 = vadd.f32 %v1741_v24, %v1707_v35  ;;  %v5196_v42 = vpop.f32.mrb[21].mxu1 }
 0x13f   : > { %v5197_v47 = vadd.f32 %v5196_v42, %v5195_v39  ;;  %v5198_v12 = vpop.f32.mrb[22].mxu1 }
 0x140   : > { %v5199_v4 = vpop.f32.mrb[23].mxu1 }
 0x141   : > { %v1376_v59 = vmul.f32 %v5197_v47, %v6977_v27  ;;  %v1538_v61 = vmul.f32 %v5197_v47, %v6980_v28  ;;  %v1708_v0 = vmul.f32 %v5197_v47, %v7012_v53  ;;  %v5200_v1 = vadd.f32 %v5199_v4, %v5198_v12 }
 0x142   : > { %v1576_v12 = vmul.f32 %v6971_v23, %v538_v3  ;;  %v1744_v4 = vmul.f32 %v6997_v43, %v538_v3 }
 0x143   : > { %v7149_v7 = vadd.f32 %v1410_v52, %v1376_v59  ;;  %v7151_v9 = vadd.f32 %v1574_v57, %v1538_v61  ;;  %v7153_v21 = vadd.f32 %v1742_v58, %v1708_v0  ;;  %v1377_v24 = vmul.f32 %v5200_v1, %v6977_v27 }
 0x144   : > { %v1539_v34 = vmul.f32 %v5200_v1, %v6980_v28  ;;  %v1709_v35 = vmul.f32 %v5200_v1, %v7012_v53  ;;  %v1412_v58 = vmul.f32 %v6968_v22, %v538_v3  ;;  %v1413_v61 = vmul.f32 %v6968_v22, %v539_v33 }
 0x145   : > { %v7159_v39 = vadd.f32 %v1411_v10, %v1377_v24  ;;  %v5201_v42 = vpop.f32.mrb[24].mxu1  ;;  %v1577_v24 = vmul.f32 %v6971_v23, %v539_v33 }
 0x146   : > { %v7161_v47 = vadd.f32 %v1575_v5, %v1539_v34  ;;  %v7163_v2 = vadd.f32 %v1743_v8, %v1709_v35  ;;  %v5202_v52 = vpop.f32.mrb[25].mxu1  ;;  %v540_v8 = vunpack.c.l.bf16 %v6776_v16  ;;  %v1745_v34 = vmul.f32 %v6997_v43, %v539_v33 }
 0x147   : > { %v5203_v57 = vadd.f32 %v5202_v52, %v5201_v42  ;;  %v5204_v14 = vpop.f32.mrb[26].mxu1 }
 0x148   : > { %9499 = vst [vmem:[#allocation12_spill] sm:$0xff] %v7163_v2  ;;  %v5205_v59 = vpop.f32.mrb[27].mxu1  ;;  %v1746_v16 = vmul.f32 %v6997_v43, %v540_v8 }
 0x149   : > { %v1378_v10 = vmul.f32 %v5203_v57, %v6977_v27  ;;  %v1540_v0 = vmul.f32 %v5203_v57, %v6980_v28  ;;  %v1710_v1 = vmul.f32 %v5203_v57, %v7012_v53  ;;  %v5206_v5 = vadd.f32 %v5205_v59, %v5204_v14 }
 0x14b   : > { %v7175_v35 = vadd.f32 %v1412_v58, %v1378_v10  ;;  %v7177_v3 = vadd.f32 %v1576_v12, %v1540_v0  ;;  %v7179_v42 = vadd.f32 %v1744_v4, %v1710_v1  ;;  %v1379_v52 = vmul.f32 %v5206_v5, %v6977_v27 }
 0x14c   : > { %v1541_v20 = vmul.f32 %v5206_v5, %v6980_v28  ;;  %v1711_v57 = vmul.f32 %v5206_v5, %v7012_v53  ;;  %v1414_v4 = vmul.f32 %v6968_v22, %v540_v8  ;;  %v1578_v10 = vmul.f32 %v6971_v23, %v540_v8 }
 0x14d   : > { %9500 = vst [vmem:[#allocation13_spill] sm:$0xff] %v7175_v35  ;;  %9501 = vst [vmem:[#allocation14_spill] sm:$0xff] %v7177_v3  ;;  %v7185_v14 = vadd.f32 %v1413_v61, %v1379_v52  ;;  %v5207_v59 = vpop.f32.mrb[28].mxu1  ;;  %v1415_v5 = vmul.f32 %v6968_v22, %v541_v15 }
 0x14e   : > { %9502 = vst [vmem:[#allocation15_spill] sm:$0xff] %v7179_v42  ;;  %v7187_v2 = vadd.f32 %v1577_v24, %v1541_v20  ;;  %v7189_v33 = vadd.f32 %v1745_v34, %v1711_v57  ;;  %v5208_v58 = vpop.f32.mrb[29].mxu1  ;;  %v6523_v34 = vld [vmem:[%s6739_s27 + $0x40] sm:$0xff]  }
 0x14f   : > { %9503 = vst [vmem:[#allocation16_spill] sm:$0xff] %v7185_v14  ;;  %v5209_v12 = vadd.f32 %v5208_v58, %v5207_v59  ;;  %v5210_v0 = vpop.f32.mrb[30].mxu1  ;;  %v542_v57 = vunpack.c.l.bf16 %v6523_v34  ;;  %v1579_v59 = vmul.f32 %v6971_v23, %v541_v15  ;;  %v1747_v58 = vmul.f32 %v6997_v43, %v541_v15 }
 0x150   : > { %9504 = vst [vmem:[#allocation17_spill] sm:$0xff] %v7187_v2  ;;  %9505 = vst [vmem:[#allocation18_spill] sm:$0xff] %v7189_v33  ;;  %v5211_v1 = vpop.f32.mrb[31].mxu1  ;;  %v543_v42 = vunpack.c.h.bf16 %v6523_v34 }
 0x151   : > { %v1380_v61 = vmul.f32 %v5209_v12, %v6977_v27  ;;  %v1542_v52 = vmul.f32 %v5209_v12, %v6980_v28  ;;  %v1712_v20 = vmul.f32 %v5209_v12, %v7012_v53  ;;  %v5212_v24 = vadd.f32 %v5211_v1, %v5210_v0 }
 0x152   : > { %v1417_v34 = vmul.f32 %v6968_v22, %v543_v42 }
 0x153   : > { %v7201_v33 = vadd.f32 %v1414_v4, %v1380_v61  ;;  %v7203_v8 = vadd.f32 %v1578_v10, %v1542_v52  ;;  %v7205_v2 = vadd.f32 %v1746_v16, %v1712_v20  ;;  %v1381_v14 = vmul.f32 %v5212_v24, %v6977_v27 }
 0x154   : > { %v1543_v3 = vmul.f32 %v5212_v24, %v6980_v28  ;;  %v1713_v12 = vmul.f32 %v5212_v24, %v7012_v53  ;;  %v1416_v10 = vmul.f32 %v6968_v22, %v542_v57  ;;  %v1580_v16 = vmul.f32 %v6971_v23, %v542_v57 }
 0x155   : > { %9506 = vst [vmem:[#allocation19_spill] sm:$0xff] %v7201_v33  ;;  %9507 = vst [vmem:[#allocation20_spill] sm:$0xff] %v7203_v8  ;;  %v7210_v0 = vadd.f32 %v1415_v5, %v1381_v14  ;;  %v5213_v1 = vpop.f32.mrb[32].mxu1  ;;  %v1748_v61 = vmul.f32 %v6997_v43, %v542_v57 }
 0x156   : > { %9508 = vst [vmem:[#allocation21_spill] sm:$0xff] %v7205_v2  ;;  %v7212_v35 = vadd.f32 %v1579_v59, %v1543_v3  ;;  %v7214_v15 = vadd.f32 %v1747_v58, %v1713_v12  ;;  %v5214_v4 = vpop.f32.mrb[33].mxu1  ;;  %v1581_v58 = vmul.f32 %v6971_v23, %v543_v42  ;;  %v1749_v12 = vmul.f32 %v6997_v43, %v543_v42 }
 0x157   : > { %9509 = vst [vmem:[#allocation22_spill] sm:$0xff] %v7210_v0  ;;  %v5215_v52 = vadd.f32 %v5214_v4, %v5213_v1  ;;  %v5216_v20 = vpop.f32.mrb[34].mxu1 }
 0x158   : > { %9510 = vst [vmem:[#allocation23_spill] sm:$0xff] %v7212_v35  ;;  %9511 = vst [vmem:[#allocation24_spill] sm:$0xff] %v7214_v15  ;;  %v5217_v24 = vpop.f32.mrb[35].mxu1  ;;  %v6524_v15 = vld [vmem:[%s6739_s27 + $0x48] sm:$0xff]  }
 0x159   : > { %v1382_v14 = vmul.f32 %v5215_v52, %v6977_v27  ;;  %v1544_v3 = vmul.f32 %v5215_v52, %v6980_v28  ;;  %v1714_v5 = vmul.f32 %v5215_v52, %v7012_v53  ;;  %v5218_v59 = vadd.f32 %v5217_v24, %v5216_v20 }
 0x15a   : > { %v544_v35 = vunpack.c.l.bf16 %v6524_v15  ;;  %v545_v2 = vunpack.c.h.bf16 %v6524_v15 }
 0x15b   : > { %v7226_v0 = vadd.f32 %v1416_v10, %v1382_v14  ;;  %v7228_v57 = vadd.f32 %v1580_v16, %v1544_v3  ;;  %v7230_v1 = vadd.f32 %v1748_v61, %v1714_v5  ;;  %v1383_v4 = vmul.f32 %v5218_v59, %v6977_v27 }
 0x15c   : > { %v1545_v8 = vmul.f32 %v5218_v59, %v6980_v28  ;;  %v1715_v52 = vmul.f32 %v5218_v59, %v7012_v53  ;;  %v1418_v61 = vmul.f32 %v6968_v22, %v544_v35  ;;  %v1582_v14 = vmul.f32 %v6971_v23, %v544_v35 }
 0x15d   : > { %9512 = vst [vmem:[#allocation25_spill] sm:$0xff] %v7226_v0  ;;  %9513 = vst [vmem:[#allocation26_spill] sm:$0xff] %v7228_v57  ;;  %v7235_v20 = vadd.f32 %v1417_v34, %v1383_v4  ;;  %v5219_v24 = vpop.f32.mrb[36].mxu1  ;;  %v1750_v15 = vmul.f32 %v6997_v43, %v544_v35  ;;  %v1419_v59 = vmul.f32 %v6968_v22, %v545_v2 }
 0x15e   : > { %9514 = vst [vmem:[#allocation27_spill] sm:$0xff] %v7230_v1  ;;  %v7237_v42 = vadd.f32 %v1581_v58, %v1545_v8  ;;  %v7239_v33 = vadd.f32 %v1749_v12, %v1715_v52  ;;  %v5220_v10 = vpop.f32.mrb[37].mxu1  ;;  %v6525_v12 = vld [vmem:[%s6739_s27 + $0x50] sm:$0xff]  }
 0x15f   : > { %9515 = vst [vmem:[#allocation28_spill] sm:$0xff] %v7235_v20  ;;  %v5221_v16 = vadd.f32 %v5220_v10, %v5219_v24  ;;  %v5222_v3 = vpop.f32.mrb[38].mxu1  ;;  %v546_v52 = vunpack.c.l.bf16 %v6525_v12  ;;  %v1583_v24 = vmul.f32 %v6971_v23, %v545_v2  ;;  %v1751_v10 = vmul.f32 %v6997_v43, %v545_v2 }
 0x160   : > { %9516 = vst [vmem:[#allocation29_spill] sm:$0xff] %v7237_v42  ;;  %9517 = vst [vmem:[#allocation30_spill] sm:$0xff] %v7239_v33  ;;  %v5223_v5 = vpop.f32.mrb[39].mxu1  ;;  %v547_v1 = vunpack.c.h.bf16 %v6525_v12 }
 0x161   : > { %v1384_v34 = vmul.f32 %v5221_v16, %v6977_v27  ;;  %v1546_v4 = vmul.f32 %v5221_v16, %v6980_v28  ;;  %v1716_v8 = vmul.f32 %v5221_v16, %v7012_v53  ;;  %v5224_v58 = vadd.f32 %v5223_v5, %v5222_v3 }
 0x163   : > { %v7251_v33 = vadd.f32 %v1418_v61, %v1384_v34  ;;  %v7253_v35 = vadd.f32 %v1582_v14, %v1546_v4  ;;  %v7255_v42 = vadd.f32 %v1750_v15, %v1716_v8  ;;  %v1385_v20 = vmul.f32 %v5224_v58, %v6977_v27 }
 0x164   : > { %v1547_v57 = vmul.f32 %v5224_v58, %v6980_v28  ;;  %v1717_v16 = vmul.f32 %v5224_v58, %v7012_v53  ;;  %v1420_v15 = vmul.f32 %v6968_v22, %v546_v52  ;;  %v1584_v34 = vmul.f32 %v6971_v23, %v546_v52 }
 0x165   : > { %9518 = vst [vmem:[#allocation31_spill] sm:$0xff] %v7251_v33  ;;  %9519 = vst [vmem:[#allocation32_spill] sm:$0xff] %v7253_v35  ;;  %v7260_v3 = vadd.f32 %v1419_v59, %v1385_v20  ;;  %v5225_v5 = vpop.f32.mrb[40].mxu1  ;;  %v1752_v4 = vmul.f32 %v6997_v43, %v546_v52  ;;  %v1421_v58 = vmul.f32 %v6968_v22, %v547_v1 }
 0x166   : > { %9520 = vst [vmem:[#allocation33_spill] sm:$0xff] %v7255_v42  ;;  %v7262_v0 = vadd.f32 %v1583_v24, %v1547_v57  ;;  %v7264_v2 = vadd.f32 %v1751_v10, %v1717_v16  ;;  %v5226_v61 = vpop.f32.mrb[41].mxu1  ;;  %v6526_v10 = vld [vmem:[%s6739_s27 + $0x58] sm:$0xff]  }
 0x167   : > { %9521 = vst [vmem:[#allocation34_spill] sm:$0xff] %v7260_v3  ;;  %v5227_v14 = vadd.f32 %v5226_v61, %v5225_v5  ;;  %v5228_v8 = vpop.f32.mrb[42].mxu1  ;;  %v548_v16 = vunpack.c.l.bf16 %v6526_v10  ;;  %v1585_v5 = vmul.f32 %v6971_v23, %v547_v1  ;;  %v1753_v61 = vmul.f32 %v6997_v43, %v547_v1 }
 0x168   : > { %9522 = vst [vmem:[#allocation35_spill] sm:$0xff] %v7262_v0  ;;  %9523 = vst [vmem:[#allocation36_spill] sm:$0xff] %v7264_v2  ;;  %v5229_v12 = vpop.f32.mrb[43].mxu1  ;;  %v549_v42 = vunpack.c.h.bf16 %v6526_v10 }
 0x169   : > { %v1386_v20 = vmul.f32 %v5227_v14, %v6977_v27  ;;  %v1548_v59 = vmul.f32 %v5227_v14, %v6980_v28  ;;  %v1718_v57 = vmul.f32 %v5227_v14, %v7012_v53  ;;  %v5230_v24 = vadd.f32 %v5229_v12, %v5228_v8 }
 0x16b   : > { %v7276_v2 = vadd.f32 %v1420_v15, %v1386_v20  ;;  %v7278_v52 = vadd.f32 %v1584_v34, %v1548_v59  ;;  %v7280_v0 = vadd.f32 %v1752_v4, %v1718_v57  ;;  %v1387_v3 = vmul.f32 %v5230_v24, %v6977_v27 }
 0x16c   : > { %v1549_v35 = vmul.f32 %v5230_v24, %v6980_v28  ;;  %v1719_v14 = vmul.f32 %v5230_v24, %v7012_v53  ;;  %v1422_v4 = vmul.f32 %v6968_v22, %v548_v16  ;;  %v1586_v20 = vmul.f32 %v6971_v23, %v548_v16 }
 0x16d   : > { %9524 = vst [vmem:[#allocation37_spill] sm:$0xff] %v7276_v2  ;;  %9525 = vst [vmem:[#allocation38_spill] sm:$0xff] %v7278_v52  ;;  %v7285_v8 = vadd.f32 %v1421_v58, %v1387_v3  ;;  %v5231_v12 = vpop.f32.mrb[44].mxu1  ;;  %v1754_v59 = vmul.f32 %v6997_v43, %v548_v16  ;;  %v1423_v24 = vmul.f32 %v6968_v22, %v549_v42 }
 0x16e   : > { %9526 = vst [vmem:[#allocation39_spill] sm:$0xff] %v7280_v0  ;;  %v7287_v33 = vadd.f32 %v1585_v5, %v1549_v35  ;;  %v7289_v1 = vadd.f32 %v1753_v61, %v1719_v14  ;;  %v5232_v15 = vpop.f32.mrb[45].mxu1  ;;  %v6527_v61 = vld [vmem:[%s6739_s27 + $0x60] sm:$0xff]  }
 0x16f   : > { %9527 = vst [vmem:[#allocation40_spill] sm:$0xff] %v7285_v8  ;;  %v5233_v34 = vadd.f32 %v5232_v15, %v5231_v12  ;;  %v5234_v57 = vpop.f32.mrb[46].mxu1  ;;  %v550_v14 = vunpack.c.l.bf16 %v6527_v61  ;;  %v1587_v12 = vmul.f32 %v6971_v23, %v549_v42  ;;  %v1755_v15 = vmul.f32 %v6997_v43, %v549_v42 }
 0x170   : > { %9528 = vst [vmem:[#allocation41_spill] sm:$0xff] %v7287_v33  ;;  %9529 = vst [vmem:[#allocation42_spill] sm:$0xff] %v7289_v1  ;;  %v5235_v10 = vpop.f32.mrb[47].mxu1  ;;  %v551_v0 = vunpack.c.h.bf16 %v6527_v61 }
 0x171   : > { %v1388_v3 = vmul.f32 %v5233_v34, %v6977_v27  ;;  %v1550_v58 = vmul.f32 %v5233_v34, %v6980_v28  ;;  %v1720_v35 = vmul.f32 %v5233_v34, %v7012_v53  ;;  %v5236_v5 = vadd.f32 %v5235_v10, %v5234_v57 }
 0x173   : > { %v7301_v1 = vadd.f32 %v1422_v4, %v1388_v3  ;;  %v7303_v16 = vadd.f32 %v1586_v20, %v1550_v58  ;;  %v7305_v33 = vadd.f32 %v1754_v59, %v1720_v35  ;;  %v1389_v8 = vmul.f32 %v5236_v5, %v6977_v27 }
 0x174   : > { %v1551_v52 = vmul.f32 %v5236_v5, %v6980_v28  ;;  %v1721_v34 = vmul.f32 %v5236_v5, %v7012_v53  ;;  %v1424_v59 = vmul.f32 %v6968_v22, %v550_v14  ;;  %v1588_v3 = vmul.f32 %v6971_v23, %v550_v14 }
 0x175   : > { %9530 = vst [vmem:[#allocation43_spill] sm:$0xff] %v7301_v1  ;;  %9531 = vst [vmem:[#allocation44_spill] sm:$0xff] %v7303_v16  ;;  %v7310_v57 = vadd.f32 %v1423_v24, %v1389_v8  ;;  %v5237_v10 = vpop.f32.mrb[48].mxu1  ;;  %v1756_v58 = vmul.f32 %v6997_v43, %v550_v14  ;;  %v1425_v5 = vmul.f32 %v6968_v22, %v551_v0 }
 0x176   : > { %9532 = vst [vmem:[#allocation45_spill] sm:$0xff] %v7305_v33  ;;  %v7312_v2 = vadd.f32 %v1587_v12, %v1551_v52  ;;  %v7314_v42 = vadd.f32 %v1755_v15, %v1721_v34  ;;  %v5238_v4 = vpop.f32.mrb[49].mxu1  ;;  %v6528_v15 = vld [vmem:[%s6739_s27 + $0x68] sm:$0xff]  }
 0x177   : > { %9533 = vst [vmem:[#allocation46_spill] sm:$0xff] %v7310_v57  ;;  %v5239_v20 = vadd.f32 %v5238_v4, %v5237_v10  ;;  %v5240_v35 = vpop.f32.mrb[50].mxu1  ;;  %v552_v34 = vunpack.c.l.bf16 %v6528_v15  ;;  %v1589_v10 = vmul.f32 %v6971_v23, %v551_v0  ;;  %v1757_v4 = vmul.f32 %v6997_v43, %v551_v0 }
 0x178   : > { %9534 = vst [vmem:[#allocation47_spill] sm:$0xff] %v7312_v2  ;;  %9535 = vst [vmem:[#allocation48_spill] sm:$0xff] %v7314_v42  ;;  %v5241_v61 = vpop.f32.mrb[51].mxu1  ;;  %v553_v33 = vunpack.c.h.bf16 %v6528_v15 }
 0x179   : > { %v1390_v8 = vmul.f32 %v5239_v20, %v6977_v27  ;;  %v1552_v24 = vmul.f32 %v5239_v20, %v6980_v28  ;;  %v1722_v52 = vmul.f32 %v5239_v20, %v7012_v53  ;;  %v5242_v12 = vadd.f32 %v5241_v61, %v5240_v35 }
 0x17b   : > { %v7326_v42 = vadd.f32 %v1424_v59, %v1390_v8  ;;  %v7328_v14 = vadd.f32 %v1588_v3, %v1552_v24  ;;  %v7330_v2 = vadd.f32 %v1756_v58, %v1722_v52  ;;  %v1391_v57 = vmul.f32 %v5242_v12, %v6977_v27 }
 0x17c   : > { %v1553_v16 = vmul.f32 %v5242_v12, %v6980_v28  ;;  %v1723_v20 = vmul.f32 %v5242_v12, %v7012_v53  ;;  %v1426_v58 = vmul.f32 %v6968_v22, %v552_v34  ;;  %v1590_v8 = vmul.f32 %v6971_v23, %v552_v34 }
 0x17d   : > { %9536 = vst [vmem:[#allocation49_spill] sm:$0xff] %v7326_v42  ;;  %9537 = vst [vmem:[#allocation50_spill] sm:$0xff] %v7328_v14  ;;  %v7335_v35 = vadd.f32 %v1425_v5, %v1391_v57  ;;  %v5243_v61 = vpop.f32.mrb[52].mxu1  ;;  %v1758_v24 = vmul.f32 %v6997_v43, %v552_v34  ;;  %v1427_v12 = vmul.f32 %v6968_v22, %v553_v33 }
 0x17e   : > { %9538 = vst [vmem:[#allocation51_spill] sm:$0xff] %v7330_v2  ;;  %v7337_v1 = vadd.f32 %v1589_v10, %v1553_v16  ;;  %v7339_v0 = vadd.f32 %v1757_v4, %v1723_v20  ;;  %v5244_v59 = vpop.f32.mrb[53].mxu1  ;;  %v6529_v4 = vld [vmem:[%s6739_s27 + $0x70] sm:$0xff]  }
 0x17f   : > { %9539 = vst [vmem:[#allocation52_spill] sm:$0xff] %v7335_v35  ;;  %v5245_v3 = vadd.f32 %v5244_v59, %v5243_v61  ;;  %v5246_v52 = vpop.f32.mrb[54].mxu1  ;;  %v554_v20 = vunpack.c.l.bf16 %v6529_v4  ;;  %v1591_v61 = vmul.f32 %v6971_v23, %v553_v33  ;;  %v1759_v59 = vmul.f32 %v6997_v43, %v553_v33 }
 0x180   : > { %9540 = vst [vmem:[#allocation53_spill] sm:$0xff] %v7337_v1  ;;  %9541 = vst [vmem:[#allocation54_spill] sm:$0xff] %v7339_v0  ;;  %v5247_v15 = vpop.f32.mrb[55].mxu1  ;;  %v555_v2 = vunpack.c.h.bf16 %v6529_v4 }
 0x181   : > { %v1392_v57 = vmul.f32 %v5245_v3, %v6977_v27  ;;  %v1554_v5 = vmul.f32 %v5245_v3, %v6980_v28  ;;  %v1724_v16 = vmul.f32 %v5245_v3, %v7012_v53  ;;  %v5248_v10 = vadd.f32 %v5247_v15, %v5246_v52 }
 0x183   : > { %v7351_v0 = vadd.f32 %v1426_v58, %v1392_v57  ;;  %v7353_v34 = vadd.f32 %v1590_v8, %v1554_v5  ;;  %v7355_v1 = vadd.f32 %v1758_v24, %v1724_v16  ;;  %v1393_v35 = vmul.f32 %v5248_v10, %v6977_v27 }
 0x184   : > { %v1555_v14 = vmul.f32 %v5248_v10, %v6980_v28  ;;  %v1725_v3 = vmul.f32 %v5248_v10, %v7012_v53  ;;  %v1428_v24 = vmul.f32 %v6968_v22, %v554_v20  ;;  %v1592_v57 = vmul.f32 %v6971_v23, %v554_v20 }
 0x185   : > { %9542 = vst [vmem:[#allocation55_spill] sm:$0xff] %v7351_v0  ;;  %9543 = vst [vmem:[#allocation56_spill] sm:$0xff] %v7353_v34  ;;  %v7360_v52 = vadd.f32 %v1427_v12, %v1393_v35  ;;  %v5249_v15 = vpop.f32.mrb[56].mxu1  ;;  %v1760_v5 = vmul.f32 %v6997_v43, %v554_v20  ;;  %v1429_v10 = vmul.f32 %v6968_v22, %v555_v2 }
 0x186   : > { %9544 = vst [vmem:[#allocation57_spill] sm:$0xff] %v7355_v1  ;;  %v7362_v42 = vadd.f32 %v1591_v61, %v1555_v14  ;;  %v7364_v33 = vadd.f32 %v1759_v59, %v1725_v3  ;;  %v5250_v58 = vpop.f32.mrb[57].mxu1  ;;  %v6530_v59 = vld [vmem:[%s6739_s27 + $0x78] sm:$0xff]   ;;  %s6537_s27 = sshll.u32 %s6600_s23, 4  ;;  %s6538_s27 = int_to_ptr.vmem [resolvable:$false] %s6537_s27 }
 0x187   : > { %9545 = vst [vmem:[#allocation58_spill] sm:$0xff] %v7360_v52  ;;  %v5251_v8 = vadd.f32 %v5250_v58, %v5249_v15  ;;  %v5252_v16 = vpop.f32.mrb[58].mxu1  ;;  %v556_v3 = vunpack.c.l.bf16 %v6530_v59  ;;  %v1593_v15 = vmul.f32 %v6971_v23, %v555_v2  ;;  %v1761_v58 = vmul.f32 %v6997_v43, %v555_v2  ;;  %s6539_s29 = scalar_lea.vmem %s6538_s27, 16384  ;;  %p6540_p0 = scmp.lt.s32.totalorder %s9380_s25, %s6538_s27 }
 0x188   : > { %9546 = vst [vmem:[#allocation59_spill] sm:$0xff] %v7362_v42  ;;  %9547 = vst [vmem:[#allocation60_spill] sm:$0xff] %v7364_v33  ;;  %v5253_v4 = vpop.f32.mrb[59].mxu1  ;;  %v557_v52 = vunpack.c.h.bf16 %v6530_v59  ;;  %p6541_p1 = scmp.lt.s32.totalorder %s6539_s29, %s6533_s17 }
 0x189   : > { %v1394_v35 = vmul.f32 %v5251_v8, %v6977_v27  ;;  %v1556_v12 = vmul.f32 %v5251_v8, %v6980_v28  ;;  %v1726_v14 = vmul.f32 %v5251_v8, %v7012_v53  ;;  %v5254_v61 = vadd.f32 %v5253_v4, %v5252_v16 }
 0x18a   : > { %p6542_p2 = por %p6541_p1, %p6540_p0 }
 0x18b   : > { %v7376_v33 = vadd.f32 %v1428_v24, %v1394_v35  ;;  %v7378_v20 = vadd.f32 %v1592_v57, %v1556_v12  ;;  %v7380_v42 = vadd.f32 %v1760_v5, %v1726_v14  ;;  %v1395_v22 = vmul.f32 %v5254_v61, %v6977_v27 }
 0x18c   : > { %v1557_v1 = vmul.f32 %v5254_v61, %v6980_v28  ;;  %v1727_v8 = vmul.f32 %v5254_v61, %v7012_v53  ;;  %v1594_v57 = vmul.f32 %v6971_v23, %v556_v3  ;;  %v1762_v5 = vmul.f32 %v6997_v43, %v556_v3  ;;  %p6543_p3 = pnand %p6542_p2, %p6536_p13 }
 0x18d   : > { %v7385_v16 = vadd.f32 %v1429_v10, %v1395_v22  ;;  %v5255_v4 = vpop.f32.mrb[60].mxu1  ;;  %v1630_v27 = vsub.s32 5, %v6945_v11  ;;  %v1595_v14 = vmul.f32 %v6971_v23, %v557_v52  ;;  %v1763_v10 = vmul.f32 %v6997_v43, %v557_v52 }
 0x18e   : > { %v7387_v34 = vadd.f32 %v1593_v15, %v1557_v1  ;;  %v7389_v0 = vadd.f32 %v1761_v58, %v1727_v8  ;;  %v5256_v2 = vpop.f32.mrb[61].mxu1  ;;  %v9453_v15 = vsub.s32 2, %v6945_v11 }
 0x18f   : > { %v5257_v24 = vadd.f32 %v5256_v2, %v5255_v4  ;;  %v5258_v35 = vpop.f32.mrb[62].mxu1  ;;  %v7406_v4 = vrot.slane %v6960_v19, %v1630_v27 }
 0x190   : > { %v5259_v12 = vpop.f32.mrb[63].mxu1  ;;  %v7415_v2 = vrot.slane %v6960_v19, %v9453_v15 }
 0x191   : > { %v1558_v61 = vmul.f32 %v5257_v24, %v6980_v28  ;;  %v1728_v1 = vmul.f32 %v5257_v24, %v7012_v53  ;;  %v5260_v59 = vadd.f32 %v5259_v12, %v5258_v35 }
 0x193   : > { %v7399_v58 = vadd.f32 %v1594_v57, %v1558_v61  ;;  %v7401_v22 = vadd.f32 %v1762_v5, %v1728_v1  ;;  %v1559_v3 = vmul.f32 %v5260_v59, %v6980_v28  ;;  %v1729_v8 = vmul.f32 %v5260_v59, %v7012_v53 }
 0x195   : > { %v7408_v23 = vadd.f32 %v1595_v14, %v1559_v3  ;;  %v7410_v43 = vadd.f32 %v1763_v10, %v1729_v8  ;;  %v5277_v52 = vpop.f32.mrb[64].mxu1  ;;  %v7428_v8 = vld [vmem:[%s9432_s3 + $0x8] ss:$0 sm:$0xff] }
 0x196   : > { %v5278_v24 = vpop.f32.mrb[65].mxu1 }
 0x197   : > { %v5279_v57 = vadd.f32 %v5278_v24, %v5277_v52  ;;  %v5280_v5 = vpop.f32.mrb[66].mxu1 }
 0x198   : > { %v5281_v35 = vpop.f32.mrb[67].mxu1 }
 0x199   : > { %v1464_v28 = vmul.f32 %v5279_v57, %v7415_v2  ;;  %v1632_v53 = vmul.f32 %v5279_v57, %v7406_v4  ;;  %v5282_v27 = vadd.f32 %v5281_v35, %v5280_v5 }
 0x19b   : > { %v1494_v12 = vadd.f32 %v1464_v28, %v7000_v45  ;;  %v1664_v14 = vadd.f32 %v1632_v53, %v7002_v46  ;;  %v1465_v10 = vmul.f32 %v5282_v27, %v7415_v2  ;;  %v1633_v61 = vmul.f32 %v5282_v27, %v7406_v4  ;;  %v7440_v27 = vld [vmem:[%s9433_s4] ss:$0 sm:$0xff] }
 0x19d   : > { %v1495_v19 = vadd.f32 %v1465_v10, %v7007_v50  ;;  %v1665_v1 = vadd.f32 %v1633_v61, %v7009_v51  ;;  %v5283_v59 = vpop.f32.mrb[68].mxu1 }
 0x19e   : > { %v5284_v3 = vpop.f32.mrb[69].mxu1 }
 0x19f   : > { %v5285_v52 = vadd.f32 %v5284_v3, %v5283_v59  ;;  %v5286_v24 = vpop.f32.mrb[70].mxu1 }
 0x1a0   : > { %v5287_v45 = vpop.f32.mrb[71].mxu1 }
 0x1a1   : > { %v1466_v46 = vmul.f32 %v5285_v52, %v7415_v2  ;;  %v1634_v57 = vmul.f32 %v5285_v52, %v7406_v4  ;;  %v1798_v5 = vmul.f32 %v5285_v52, %v7428_v8  ;;  %v5288_v35 = vadd.f32 %v5287_v45, %v5286_v24 }
 0x1a3   : > { %v1496_v50 = vadd.f32 %v1466_v46, %v7030_v13  ;;  %v1666_v51 = vadd.f32 %v1634_v57, %v7032_v17  ;;  %v1828_v28 = vadd.f32 %v1798_v5, %v7034_v18  ;;  %v1467_v53 = vmul.f32 %v5288_v35, %v7415_v2 }
 0x1a4   : > { %v1635_v10 = vmul.f32 %v5288_v35, %v7406_v4  ;;  %v1799_v61 = vmul.f32 %v5288_v35, %v7428_v8 }
 0x1a5   : > { %v1860_v59 = vadd.f32 %v1666_v51, %v1494_v12  ;;  %v1890_v3 = vadd.f32 %v1828_v28, %v1664_v14  ;;  %v1497_v52 = vadd.f32 %v1467_v53, %v7040_v29  ;;  %v5289_v13 = vpop.f32.mrb[72].mxu1 }
 0x1a6   : > { %v1667_v17 = vadd.f32 %v1635_v10, %v7042_v31  ;;  %v1829_v18 = vadd.f32 %v1799_v61, %v7044_v32  ;;  %v5290_v24 = vpop.f32.mrb[73].mxu1 }
 0x1a7   : > { %v7448_v45 = vadd.f32 %v7440_v27, %v1890_v3  ;;  %v5291_v46 = vadd.f32 %v5290_v24, %v5289_v13  ;;  %v5292_v57 = vpop.f32.mrb[74].mxu1 }
 0x1a8   : > { %v1861_v5 = vadd.f32 %v1667_v17, %v1495_v19  ;;  %v1891_v15 = vadd.f32 %v1829_v18, %v1665_v1  ;;  %v5293_v11 = vpop.f32.mrb[75].mxu1 }
 0x1a9   : > { %v4915_v35 = vmul.f32 -1.442695, %v7448_v45  ;;  %v1468_v12 = vmul.f32 %v5291_v46, %v7415_v2  ;;  %v1636_v29 = vmul.f32 %v5291_v46, %v7406_v4  ;;  %v1800_v14 = vmul.f32 %v5291_v46, %v7428_v8 }
 0x1aa   : > { %v7455_v31 = vadd.f32 %v7440_v27, %v1891_v15  ;;  %v5294_v32 = vadd.f32 %v5293_v11, %v5292_v57 }
 0x1ab   : > { %6003 = vpow2.f32 %v4915_v35  ;;  %v1498_v51 = vadd.f32 %v1468_v12, %v7062_v54  ;;  %v1668_v28 = vadd.f32 %v1636_v29, %v7064_v55  ;;  %v1830_v19 = vadd.f32 %v1800_v14, %v7066_v56 }
 0x1ac   : > { %v4916_v1 = vmul.f32 -1.442695, %v7455_v31  ;;  %v1469_v53 = vmul.f32 %v5294_v32, %v7415_v2  ;;  %v1637_v10 = vmul.f32 %v5294_v32, %v7406_v4  ;;  %v1801_v61 = vmul.f32 %v5294_v32, %v7428_v8 }
 0x1ad   : > { %v1862_v3 = vadd.f32 %v1668_v28, %v1496_v50  ;;  %v1892_v13 = vadd.f32 %v1860_v59, %v1830_v19  ;;  %v5295_v15 = vpop.f32.mrb[76].mxu1 }
 0x1ae   : > { %6005 = vpow2.f32 %v4916_v1  ;;  %v1499_v11 = vadd.f32 %v1469_v53, %v7072_v60  ;;  %v1669_v54 = vadd.f32 %v1637_v10, %v7074_v62  ;;  %v1831_v55 = vadd.f32 %v1801_v61, %v7076_v63  ;;  %v5296_v17 = vpop.f32.mrb[77].mxu1  ;;  %v5859_v1 = vld [vmem:[%s9434_s5] sm:$0xff]  }
 0x1af   : > { %v7468_v56 = vadd.f32 %v7440_v27, %v1892_v13  ;;  %v5297_v18 = vadd.f32 %v5296_v17, %v5295_v15  ;;  %v5298_v24 = vpop.f32.mrb[78].mxu1 }
 0x1b0   : > { %v1863_v46 = vadd.f32 %v1669_v54, %v1497_v52  ;;  %v1893_v57 = vadd.f32 %v1861_v5, %v1831_v55  ;;  %v5299_v35 = vpop.f32.mrb[79].mxu1  ;;  %v9455_v54 = vmov 0.0  }
 0x1b1   : > { %v4917_v50 = vmul.f32 -1.442695, %v7468_v56  ;;  %v1470_v59 = vmul.f32 %v5297_v18, %v7415_v2  ;;  %v1638_v12 = vmul.f32 %v5297_v18, %v7406_v4  ;;  %v1802_v60 = vmul.f32 %v5297_v18, %v7428_v8  ;;  %5439 = vmatprep.subr.bf16.mxu0 %v9455_v54  ;;  %5459 = vmatprep.subr.bf16.mxu1 %v9455_v54 }
 0x1b2   : > { %v7475_v62 = vadd.f32 %v7440_v27, %v1893_v57  ;;  %v5300_v63 = vadd.f32 %v5299_v35, %v5298_v24  ;;  %5440 = vmatpush3.bf16.msra.mxu0 %v5859_v1  ;;  %5455 = vmatprep.mubr.msk.bf16.mxu0 %vm6598_vm0, %v9455_v54 }
 0x1b3   : > { %6007 = vpow2.f32 %v4917_v50  ;;  %v1500_v29 = vadd.f32 %v1470_v59, %v7094_v36  ;;  %v1670_v14 = vadd.f32 %v1638_v12, %v7096_v37  ;;  %v1832_v52 = vadd.f32 %v1802_v60, %v7098_v38  ;;  %5441 = vmatprep.subr.bf16.mxu0 %v9455_v54  ;;  %5475 = vmatprep.mubr.msk.bf16.mxu1 %vm6598_vm0, %v9455_v54 }
 0x1b4   : > { %v4918_v5 = vmul.f32 -1.442695, %v7475_v62  ;;  %v1471_v32 = vmul.f32 %v5300_v63, %v7415_v2  ;;  %v1639_v28 = vmul.f32 %v5300_v63, %v7406_v4  ;;  %v1803_v19 = vmul.f32 %v5300_v63, %v7428_v8 }
 0x1b5   : > { %v6004_v53 = vpop.eup %6003  ;;  %v1864_v10 = vadd.f32 %v1670_v14, %v1498_v51  ;;  %v1894_v61 = vadd.f32 %v1862_v3, %v1832_v52  ;;  %v5301_v36 = vpop.f32.mrb[80].mxu1  ;;  %v5861_v14 = vld [vmem:[%s9434_s5 + $0x10] sm:$0xff]  }
 0x1b6   : > { %v2057_v13 = vadd.f32 1.0, %v6004_v53  ;;  %6009 = vpow2.f32 %v4918_v5  ;;  %v1501_v37 = vadd.f32 %v1471_v32, %v7104_v44  ;;  %v1671_v38 = vadd.f32 %v1639_v28, %v7106_v48  ;;  %v5302_v15 = vpop.f32.mrb[81].mxu1  ;;  %v5860_v48 = vld [vmem:[%s9434_s5 + $0x8] sm:$0xff]  }
 0x1b7   : > { %v7492_v55 = vadd.f32 %v7440_v27, %v1894_v61  ;;  %v1833_v17 = vadd.f32 %v1803_v19, %v7108_v49  ;;  %v5303_v51 = vadd.f32 %v5302_v15, %v5301_v36  ;;  %v5304_v3 = vpop.f32.mrb[82].mxu1  ;;  %5442 = vmatpush3.bf16.msra.mxu0 %v5860_v48 }
 0x1b8   : > { %v6006_v18 = vpop.eup %6005  ;;  %6011 = vrcp.f32 %v2057_v13  ;;  %v1865_v24 = vadd.f32 %v1671_v38, %v1499_v11  ;;  %v5305_v44 = vpop.f32.mrb[83].mxu1  ;;  %5443 = vmatprep.subr.bf16.mxu0 %v9455_v54 }
 0x1b9   : > { %v2058_v57 = vadd.f32 1.0, %v6006_v18  ;;  %v4919_v35 = vmul.f32 -1.442695, %v7492_v55  ;;  %v1895_v50 = vadd.f32 %v1863_v46, %v1833_v17  ;;  %v1472_v59 = vmul.f32 %v5303_v51, %v7415_v2 }
 0x1ba   : > { %v1640_v49 = vmul.f32 %v5303_v51, %v7406_v4  ;;  %v1804_v12 = vmul.f32 %v5303_v51, %v7428_v8  ;;  %v5306_v60 = vadd.f32 %v5305_v44, %v5304_v3  ;;  %v5862_v51 = vld [vmem:[%s9434_s5 + $0x18] sm:$0xff]  }
 0x1bb   : > { %6013 = vrcp.f32 %v2058_v57  ;;  %v7504_v11 = vadd.f32 %v7440_v27, %v1895_v50  ;;  %v1502_v63 = vadd.f32 %v1472_v59, %v7123_v25  ;;  %5444 = vmatpush3.bf16.msra.mxu0 %v5861_v14 }
 0x1bc   : > { %6015 = vpow2.f32 %v4919_v35  ;;  %v1672_v46 = vadd.f32 %v1640_v49, %v7125_v26  ;;  %v1834_v52 = vadd.f32 %v1804_v12, %v7127_v30  ;;  %v1473_v5 = vmul.f32 %v5306_v60, %v7415_v2  ;;  %5445 = vmatprep.subr.bf16.mxu0 %v9455_v54 }
 0x1bd   : > { %v6008_v25 = vpop.eup %6007  ;;  %v4920_v32 = vmul.f32 -1.442695, %v7504_v11  ;;  %v1641_v28 = vmul.f32 %v5306_v60, %v7406_v4  ;;  %v1805_v19 = vmul.f32 %v5306_v60, %v7428_v8  ;;  %v5307_v1 = vpop.f32.mrb[84].mxu1 }
 0x1be   : > { %v2059_v53 = vadd.f32 1.0, %v6008_v25  ;;  %v1866_v61 = vadd.f32 %v1672_v46, %v1500_v29  ;;  %v1896_v36 = vadd.f32 %v1864_v10, %v1834_v52  ;;  %v1503_v26 = vadd.f32 %v1473_v5, %v7133_v6  ;;  %v5308_v30 = vpop.f32.mrb[85].mxu1 }
 0x1bf   : > { %6017 = vpow2.f32 %v4920_v32  ;;  %v1673_v13 = vadd.f32 %v1641_v28, %v7135_v41  ;;  %v1835_v38 = vadd.f32 %v1805_v19, %v7137_v40  ;;  %v5309_v15 = vadd.f32 %v5308_v30, %v5307_v1  ;;  %v5310_v17 = vpop.f32.mrb[86].mxu1  ;;  %5446 = vmatpush3.bf16.msra.mxu0 %v5862_v51 }
 0x1c0   : > { %v6010_v3 = vpop.eup %6009  ;;  %6019 = vrcp.f32 %v2059_v53  ;;  %v7526_v29 = vadd.f32 %v7440_v27, %v1896_v36  ;;  %v5311_v10 = vpop.f32.mrb[87].mxu1  ;;  %5447 = vmatprep.subr.bf16.mxu0 %v9455_v54  ;;  %v9548_v36 = vld [vmem:[#allocation12_spill] sm:$0xff] }
 0x1c1   : > { %v2060_v6 = vadd.f32 1.0, %v6010_v3  ;;  %v1867_v18 = vadd.f32 %v1673_v13, %v1501_v37  ;;  %v1897_v41 = vadd.f32 %v1865_v24, %v1835_v38  ;;  %v1474_v40 = vmul.f32 %v5309_v15, %v7415_v2  ;;  %v5863_v37 = vld [vmem:[%s9434_s5 + $0x20] sm:$0xff]   ;;  %v5864_v38 = vld [vmem:[%s9434_s5 + $0x28] sm:$0xff]  }
 0x1c2   : > { %v6012_v44 = vpop.eup %6011  ;;  %v4921_v48 = vmul.f32 -1.442695, %v7526_v29  ;;  %v1642_v57 = vmul.f32 %v5309_v15, %v7406_v4  ;;  %v1806_v35 = vmul.f32 %v5309_v15, %v7428_v8  ;;  %v5312_v50 = vadd.f32 %v5311_v10, %v5310_v17 }
 0x1c3   : > { %6021 = vrcp.f32 %v2060_v6  ;;  %v7534_v59 = vadd.f32 %v7440_v27, %v1897_v41  ;;  %v1504_v49 = vadd.f32 %v1474_v40, %v7149_v7  ;;  %v7545_v46 = vmul.f32 %v6012_v44, %v7448_v45  ;;  %5448 = vmatpush3.bf16.msra.mxu0 %v5863_v37  ;;  %v9550_v37 = vld [vmem:[#allocation14_spill] sm:$0xff] }
 0x1c4   : > { %6023 = vpow2.f32 %v4921_v48  ;;  %v1674_v24 = vadd.f32 %v1642_v57, %v7151_v9  ;;  %v1836_v12 = vadd.f32 %v1806_v35, %v7153_v21  ;;  %v1475_v60 = vmul.f32 %v5312_v50, %v7415_v2  ;;  %5449 = vmatprep.subr.bf16.mxu0 %v9455_v54  ;;  %v9549_v35 = vld [vmem:[#allocation13_spill] sm:$0xff] }
 0x1c5   : > { %v6014_v14 = vpop.eup %6013  ;;  %v4922_v7 = vmul.f32 -1.442695, %v7534_v59  ;;  %v1643_v52 = vmul.f32 %v5312_v50, %v7406_v4  ;;  %v1807_v5 = vmul.f32 %v5312_v50, %v7428_v8  ;;  %v5313_v25 = vpop.f32.mrb[88].mxu1 }
 0x1c6   : > { %v6016_v32 = vpop.eup %6015  ;;  %v7551_v9 = vmul.f32 %v6014_v14, %v7455_v31  ;;  %v1868_v21 = vadd.f32 %v1674_v24, %v1502_v63  ;;  %v1898_v28 = vadd.f32 %v1866_v61, %v1836_v12  ;;  %v1505_v19 = vadd.f32 %v1475_v60, %v7159_v39  ;;  %v5314_v1 = vpop.f32.mrb[89].mxu1 }
 0x1c7   : > { %v2061_v53 = vadd.f32 1.0, %v6016_v32  ;;  %6025 = vpow2.f32 %v4922_v7  ;;  %v1675_v45 = vadd.f32 %v1643_v52, %v7161_v47  ;;  %v1837_v30 = vadd.f32 %v1807_v5, %v9548_v36  ;;  %v5316_v13 = vpop.f32.mrb[90].mxu1  ;;  %5450 = vmatpush3.bf16.msra.mxu0 %v5864_v38  ;;  %v9551_v7 = vld [vmem:[#allocation15_spill] sm:$0xff] }
 0x1c8   : > { %v2185_v31 = vadd.f32 %v7551_v9, %v7545_v46  ;;  %v7562_v63 = vadd.f32 %v7440_v27, %v1898_v28  ;;  %v5315_v39 = vadd.f32 %v5314_v1, %v5313_v25  ;;  %v5317_v61 = vpop.f32.mrb[91].mxu1  ;;  %5451 = vmatprep.subr.bf16.mxu0 %v9455_v54  ;;  %v9552_v1 = vld [vmem:[#allocation16_spill] sm:$0xff] }
 0x1c9   : > { %v6018_v15 = vpop.eup %6017  ;;  %6027 = vrcp.f32 %v2061_v53  ;;  %v1869_v47 = vadd.f32 %v1675_v45, %v1503_v26  ;;  %v1899_v17 = vadd.f32 %v1867_v18, %v1837_v30  ;;  %v5318_v51 = vadd.f32 %v5317_v61, %v5316_v13  ;;  %v5865_v18 = vld [vmem:[%s9434_s5 + $0x30] sm:$0xff]   ;;  %v9553_v45 = vld [vmem:[#allocation17_spill] sm:$0xff]  ;;  %v5866_v61 = vld [vmem:[%s9434_s5 + $0x38] sm:$0xff]  }
 0x1ca   : > { %v6020_v3 = vpop.eup %6019  ;;  %v2062_v10 = vadd.f32 1.0, %v6018_v15  ;;  %v4923_v6 = vmul.f32 -1.442695, %v7562_v63  ;;  %v1476_v41 = vmul.f32 %v5315_v39, %v7415_v2  ;;  %v1644_v40 = vmul.f32 %v5315_v39, %v7406_v4 }
 0x1cb   : > { %v7569_v44 = vmul.f32 %v6020_v3, %v7468_v56  ;;  %v7572_v48 = vadd.f32 %v7440_v27, %v1899_v17  ;;  %v1808_v57 = vmul.f32 %v5315_v39, %v7428_v8  ;;  %v1477_v26 = vmul.f32 %v5318_v51, %v7415_v2  ;;  %5452 = vmatpush3.bf16.msra.mxu0 %v5865_v18 }
 0x1cc   : > { %6029 = vrcp.f32 %v2062_v10  ;;  %v1506_v50 = vadd.f32 %v1476_v41, %v9549_v35  ;;  %v1676_v24 = vadd.f32 %v1644_v40, %v9550_v37  ;;  %v1645_v56 = vmul.f32 %v5318_v51, %v7406_v4  ;;  %5453 = vmatprep.subr.bf16.mxu0 %v9455_v54  ;;  %v9554_v10 = vld [vmem:[#allocation18_spill] sm:$0xff] }
 0x1cd   : > { %v6022_v12 = vpop.eup %6021  ;;  %v2186_v60 = vadd.f32 %v2185_v31, %v7569_v44  ;;  %6031 = vpow2.f32 %v4923_v6  ;;  %v4924_v14 = vmul.f32 -1.442695, %v7572_v48  ;;  %v1838_v52 = vadd.f32 %v1808_v57, %v9551_v7  ;;  %v5319_v5 = vpop.f32.mrb[92].mxu1  ;;  %v5868_v40 = vld [vmem:[%s9436_s7 + $0x8] sm:$0xff]  }
 0x1ce   : > { %v6024_v25 = vpop.eup %6023  ;;  %v7587_v32 = vmul.f32 %v6022_v12, %v7475_v62  ;;  %v1870_v28 = vadd.f32 %v1676_v24, %v1504_v49  ;;  %v1507_v53 = vadd.f32 %v1477_v26, %v9552_v1  ;;  %v1677_v36 = vadd.f32 %v1645_v56, %v9553_v45  ;;  %v5320_v30 = vpop.f32.mrb[93].mxu1  ;;  %v5867_v62 = vld [vmem:[%s9436_s7] sm:$0xff]  }
 0x1cf   : > { %v2063_v13 = vadd.f32 1.0, %v6024_v25  ;;  %6033 = vpow2.f32 %v4924_v14  ;;  %v1900_v38 = vadd.f32 %v1868_v21, %v1838_v52  ;;  %v1809_v31 = vmul.f32 %v5318_v51, %v7428_v8  ;;  %v5322_v39 = vpop.f32.mrb[94].mxu1  ;;  %5460 = vmatpush3.bf16.msra.mxu1 %v5867_v62  ;;  %5454 = vmatpush3.bf16.msra.mxu0 %v5866_v61  ;;  %v9555_v14 = vld [vmem:[#allocation19_spill] sm:$0xff]  ;;  %v9556_v52 = vld [vmem:[#allocation20_spill] sm:$0xff]  ;;  %v9557_v1 = vld [vmem:[#allocation21_spill] sm:$0xff] }
 0x1d0   : > { %v2187_v49 = vadd.f32 %v2186_v60, %v7587_v32  ;;  %v1871_v15 = vadd.f32 %v1677_v36, %v1505_v19  ;;  %v5321_v17 = vadd.f32 %v5320_v30, %v5319_v5  ;;  %v5323_v3 = vpop.f32.mrb[95].mxu1  ;;  %5461 = vmatprep.subr.bf16.mxu1 %v9455_v54 }
 0x1d1   : > { %v6026_v21 = vpop.eup %6025  ;;  %6035 = vrcp.f32 %v2063_v13  ;;  %v7601_v51 = vadd.f32 %v7440_v27, %v1900_v38  ;;  %v1839_v6 = vadd.f32 %v1809_v31, %v9554_v10  ;;  %v5324_v41 = vadd.f32 %v5323_v3, %v5322_v39  ;;  %v9559_v39 = vld [vmem:[#allocation23_spill] sm:$0xff] }
 0x1d2   : > { %v2064_v57 = vadd.f32 1.0, %v6026_v21  ;;  %v1478_v19 = vmul.f32 %v5321_v17, %v7415_v2  ;;  %v1646_v26 = vmul.f32 %v5321_v17, %v7406_v4  ;;  %v1810_v18 = vmul.f32 %v5321_v17, %v7428_v8 }
 0x1d3   : > { %v6028_v35 = vpop.eup %6027  ;;  %v4925_v37 = vmul.f32 -1.442695, %v7601_v51  ;;  %v1901_v24 = vadd.f32 %v1869_v47, %v1839_v6  ;;  %v1479_v56 = vmul.f32 %v5324_v41, %v7415_v2  ;;  %v1647_v12 = vmul.f32 %v5324_v41, %v7406_v4  ;;  %v9558_v47 = vld [vmem:[#allocation22_spill] sm:$0xff]  ;;  %5462 = vmatpush3.bf16.msra.mxu1 %v5868_v40 }
 0x1d4   : > { %v7615_v60 = vmul.f32 %v6028_v35, %v7492_v55  ;;  %6037 = vrcp.f32 %v2064_v57  ;;  %v1508_v7 = vadd.f32 %v1478_v19, %v9555_v14  ;;  %v1678_v5 = vadd.f32 %v1646_v26, %v9556_v52  ;;  %v5869_v55 = vld [vmem:[%s9436_s7 + $0x10] sm:$0xff]   ;;  %5463 = vmatprep.subr.bf16.mxu1 %v9455_v54  ;;  %v9560_v26 = vld [vmem:[#allocation24_spill] sm:$0xff]  ;;  %v9561_v52 = vld [vmem:[#allocation25_spill] sm:$0xff] }
 0x1d5   : > { %6039 = vpow2.f32 %v4925_v37  ;;  %v7620_v25 = vadd.f32 %v7440_v27, %v1901_v24  ;;  %v1840_v45 = vadd.f32 %v1810_v18, %v9557_v1  ;;  %v7624_v36 = vadd.f32 %v1479_v56, %v9558_v47  ;;  %v5325_v30 = vpop.f32.mrb[96].mxu1 }
 0x1d6   : > { %v6030_v13 = vpop.eup %6029  ;;  %v2188_v38 = vadd.f32 %v2187_v49, %v7615_v60  ;;  %v1872_v31 = vadd.f32 %v1678_v5, %v1506_v50  ;;  %v1679_v61 = vadd.f32 %v1647_v12, %v9559_v39  ;;  %v1811_v62 = vmul.f32 %v5324_v41, %v7428_v8  ;;  %v5326_v17 = vpop.f32.mrb[97].mxu1 }
 0x1d7   : > { %v6032_v3 = vpop.eup %6031  ;;  %v7634_v21 = vmul.f32 %v6030_v13, %v7504_v11  ;;  %v4926_v10 = vmul.f32 -1.442695, %v7620_v25  ;;  %v1902_v6 = vadd.f32 %v1870_v28, %v1840_v45  ;;  %v5327_v40 = vadd.f32 %v5326_v17, %v5325_v30  ;;  %v5328_v57 = vpop.f32.mrb[98].mxu1  ;;  %5464 = vmatpush3.bf16.msra.mxu1 %v5869_v55  ;;  %v5870_v28 = vld [vmem:[%s9436_s7 + $0x18] sm:$0xff]   ;;  %v9563_v13 = vld [vmem:[#allocation27_spill] sm:$0xff] }
 0x1d8   : > { %v2065_v19 = vadd.f32 1.0, %v6032_v3  ;;  %v1841_v49 = vadd.f32 %v1811_v62, %v9560_v26  ;;  %v1873_v50 = vadd.f32 %v1679_v61, %v1507_v53  ;;  %v5329_v18 = vpop.f32.mrb[99].mxu1  ;;  %5465 = vmatprep.subr.bf16.mxu1 %v9455_v54 }
 0x1d9   : > { %v6034_v35 = vpop.eup %6033  ;;  %v2189_v41 = vadd.f32 %v2188_v38, %v7634_v21  ;;  %6041 = vpow2.f32 %v4926_v10  ;;  %v7640_v37 = vadd.f32 %v7440_v27, %v1902_v6  ;;  %v1480_v11 = vmul.f32 %v5327_v40, %v7415_v2 }
 0x1da   : > { %6043 = vrcp.f32 %v2065_v19  ;;  %v2066_v24 = vadd.f32 1.0, %v6034_v35  ;;  %v1903_v56 = vadd.f32 %v1871_v15, %v1841_v49  ;;  %v1648_v53 = vmul.f32 %v5327_v40, %v7406_v4  ;;  %v9562_v15 = vld [vmem:[#allocation26_spill] sm:$0xff] }
 0x1db   : > { %v6036_v12 = vpop.eup %6035  ;;  %v4927_v14 = vmul.f32 -1.442695, %v7640_v37  ;;  %v1510_v5 = vadd.f32 %v1480_v11, %v9561_v52  ;;  %v1812_v1 = vmul.f32 %v5327_v40, %v7428_v8  ;;  %v5330_v45 = vadd.f32 %v5329_v18, %v5328_v57  ;;  %5466 = vmatpush3.bf16.msra.mxu1 %v5870_v28  ;;  %v9564_v18 = vld [vmem:[#allocation28_spill] sm:$0xff]  ;;  %v9565_v11 = vld [vmem:[#allocation29_spill] sm:$0xff] }
 0x1dc   : > { %v7652_v47 = vmul.f32 %v6036_v12, %v7526_v29  ;;  %6045 = vrcp.f32 %v2066_v24  ;;  %v7655_v30 = vadd.f32 %v7440_v27, %v1903_v56  ;;  %v1680_v55 = vadd.f32 %v1648_v53, %v9562_v15  ;;  %v5871_v29 = vld [vmem:[%s9436_s7 + $0x20] sm:$0xff]   ;;  %5467 = vmatprep.subr.bf16.mxu1 %v9455_v54 }
 0x1dd   : > { %6047 = vpow2.f32 %v4927_v14  ;;  %v1842_v38 = vadd.f32 %v1812_v1, %v9563_v13  ;;  %v1481_v39 = vmul.f32 %v5330_v45, %v7415_v2  ;;  %v1649_v61 = vmul.f32 %v5330_v45, %v7406_v4  ;;  %v5331_v62 = vpop.f32.mrb[100].mxu1 }
 0x1de   : > { %v6038_v17 = vpop.eup %6037  ;;  %v2190_v3 = vadd.f32 %v2189_v41, %v7652_v47  ;;  %v4928_v10 = vmul.f32 -1.442695, %v7655_v30  ;;  %v1874_v6 = vadd.f32 %v1680_v55, %v1508_v7  ;;  %v1813_v40 = vmul.f32 %v5330_v45, %v7428_v8  ;;  %v5332_v57 = vpop.f32.mrb[101].mxu1  ;;  %v9566_v41 = vld [vmem:[#allocation30_spill] sm:$0xff] }
 0x1df   : > { %v6040_v19 = vpop.eup %6039  ;;  %v7669_v26 = vmul.f32 %v6038_v17, %v7534_v59  ;;  %v1904_v49 = vadd.f32 %v1872_v31, %v1842_v38  ;;  %v1511_v35 = vadd.f32 %v1481_v39, %v9564_v18  ;;  %v1681_v28 = vadd.f32 %v1649_v61, %v9565_v11  ;;  %v5334_v24 = vpop.f32.mrb[102].mxu1  ;;  %5468 = vmatpush3.bf16.msra.mxu1 %v5871_v29  ;;  %v5872_v31 = vld [vmem:[%s9436_s7 + $0x28] sm:$0xff]  }
 0x1e0   : > { %v2067_v56 = vadd.f32 1.0, %v6040_v19  ;;  %6049 = vpow2.f32 %v4928_v10  ;;  %v1843_v53 = vadd.f32 %v1813_v40, %v9566_v41  ;;  %v5333_v7 = vadd.f32 %v5332_v57, %v5331_v62  ;;  %v5335_v12 = vpop.f32.mrb[103].mxu1  ;;  %5469 = vmatprep.subr.bf16.mxu1 %v9455_v54  ;;  %v9568_v10 = vld [vmem:[#allocation32_spill] sm:$0xff]  ;;  %v9569_v19 = vld [vmem:[#allocation33_spill] sm:$0xff]  ;;  %v9570_v18 = vld [vmem:[#allocation34_spill] sm:$0xff] }
 0x1e1   : > { %v2191_v14 = vadd.f32 %v2190_v3, %v7669_v26  ;;  %v7676_v52 = vadd.f32 %v7440_v27, %v1904_v49  ;;  %v1875_v59 = vadd.f32 %v1681_v28, %v7624_v36  ;;  %v5336_v1 = vadd.f32 %v5335_v12, %v5334_v24 }
 0x1e2   : > { %6051 = vrcp.f32 %v2067_v56  ;;  %v1905_v45 = vadd.f32 %v1873_v50, %v1843_v53  ;;  %v1482_v15 = vmul.f32 %v5333_v7, %v7415_v2  ;;  %v1650_v55 = vmul.f32 %v5333_v7, %v7406_v4  ;;  %v9567_v50 = vld [vmem:[#allocation31_spill] sm:$0xff] }
 0x1e3   : > { %v6042_v13 = vpop.eup %6041  ;;  %v4929_v38 = vmul.f32 -1.442695, %v7676_v52  ;;  %v1814_v39 = vmul.f32 %v5333_v7, %v7428_v8  ;;  %v1483_v36 = vmul.f32 %v5336_v1, %v7415_v2  ;;  %v1651_v61 = vmul.f32 %v5336_v1, %v7406_v4  ;;  %5470 = vmatpush3.bf16.msra.mxu1 %v5872_v31  ;;  %v9571_v53 = vld [vmem:[#allocation35_spill] sm:$0xff] }
 0x1e4   : > { %v6044_v62 = vpop.eup %6043  ;;  %v2068_v29 = vadd.f32 1.0, %v6042_v13  ;;  %v7690_v17 = vadd.f32 %v7440_v27, %v1905_v45  ;;  %v1512_v3 = vadd.f32 %v1482_v15, %v9567_v50  ;;  %v1682_v40 = vadd.f32 %v1650_v55, %v9568_v10  ;;  %5471 = vmatprep.subr.bf16.mxu1 %v9455_v54 }
 0x1e5   : > { %v7695_v57 = vmul.f32 %v6044_v62, %v7562_v63  ;;  %6053 = vpow2.f32 %v4929_v38  ;;  %v1844_v49 = vadd.f32 %v1814_v39, %v9569_v19  ;;  %v1513_v11 = vadd.f32 %v1483_v36, %v9570_v18  ;;  %v5337_v28 = vpop.f32.mrb[104].mxu1 }
 0x1e6   : > { %v6046_v24 = vpop.eup %6045  ;;  %6055 = vrcp.f32 %v2068_v29  ;;  %v4930_v56 = vmul.f32 -1.442695, %v7690_v17  ;;  %v1876_v41 = vadd.f32 %v1682_v40, %v1510_v5  ;;  %v1683_v7 = vadd.f32 %v1651_v61, %v9571_v53  ;;  %v5338_v12 = vpop.f32.mrb[105].mxu1  ;;  %v9572_v29 = vld [vmem:[#allocation36_spill] sm:$0xff] }
 0x1e7   : > { %v6048_v45 = vpop.eup %6047  ;;  %v2192_v63 = vadd.f32 %v2191_v14, %v7695_v57  ;;  %v7704_v15 = vmul.f32 %v6046_v24, %v7572_v48  ;;  %v1906_v55 = vadd.f32 %v1874_v6, %v1844_v49  ;;  %v1815_v13 = vmul.f32 %v5336_v1, %v7428_v8  ;;  %v5340_v31 = vpop.f32.mrb[106].mxu1 }
 0x1e8   : > { %v2069_v38 = vadd.f32 1.0, %v6048_v45  ;;  %6057 = vpow2.f32 %v4930_v56  ;;  %v1877_v39 = vadd.f32 %v1683_v7, %v1511_v35  ;;  %v5339_v36 = vadd.f32 %v5338_v12, %v5337_v28  ;;  %v5341_v5 = vpop.f32.mrb[107].mxu1  ;;  %v9573_v28 = vld [vmem:[#allocation37_spill] sm:$0xff]  ;;  %v9574_v56 = vld [vmem:[#allocation38_spill] sm:$0xff]  ;;  %v9575_v7 = vld [vmem:[#allocation39_spill] sm:$0xff] }
 0x1e9   : > { %v2193_v61 = vadd.f32 %v2192_v63, %v7704_v15  ;;  %v7709_v62 = vadd.f32 %v7440_v27, %v1906_v55  ;;  %v1845_v50 = vadd.f32 %v1815_v13, %v9572_v29  ;;  %v5342_v14 = vadd.f32 %v5341_v5, %v5340_v31  ;;  %v9576_v13 = vld [vmem:[#allocation40_spill] sm:$0xff]  ;;  %v9577_v5 = vld [vmem:[#allocation41_spill] sm:$0xff] }
 0x1ea   : > { %v6050_v10 = vpop.eup %6049  ;;  %6059 = vrcp.f32 %v2069_v38  ;;  %v1484_v48 = vmul.f32 %v5339_v36, %v7415_v2  ;;  %v1652_v6 = vmul.f32 %v5339_v36, %v7406_v4  ;;  %v1816_v1 = vmul.f32 %v5339_v36, %v7428_v8 }
 0x1eb   : > { %v2070_v40 = vadd.f32 1.0, %v6050_v10  ;;  %v4931_v35 = vmul.f32 -1.442695, %v7709_v62  ;;  %v1907_v19 = vadd.f32 %v1875_v59, %v1845_v50  ;;  %v1485_v49 = vmul.f32 %v5342_v14, %v7415_v2 }
 0x1ec   : > { %v6052_v18 = vpop.eup %6051  ;;  %v1514_v24 = vadd.f32 %v1484_v48, %v9573_v28  ;;  %v1684_v53 = vadd.f32 %v1652_v6, %v9574_v56  ;;  %v1846_v12 = vadd.f32 %v1816_v1, %v9575_v7  ;;  %v1653_v45 = vmul.f32 %v5342_v14, %v7406_v4  ;;  %v9578_v28 = vld [vmem:[#allocation42_spill] sm:$0xff] }
 0x1ed   : > { %v7722_v63 = vmul.f32 %v6052_v18, %v7601_v51  ;;  %6061 = vrcp.f32 %v2070_v40  ;;  %v7725_v55 = vadd.f32 %v7440_v27, %v1907_v19  ;;  %v1515_v59 = vadd.f32 %v1485_v49, %v9576_v13  ;;  %v5343_v31 = vpop.f32.mrb[108].mxu1 }
 0x1ee   : > { %6063 = vpow2.f32 %v4931_v35  ;;  %v1878_v38 = vadd.f32 %v1684_v53, %v1512_v3  ;;  %v1908_v36 = vadd.f32 %v1876_v41, %v1846_v12  ;;  %v1685_v29 = vadd.f32 %v1653_v45, %v9577_v5  ;;  %v5344_v50 = vpop.f32.mrb[109].mxu1 }
 0x1ef   : > { %v6054_v10 = vpop.eup %6053  ;;  %v4932_v48 = vmul.f32 -1.442695, %v7725_v55  ;;  %v1817_v6 = vmul.f32 %v5342_v14, %v7428_v8  ;;  %v5345_v51 = vadd.f32 %v5344_v50, %v5343_v31  ;;  %v5346_v1 = vpop.f32.mrb[110].mxu1  ;;  %v2194_v19 = vadd.f32 %v2193_v61, %v7722_v63 }
 0x1f0   : > { %v6056_v40 = vpop.eup %6055  ;;  %v2071_v18 = vadd.f32 1.0, %v6054_v10  ;;  %v7733_v49 = vadd.f32 %v7440_v27, %v1908_v36  ;;  %v1879_v35 = vadd.f32 %v1685_v29, %v1513_v11  ;;  %v5347_v3 = vpop.f32.mrb[111].mxu1  ;;  %v9579_v11 = vld [vmem:[#allocation43_spill] sm:$0xff]  ;;  %v9581_v29 = vld [vmem:[#allocation45_spill] sm:$0xff] }
 0x1f1   : > { %v7736_v41 = vmul.f32 %v6056_v40, %v7620_v25  ;;  %6065 = vpow2.f32 %v4932_v48  ;;  %v1847_v56 = vadd.f32 %v1817_v6, %v9578_v28  ;;  %v1486_v53 = vmul.f32 %v5345_v51, %v7415_v2  ;;  %v9580_v25 = vld [vmem:[#allocation44_spill] sm:$0xff] }
 0x1f2   : > { %v6058_v14 = vpop.eup %6057  ;;  %6067 = vrcp.f32 %v2071_v18  ;;  %v4933_v7 = vmul.f32 -1.442695, %v7733_v49  ;;  %v1654_v61 = vmul.f32 %v5345_v51, %v7406_v4  ;;  %v1818_v12 = vmul.f32 %v5345_v51, %v7428_v8 }
 0x1f3   : > { %v2072_v45 = vadd.f32 1.0, %v6058_v14  ;;  %v1909_v13 = vadd.f32 %v1877_v39, %v1847_v56  ;;  %v1516_v31 = vadd.f32 %v1486_v53, %v9579_v11  ;;  %v5348_v10 = vadd.f32 %v5347_v3, %v5346_v1 }
 0x1f4   : > { %v6060_v36 = vpop.eup %6059  ;;  %6069 = vpow2.f32 %v4933_v7  ;;  %v1686_v5 = vadd.f32 %v1654_v61, %v9580_v25  ;;  %v1848_v50 = vadd.f32 %v1818_v12, %v9581_v29  ;;  %v2195_v48 = vadd.f32 %v2194_v19, %v7736_v41 }
 0x1f5   : > { %v7748_v6 = vmul.f32 %v6060_v36, %v7640_v37  ;;  %6071 = vrcp.f32 %v2072_v45  ;;  %v7751_v40 = vadd.f32 %v7440_v27, %v1909_v13  ;;  %v5349_v51 = vpop.f32.mrb[112].mxu1  ;;  %v1487_v28 = vmul.f32 %v5348_v10, %v7415_v2  ;;  %v9583_v13 = vld [vmem:[#allocation47_spill] sm:$0xff] }
 0x1f6   : > { %v1880_v39 = vadd.f32 %v1686_v5, %v1514_v24  ;;  %v1910_v18 = vadd.f32 %v1878_v38, %v1848_v50  ;;  %v1655_v56 = vmul.f32 %v5348_v10, %v7406_v4  ;;  %v5350_v53 = vpop.f32.mrb[113].mxu1  ;;  %v1819_v37 = vmul.f32 %v5348_v10, %v7428_v8  ;;  %v9582_v38 = vld [vmem:[#allocation46_spill] sm:$0xff]  ;;  %v9584_v5 = vld [vmem:[#allocation48_spill] sm:$0xff] }
 0x1f7   : > { %v6062_v14 = vpop.eup %6061  ;;  %v2196_v1 = vadd.f32 %v2195_v48, %v7748_v6  ;;  %v4934_v19 = vmul.f32 -1.442695, %v7751_v40  ;;  %v5351_v3 = vadd.f32 %v5350_v53, %v5349_v51  ;;  %v5352_v7 = vpop.f32.mrb[114].mxu1  ;;  %v1517_v45 = vadd.f32 %v1487_v28, %v9582_v38  ;;  %v9585_v53 = vld [vmem:[#allocation49_spill] sm:$0xff] }
 0x1f8   : > { %v6064_v61 = vpop.eup %6063  ;;  %v7759_v12 = vmul.f32 %v6062_v14, %v7655_v30  ;;  %v7762_v24 = vadd.f32 %v7440_v27, %v1910_v18  ;;  %v1687_v11 = vadd.f32 %v1655_v56, %v9583_v13  ;;  %v5353_v36 = vpop.f32.mrb[115].mxu1  ;;  %v1849_v29 = vadd.f32 %v1819_v37, %v9584_v5 }
 0x1f9   : > { %v2073_v25 = vadd.f32 1.0, %v6064_v61  ;;  %6073 = vpow2.f32 %v4934_v19  ;;  %v1488_v50 = vmul.f32 %v5351_v3, %v7415_v2  ;;  %v1656_v30 = vmul.f32 %v5351_v3, %v7406_v4  ;;  %v9586_v19 = vld [vmem:[#allocation50_spill] sm:$0xff] }
 0x1fa   : > { %v4935_v10 = vmul.f32 -1.442695, %v7762_v24  ;;  %v1881_v48 = vadd.f32 %v1687_v11, %v1515_v59  ;;  %v1911_v18 = vadd.f32 %v1879_v35, %v1849_v29  ;;  %v1820_v28 = vmul.f32 %v5351_v3, %v7428_v8  ;;  %v9588_v11 = vld [vmem:[#allocation51_spill] sm:$0xff] }
 0x1fb   : > { %v6066_v51 = vpop.eup %6065  ;;  %6075 = vrcp.f32 %v2073_v25  ;;  %v1518_v14 = vadd.f32 %v1488_v50, %v9585_v53  ;;  %v1688_v61 = vadd.f32 %v1656_v30, %v9586_v19  ;;  %v5354_v37 = vadd.f32 %v5353_v36, %v5352_v7  ;;  %v9589_v53 = vld [vmem:[#allocation52_spill] sm:$0xff] }
 0x1fc   : > { %v6068_v56 = vpop.eup %6067  ;;  %v2074_v38 = vadd.f32 1.0, %v6066_v51  ;;  %6077 = vpow2.f32 %v4935_v10  ;;  %v2197_v13 = vadd.f32 %v2196_v1, %v7759_v12  ;;  %v7778_v59 = vadd.f32 %v7440_v27, %v1911_v18 }
 0x1fd   : > { %v7775_v5 = vmul.f32 %v6068_v56, %v7676_v52  ;;  %v1850_v35 = vadd.f32 %v1820_v28, %v9588_v11  ;;  %v5355_v25 = vpop.f32.mrb[116].mxu1  ;;  %v1882_v3 = vadd.f32 %v1688_v61, %v1516_v31  ;;  %v1489_v50 = vmul.f32 %v5354_v37, %v7415_v2  ;;  %v9590_v28 = vld [vmem:[#allocation53_spill] sm:$0xff] }
 0x1fe   : > { %v6070_v29 = vpop.eup %6069  ;;  %6079 = vrcp.f32 %v2074_v38  ;;  %v1657_v10 = vmul.f32 %v5354_v37, %v7406_v4  ;;  %v5356_v30 = vpop.f32.mrb[117].mxu1  ;;  %v4936_v1 = vmul.f32 -1.442695, %v7778_v59  ;;  %v1821_v38 = vmul.f32 %v5354_v37, %v7428_v8 }
 0x1ff   : > { %9587 = vst [vmem:[#allocation12_spill] sm:$0xff] %v7775_v5  ;;  %v6072_v7 = vpop.eup %6071  ;;  %v2075_v36 = vadd.f32 1.0, %v6070_v29  ;;  %v1912_v52 = vadd.f32 %v1880_v39, %v1850_v35  ;;  %v5358_v51 = vpop.f32.mrb[118].mxu1  ;;  %v2198_v18 = vadd.f32 %v2197_v13, %v7775_v5  ;;  %v1519_v56 = vadd.f32 %v1489_v50, %v9589_v53  ;;  %v9591_v39 = vld [vmem:[#allocation54_spill] sm:$0xff] }
 0x200   : > { %v1689_v19 = vadd.f32 %v1657_v10, %v9590_v28  ;;  %v5359_v31 = vpop.f32.mrb[119].mxu1  ;;  %v5357_v11 = vadd.f32 %v5356_v30, %v5355_v25  ;;  %v7792_v29 = vmul.f32 %v6072_v7, %v7690_v17  ;;  %v1851_v35 = vadd.f32 %v1821_v38, %v9591_v39  ;;  %v9592_v7 = vld [vmem:[#allocation55_spill] sm:$0xff]  ;;  %v9594_v28 = vld [vmem:[#allocation57_spill] sm:$0xff] }
 0x201   : > { %6081 = vrcp.f32 %v2075_v36  ;;  %v7789_v61 = vadd.f32 %v7440_v27, %v1912_v52  ;;  %v5360_v54 = vadd.f32 %v5359_v31, %v5358_v51 }
 0x202   : > { %6083 = vpow2.f32 %v4936_v1  ;;  %v1883_v13 = vadd.f32 %v1689_v19, %v1517_v45  ;;  %v1490_v10 = vmul.f32 %v5357_v11, %v7415_v2  ;;  %v1658_v37 = vmul.f32 %v5357_v11, %v7406_v4  ;;  %v9593_v45 = vld [vmem:[#allocation56_spill] sm:$0xff] }
 0x203   : > { %v6074_v5 = vpop.eup %6073  ;;  %v4937_v50 = vmul.f32 -1.442695, %v7789_v61  ;;  %v1822_v36 = vmul.f32 %v5357_v11, %v7428_v8  ;;  %v1913_v53 = vadd.f32 %v1881_v48, %v1851_v35  ;;  %v1491_v25 = vmul.f32 %v5360_v54, %v7415_v2 }
 0x204   : > { %v2076_v52 = vadd.f32 1.0, %v6074_v5  ;;  %v1659_v17 = vmul.f32 %v5360_v54, %v7406_v4  ;;  %v7802_v1 = vadd.f32 %v1490_v10, %v9592_v7  ;;  %v1690_v51 = vadd.f32 %v1658_v37, %v9593_v45  ;;  %v9595_v5 = vld [vmem:[#allocation58_spill] sm:$0xff]  ;;  %v9596_v37 = vld [vmem:[#allocation59_spill] sm:$0xff] }
 0x205   : > { %v6076_v30 = vpop.eup %6075  ;;  %6085 = vpow2.f32 %v4937_v50  ;;  %v1852_v19 = vadd.f32 %v1822_v36, %v9594_v28  ;;  %v5361_v38 = vpop.f32.mrb[120].mxu1  ;;  %v2199_v39 = vadd.f32 %v2198_v18, %v7792_v29  ;;  %v7811_v48 = vadd.f32 %v7440_v27, %v1913_v53 }
 0x206   : > { %v6078_v31 = vpop.eup %6077  ;;  %v7808_v8 = vmul.f32 %v6076_v30, %v7709_v62  ;;  %v7814_v11 = vadd.f32 %v1491_v25, %v9595_v5  ;;  %v5362_v35 = vpop.f32.mrb[121].mxu1  ;;  %6087 = vrcp.f32 %v2076_v52  ;;  %v1884_v50 = vadd.f32 %v1690_v51, %v1518_v14  ;;  %v7821_v62 = vld [vmem:[%s9432_s3 + $0x8] ss:$0 sm:$0xff]  ;;  %v9597_v51 = vld [vmem:[#allocation60_spill] sm:$0xff] }
 0x207   : > { %v1914_v10 = vadd.f32 %v1882_v3, %v1852_v19  ;;  %v1691_v7 = vadd.f32 %v1659_v17, %v9596_v37  ;;  %v5364_v36 = vpop.f32.mrb[122].mxu1  ;;  %v2077_v28 = vadd.f32 1.0, %v6078_v31  ;;  %v4938_v18 = vmul.f32 -1.442695, %v7811_v48 }
 0x208   : > { %v6080_v45 = vpop.eup %6079  ;;  %v1823_v53 = vmul.f32 %v7821_v62, %v5360_v54  ;;  %v5363_v25 = vadd.f32 %v5362_v35, %v5361_v38  ;;  %v5365_v30 = vpop.f32.mrb[123].mxu1  ;;  %v2200_v52 = vadd.f32 %v2199_v39, %v7808_v8 }
 0x209   : > { %v7826_v14 = vmul.f32 %v6080_v45, %v7725_v55  ;;  %v7829_v3 = vadd.f32 %v7440_v27, %v1914_v10  ;;  %v1885_v17 = vadd.f32 %v1691_v7, %v1519_v56  ;;  %6089 = vpow2.f32 %v4938_v18 }
 0x20a   : > { %v1853_v19 = vadd.f32 %v1823_v53, %v9597_v51  ;;  %v1492_v31 = vmul.f32 %v5363_v25, %v7415_v2  ;;  %v1660_v5 = vmul.f32 %v5363_v25, %v7406_v4  ;;  %v1824_v38 = vmul.f32 %v7821_v62, %v5363_v25 }
 0x20b   : > { %v6082_v37 = vpop.eup %6081  ;;  %v4939_v54 = vmul.f32 -1.442695, %v7829_v3  ;;  %v5366_v39 = vadd.f32 %v5365_v30, %v5364_v36  ;;  %6091 = vrcp.f32 %v2077_v28  ;;  %v2201_v53 = vadd.f32 %v2200_v52, %v7826_v14  ;;  %v6532_v36 = vld [vmem:[%s9433_s4] ss:$0 sm:$0xff] }
 0x20c   : > { %v6084_v35 = vpop.eup %6083  ;;  %v1915_v55 = vadd.f32 %v1883_v13, %v1853_v19  ;;  %v1522_v27 = vadd.f32 %v1492_v31, %v7376_v33  ;;  %v1692_v56 = vadd.f32 %v1660_v5, %v7378_v20  ;;  %v1854_v7 = vadd.f32 %v1824_v38, %v7380_v42 }
 0x20d   : > { %v2078_v10 = vadd.f32 1.0, %v6084_v35  ;;  %6093 = vpow2.f32 %v4939_v54  ;;  %v1493_v45 = vmul.f32 %v5366_v39, %v7415_v2  ;;  %v5367_v18 = vpop.f32.mrb[124].mxu1  ;;  %v1661_v13 = vmul.f32 %v5366_v39, %v7406_v4 }
 0x20e   : > { %v7844_v25 = vadd.f32 %v6532_v36, %v1915_v55  ;;  %v1825_v33 = vmul.f32 %v7821_v62, %v5366_v39  ;;  %v5368_v20 = vpop.f32.mrb[125].mxu1  ;;  %v7849_v30 = vmul.f32 %v6082_v37, %v7733_v49  ;;  %v1916_v42 = vadd.f32 %v1884_v50, %v1854_v7 }
 0x20f   : > { %v6086_v28 = vpop.eup %6085  ;;  %v1523_v2 = vadd.f32 %v1493_v45, %v7385_v16  ;;  %v5369_v51 = vadd.f32 %v5368_v20, %v5367_v18  ;;  %v5370_v52 = vpop.f32.mrb[126].mxu1  ;;  %v1693_v5 = vadd.f32 %v1661_v13, %v7387_v34  ;;  %6095 = vrcp.f32 %v2078_v10 }
 0x210   : > { %v2079_v19 = vadd.f32 1.0, %v6086_v28  ;;  %v4940_v31 = vmul.f32 -1.442695, %v7844_v25  ;;  %v1855_v54 = vadd.f32 %v1825_v33, %v7389_v0  ;;  %v5371_v38 = vpop.f32.mrb[127].mxu1  ;;  %v6088_v35 = vpop.eup %6087  ;;  %v7855_v39 = vadd.f32 %v6532_v36, %v1916_v42 }
 0x211   : > { %v1662_v49 = vmul.f32 %v5369_v51, %v7406_v4  ;;  %v1826_v50 = vmul.f32 %v7821_v62, %v5369_v51  ;;  %v1886_v37 = vadd.f32 %v1692_v56, %v7802_v1  ;;  %v5372_v55 = vadd.f32 %v5371_v38, %v5370_v52 }
 0x212   : > { %6097 = vrcp.f32 %v2079_v19  ;;  %v1917_v16 = vadd.f32 %v1885_v17, %v1855_v54  ;;  %v4941_v7 = vmul.f32 -1.442695, %v7855_v39  ;;  %v2202_v45 = vadd.f32 %v2201_v53, %v7849_v30 }
 0x213   : > { %6099 = vpow2.f32 %v4940_v31  ;;  %v1694_v34 = vadd.f32 %v1662_v49, %v7399_v58  ;;  %v6090_v0 = vpop.eup %6089  ;;  %v1856_v18 = vadd.f32 %v1826_v50, %v7401_v22  ;;  %v1663_v13 = vmul.f32 %v5372_v55, %v7406_v4 }
 0x214   : > { %v7863_v10 = vadd.f32 %v6532_v36, %v1917_v16  ;;  %v2080_v33 = vadd.f32 1.0, %v6090_v0  ;;  %6101 = vpow2.f32 %v4941_v7  ;;  %v1827_v1 = vmul.f32 %v7821_v62, %v5372_v55 }
 0x215   : > { %v1888_v17 = vadd.f32 %v1694_v34, %v1522_v27  ;;  %v6092_v56 = vpop.eup %6091  ;;  %v7869_v20 = vmul.f32 %v6088_v35, %v7751_v40  ;;  %v1918_v28 = vadd.f32 %v1886_v37, %v1856_v18  ;;  %v1695_v53 = vadd.f32 %v1663_v13, %v7408_v23 }
 0x216   : > { %v4942_v58 = vmul.f32 -1.442695, %v7863_v10  ;;  %6103 = vrcp.f32 %v2080_v33  ;;  %v1857_v22 = vadd.f32 %v1827_v1, %v7410_v43  ;;  %v1887_v4 = vadd.f32 %v1693_v5, %v7814_v11 }
 0x217   : > { %v6094_v42 = vpop.eup %6093  ;;  %v7873_v51 = vadd.f32 %v6532_v36, %v1888_v17  ;;  %v1957_v62 = vadd.f32 %v6532_v36, %v1918_v28  ;;  %v1889_v52 = vadd.f32 %v1695_v53, %v1523_v2  ;;  %v7879_v31 = vmul.f32 %v6092_v56, %v7762_v24 }
 0x218   : > { %v2081_v27 = vadd.f32 1.0, %v6094_v42  ;;  %6105 = vpow2.f32 %v4942_v58  ;;  %v1919_v19 = vadd.f32 %v1887_v4, %v1857_v22  ;;  %v2203_v43 = vadd.f32 %v2202_v45, %v7869_v20 }
 0x219   : > { %v4945_v40 = vmul.f32 -1.442695, %v7873_v51  ;;  %v4943_v23 = vmul.f32 -1.442695, %v1957_v62  ;;  %v1960_v54 = vadd.f32 %v6532_v36, %v1889_v52  ;;  %v6096_v38 = vpop.eup %6095 }
 0x21a   : > { %6107 = vrcp.f32 %v2081_v27  ;;  %v1958_v35 = vadd.f32 %v6532_v36, %v1919_v19  ;;  %v2204_v2 = vadd.f32 %v2203_v43, %v7879_v31  ;;  %v7884_v16 = vmul.f32 %v6096_v38, %v7778_v59 }
 0x21b   : > { %6109 = vpow2.f32 %v4945_v40  ;;  %v4946_v11 = vmul.f32 -1.442695, %v1960_v54 }
 0x21c   : > { %v6098_v49 = vpop.eup %6097  ;;  %6111 = vpow2.f32 %v4943_v23  ;;  %v4944_v50 = vmul.f32 -1.442695, %v1958_v35  ;;  %v2205_v0 = vadd.f32 %v2204_v2, %v7884_v16 }
 0x21d   : > { %v6100_v5 = vpop.eup %6099  ;;  %6113 = vpow2.f32 %v4946_v11  ;;  %v7887_v55 = vmul.f32 %v6098_v49, %v7789_v61 }
 0x21e   : > { %v2082_v24 = vadd.f32 1.0, %v6100_v5  ;;  %v6102_v37 = vpop.eup %6101  ;;  %6115 = vpow2.f32 %v4944_v50 }
 0x21f   : > { %v2083_v36 = vadd.f32 1.0, %v6102_v37  ;;  %v2206_v13 = vadd.f32 %v2205_v0, %v7887_v55 }
 0x220   : > { %6117 = vrcp.f32 %v2082_v24  ;;  %v6104_v7 = vpop.eup %6103 }
 0x221   : > { %6119 = vrcp.f32 %v2083_v36  ;;  %v7892_v59 = vmul.f32 %v6104_v7, %v7811_v48 }
 0x222   : > { %v6106_v34 = vpop.eup %6105 }
 0x223   : > { %v2084_v45 = vadd.f32 1.0, %v6106_v34  ;;  %v2207_v28 = vadd.f32 %v2206_v13, %v7892_v59 }
 0x224   : > { %v6108_v18 = vpop.eup %6107 }
 0x225   : > { %v6110_v33 = vpop.eup %6109  ;;  %6121 = vrcp.f32 %v2084_v45  ;;  %v7895_v61 = vmul.f32 %v6108_v18, %v7829_v3 }
 0x226   : > { %v6112_v17 = vpop.eup %6111  ;;  %v2087_v56 = vadd.f32 1.0, %v6110_v33 }
 0x227   : > { %v2085_v1 = vadd.f32 1.0, %v6112_v17  ;;  %v6114_v58 = vpop.eup %6113  ;;  %v2208_v22 = vadd.f32 %v2207_v28, %v7895_v61  ;;  %v9598_v17 = vmov 0.0  }
 0x228   : > { %v6116_v53 = vpop.eup %6115  ;;  %v2088_v27 = vadd.f32 1.0, %v6114_v58 }
 0x229   : > { %6123 = vrcp.f32 %v2085_v1  ;;  %v2086_v4 = vadd.f32 1.0, %v6116_v53  ;;  %v2241_v1 = vld [vmem:[%s9435_s6] sm:$0x1] }
 0x22a   : > { %v6118_v42 = vpop.eup %6117  ;;  %6125 = vrcp.f32 %v2087_v56 }
 0x22b   : > { %v7900_v48 = vmul.f32 %v6118_v42, %v7844_v25  ;;  %v6120_v52 = vpop.eup %6119  ;;  %6127 = vrcp.f32 %v2086_v4 }
 0x22c   : > { %v7903_v3 = vmul.f32 %v6120_v52, %v7855_v39  ;;  %6129 = vrcp.f32 %v2088_v27 }
 0x22d   : > { %v2209_v40 = vadd.f32 %v2208_v22, %v7900_v48 }
 0x22f   : > { %v6122_v19 = vpop.eup %6121  ;;  %v2210_v23 = vadd.f32 %v2209_v40, %v7903_v3 }
 0x230   : > { %v7908_v38 = vmul.f32 %v6122_v19, %v7863_v10 }
 0x232   : > { %v2211_v25 = vadd.f32 %v2210_v23, %v7908_v38  ;;  %v5875_v23 = vld [vmem:[%s9438_s9] sm:$0xff]  }
 0x233   : > { %v6124_v49 = vpop.eup %6123  ;;  %5479 = vmatprep.subr.bf16.mxu0 %v5875_v23 }
 0x234   : > { %v7910_v43 = vmul.f32 %v6124_v49, %v1957_v62  ;;  %v6126_v11 = vpop.eup %6125  ;;  %v5876_v49 = vld [vmem:[%s9438_s9 + $0x8] sm:$0xff]  }
 0x235   : > { %v6128_v5 = vpop.eup %6127  ;;  %v7917_v24 = vmul.f32 %v6126_v11, %v7873_v51  ;;  %v5873_v51 = vld [vmem:[%s9436_s7 + $0x30] sm:$0xff]   ;;  %v5878_v11 = vld [vmem:[%s9438_s9 + $0x18] sm:$0xff]  }
 0x236   : > { %v2212_v50 = vadd.f32 %v2211_v25, %v7910_v43  ;;  %v7914_v39 = vmul.f32 %v6128_v5, %v1958_v35  ;;  %v6130_v2 = vpop.eup %6129  ;;  %5472 = vmatpush3.bf16.msra.mxu1 %v5873_v51  ;;  %v5877_v25 = vld [vmem:[%s9438_s9 + $0x10] sm:$0xff]   ;;  %v5879_v5 = vld [vmem:[%s9438_s9 + $0x20] sm:$0xff]  }
 0x237   : > { %v7920_v36 = vmul.f32 %v6130_v2, %v1960_v54  ;;  %v5874_v54 = vld [vmem:[%s9436_s7 + $0x38] sm:$0xff]   ;;  %5473 = vmatprep.subr.bf16.mxu1 %v9598_v17  ;;  %v5881_v2 = vld [vmem:[%s9438_s9 + $0x30] sm:$0xff]   ;;  %v5899_v51 = vld [vmem:[%s9440_s11 + $0x60] ss:$12 sps:$4 sm:$0xff]  }
 0x238   : > { %v2213_v37 = vadd.f32 %v2212_v50, %v7914_v39  ;;  %v5880_v50 = vld [vmem:[%s9438_s9 + $0x28] sm:$0xff]   ;;  %v5903_v17 = vld [vmem:[%s9440_s11 + $0x78] ss:$12 sps:$4 sm:$0xff]  }
 0x23a   : > { %v2214_v10 = vadd.f32 %v2213_v37, %v7917_v24  ;;  %5474 = vmatpush3.bf16.msra.mxu1 %v5874_v54  ;;  %v5882_v37 = vld [vmem:[%s9438_s9 + $0x38] sm:$0xff]  }
 0x23b   : > { %v5905_v54 = vld [vmem:[%s9440_s11 + $0x7c] ss:$12 sps:$4 sm:$0xff]  }
 0x23c   : > { %v2215_v62 = vadd.f32 %v2214_v10, %v7920_v36  ;;  %v5883_v10 = vld [vmem:[%s9440_s11] ss:$12 sps:$4 sm:$0xff]  }
 0x23e   : > { %v2216_v7 = vrot.slane %v2215_v62, 4 }
 0x240   : > { %v2217_v34 = vadd.f32 %v2216_v7, %v2215_v62  ;;  %v5885_v62 = vld [vmem:[%s9440_s11 + $0x4] ss:$12 sps:$4 sm:$0xff]   ;;  %v5886_v7 = vld [vmem:[%s9440_s11 + $0x8] ss:$12 sps:$4 sm:$0xff]  }
 0x241   : > { %2926 = vmatprep.subr.bf16.mxu1 %v5885_v62 }
 0x242   : > { %v2218_v0 = vrot.slane %v2217_v34, 2 }
 0x244   : > { %v2219_v45 = vadd.f32 %v2218_v0, %v2217_v34  ;;  %v5889_v34 = vld [vmem:[%s9440_s11 + $0x1c] ss:$12 sps:$4 sm:$0xff]   ;;  %v5887_v0 = vld [vmem:[%s9440_s11 + $0x18] ss:$12 sps:$4 sm:$0xff]  }
 0x246   : > { %v2220_v18 = vrot.slane %v2219_v45, 1 }
 0x248   : > { %v2221_v13 = vadd.f32 %v2220_v18, %v2219_v45  ;;  %v5893_v45 = vld [vmem:[%s9440_s11 + $0x34] ss:$12 sps:$4 sm:$0xff]   ;;  %v5891_v18 = vld [vmem:[%s9440_s11 + $0x30] ss:$12 sps:$4 sm:$0xff]  }
 0x24a   : > { %v2223_v35 = vmul.f32 0.00390625, %v2221_v13  ;;  %v5897_v13 = vld [vmem:[%s9440_s11 + $0x4c] ss:$12 sps:$4 sm:$0xff]  }
 0x24c   : > { %v2224_v33 = vpack.c.bf16 %v2223_v35, %v2223_v35  ;;  %v5895_v35 = vld [vmem:[%s9440_s11 + $0x48] ss:$12 sps:$4 sm:$0xff]  }
 0x24e   : > { %5456 = vmatmul.mubr.bf16.vlgmr.msra.gmra.mrb[0].mxu0 %v2224_v33  ;;  %v5901_v33 = vld [vmem:[%s9440_s11 + $0x64] ss:$12 sps:$4 sm:$0xff]  }
 0x24f   : > { %5480 = vmatpush3.bf16.msra.mxu0 %v5875_v23 }
 0x250   : > { %5481 = vmatprep.subr.bf16.mxu0 %v5876_v49 }
 0x253   : > { %5482 = vmatpush3.bf16.msra.mxu0 %v5876_v49 }
 0x254   : > { %5483 = vmatprep.subr.bf16.mxu0 %v5877_v25 }
 0x257   : > { %5484 = vmatpush3.bf16.msra.mxu0 %v5877_v25 }
 0x258   : > { %5485 = vmatprep.subr.bf16.mxu0 %v5878_v11 }
 0x25b   : > { %5486 = vmatpush3.bf16.msra.mxu0 %v5878_v11 }
 0x25c   : > { %5487 = vmatprep.subr.bf16.mxu0 %v5879_v5 }
 0x25f   : > { %5488 = vmatpush3.bf16.msra.mxu0 %v5879_v5 }
 0x260   : > { %5489 = vmatprep.subr.bf16.mxu0 %v5880_v50 }
 0x263   : > { %5490 = vmatpush3.bf16.msra.mxu0 %v5880_v50 }
 0x264   : > { %5491 = vmatprep.subr.bf16.mxu0 %v5881_v2 }
 0x267   : > { %5492 = vmatpush3.bf16.msra.mxu0 %v5881_v2 }
 0x268   : > { %5493 = vmatprep.subr.bf16.mxu0 %v5882_v37 }
 0x26b   : > { %5494 = vmatpush3.bf16.msra.mxu0 %v5882_v37 }
 0x26c   : > { %5527 = vmatprep.subr.bf16.mxu0 %v5886_v7 }
 0x321   : > { %v2324_v56 = vpop.f32.mrb[0].mxu0 }
 0x322   : > { %v2325_v58 = vadd.f32 %v2324_v56, %v2241_v1  ;;  %v5457_v28 = vpop.f32.mrb[1].mxu0  ;;  %v2354_v1 = vld [vmem:[%s9437_s8] sm:$0x1] }
 0x323   : > { %v2327_v53 = vpop.f32.mrb[2].mxu0 }
 0x324   : > { %v4955_v42 = vmul.f32 -1.442695, %v2325_v58  ;;  %v5458_v22 = vpop.f32.mrb[3].mxu0 }
 0x326   : > { %6131 = vpow2.f32 %v4955_v42 }
 0x330   : > { %v6132_v4 = vpop.eup %6131 }
 0x331   : > { %v2333_v27 = vadd.f32 1.0, %v6132_v4 }
 0x333   : > { %6133 = vrcp.f32 %v2333_v27 }
 0x33d   : > { %v6134_v52 = vpop.eup %6133 }
 0x33e   : > { %v2336_v40 = vmul.f32 %v6134_v52, %v2325_v58 }
 0x340   : > { %v2337_v19 = vpack.c.bf16 %v2336_v40, %v2336_v40  ;;  %v9599_v40 = vld [vmem:[#allocation11_spill] sm:$0xff] }
 0x342   : > { %5476 = vmatmul.mubr.bf16.vlgmr.msra.gmra.mrb[128].mxu1 %v2337_v19 }
 0x343   : > { %2927 = vmatpush1.bf16.msra.mxu1 %v5883_v10 }
 0x344   : > { %2928 = vmatprep.subr.bf16.mxu1 %v5889_v34 }
 0x347   : > { %2929 = vmatpush1.bf16.msra.mxu1 %v5887_v0  ;;  %v5902_v0 = vld [vmem:[%s9440_s11 + $0x68] ss:$12 sps:$4 sm:$0xff]  }
 0x348   : > { %2930 = vmatprep.subr.bf16.mxu1 %v5893_v45 }
 0x34b   : > { %2931 = vmatpush1.bf16.msra.mxu1 %v5891_v18 }
 0x34c   : > { %2932 = vmatprep.subr.bf16.mxu1 %v5897_v13 }
 0x34f   : > { %2933 = vmatpush1.bf16.msra.mxu1 %v5895_v35 }
 0x350   : > { %2934 = vmatprep.subr.bf16.mxu1 %v5901_v33 }
 0x353   : > { %2935 = vmatpush1.bf16.msra.mxu1 %v5899_v51 }
 0x354   : > { %2936 = vmatprep.subr.bf16.mxu1 %v5905_v54 }
 0x357   : > { %2937 = vmatpush1.bf16.msra.mxu1 %v5903_v17 }
 0x415   : > { %v2437_v56 = vpop.f32.mrb[128].mxu1 }
 0x416   : > { %v2438_v58 = vadd.f32 %v2437_v56, %v2354_v1  ;;  %v5477_v28 = vpop.f32.mrb[129].mxu1 }
 0x417   : > { %v2440_v53 = vpop.f32.mrb[130].mxu1 }
 0x418   : > { %v4964_v42 = vmul.f32 -1.442695, %v2438_v58  ;;  %v5478_v22 = vpop.f32.mrb[131].mxu1 }
 0x41a   : > { %6135 = vpow2.f32 %v4964_v42 }
 0x424   : > { %v6136_v4 = vpop.eup %6135 }
 0x425   : > { %v2446_v27 = vadd.f32 1.0, %v6136_v4  ;;  %v5914_v4 = vld [vmem:[%s9440_s11 + $0xb0] ss:$12 sps:$4 sm:$0xff]  }
 0x427   : > { %6137 = vrcp.f32 %v2446_v27  ;;  %v9457_v27 = vmov 0  }
 0x428   : > { %2958 = vmatprep.mubr.bf16.mxu1 %v9457_v27 }
 0x431   : > { %v6138_v52 = vpop.eup %6137 }
 0x432   : > { %v8001_v19 = vrot.slane %v6138_v52, %v9599_v40 }
 0x434   : > { %v2453_v23 = vmul.f32 %v8001_v19, %v7545_v46  ;;  %v2454_v49 = vmul.f32 %v8001_v19, %v7551_v9  ;;  %v2455_v25 = vmul.f32 %v8001_v19, %v7569_v44  ;;  %v2456_v11 = vmul.f32 %v8001_v19, %v7587_v32  ;;  %v5890_v46 = vld [vmem:[%s9440_s11 + $0x20] ss:$12 sps:$4 sm:$0xff]  }
 0x435   : > { %v2457_v5 = vmul.f32 %v8001_v19, %v7615_v60  ;;  %v2458_v50 = vmul.f32 %v8001_v19, %v7634_v21  ;;  %v2459_v9 = vmul.f32 %v8001_v19, %v7652_v47  ;;  %v2460_v44 = vmul.f32 %v8001_v19, %v7669_v26  ;;  %v5894_v21 = vld [vmem:[%s9440_s11 + $0x38] ss:$12 sps:$4 sm:$0xff]   ;;  %v5898_v47 = vld [vmem:[%s9440_s11 + $0x50] ss:$12 sps:$4 sm:$0xff]  }
 0x436   : > { %v2485_v2 = vpack.c.bf16 %v2454_v49, %v2453_v23  ;;  %v2486_v37 = vpack.c.bf16 %v2456_v11, %v2455_v25  ;;  %v2461_v32 = vmul.f32 %v8001_v19, %v7695_v57  ;;  %v2462_v60 = vmul.f32 %v8001_v19, %v7704_v15  ;;  %v5917_v23 = vld [vmem:[%s9442_s13 + $0x4] ss:$8 sps:$4 sm:$0xff]  }
 0x437   : > { %v2487_v10 = vpack.c.bf16 %v2458_v50, %v2457_v5  ;;  %v2488_v62 = vpack.c.bf16 %v2460_v44, %v2459_v9  ;;  %v2463_v26 = vmul.f32 %v8001_v19, %v7722_v63  ;;  %v2464_v57 = vmul.f32 %v8001_v19, %v7736_v41  ;;  %v5906_v63 = vld [vmem:[%s9440_s11 + $0x80] ss:$12 sps:$4 sm:$0xff]   ;;  %v9600_v41 = vld [vmem:[#allocation12_spill] sm:$0xff] }
 0x438   : > { %5495 = vmatprep.mubr.bf16.mxu0 %v2485_v2  ;;  %v2489_v34 = vpack.c.bf16 %v2462_v60, %v2461_v32  ;;  %v2465_v15 = vmul.f32 %v8001_v19, %v7748_v6  ;;  %v2467_v6 = vmul.f32 %v8001_v19, %v9600_v41  ;;  %v2469_v13 = vmul.f32 %v8001_v19, %v7808_v8  ;;  %v5915_v9 = vld [vmem:[%s9442_s13] ss:$8 sps:$4 sm:$0xff]   ;;  %v5920_v44 = vld [vmem:[%s9442_s13 + $0x14] ss:$8 sps:$4 sm:$0xff]  }
 0x439   : > { %5496 = vmatmul.mubr.bf16.vlgmr.msra.gmra.mrb[4].mxu0 %v2486_v37  ;;  %v2490_v45 = vpack.c.bf16 %v2464_v57, %v2463_v26  ;;  %v2470_v35 = vmul.f32 %v8001_v19, %v7826_v14  ;;  %v2471_v54 = vmul.f32 %v8001_v19, %v7849_v30  ;;  %v2472_v17 = vmul.f32 %v8001_v19, %v7869_v20  ;;  %v5923_v57 = vld [vmem:[%s9442_s13 + $0x24] ss:$8 sps:$4 sm:$0xff]  }
 0x43a   : > { %5499 = vmatprep.mubr.bf16.mxu0 %v2487_v10  ;;  %5528 = vmatpush3.bf16.msra.mxu0 %v5886_v7  ;;  %v2466_v7 = vmul.f32 %v8001_v19, %v7759_v12  ;;  %v2468_v12 = vmul.f32 %v8001_v19, %v7792_v29  ;;  %v2473_v29 = vmul.f32 %v8001_v19, %v7879_v31 }
 0x43b   : > { %5529 = vmatprep.subr.bf16.mxu0 %v5890_v46  ;;  %v2493_v51 = vpack.c.bf16 %v2470_v35, %v2469_v13  ;;  %v2474_v8 = vmul.f32 %v8001_v19, %v7884_v16  ;;  %v2494_v1 = vpack.c.bf16 %v2472_v17, %v2471_v54  ;;  %v2475_v56 = vmul.f32 %v8001_v19, %v7887_v55  ;;  %v5924_v13 = vld [vmem:[%s9442_s13 + $0x30] ss:$8 sps:$4 sm:$0xff]   ;;  %v5929_v54 = vld [vmem:[%s9442_s13 + $0x44] ss:$8 sps:$4 sm:$0xff]  }
 0x43c   : > { %v2491_v18 = vpack.c.bf16 %v2466_v7, %v2465_v15  ;;  %v2492_v33 = vpack.c.bf16 %v2468_v12, %v2467_v6  ;;  %v2476_v58 = vmul.f32 %v8001_v19, %v7892_v59  ;;  %v2477_v30 = vmul.f32 %v8001_v19, %v7895_v61 }
 0x43d   : > { %v2495_v14 = vpack.c.bf16 %v2474_v8, %v2473_v29  ;;  %v2478_v20 = vmul.f32 %v8001_v19, %v7900_v48  ;;  %v2479_v16 = vmul.f32 %v8001_v19, %v7903_v3  ;;  %v2480_v53 = vmul.f32 %v8001_v19, %v7908_v38  ;;  %v5907_v38 = vld [vmem:[%s9440_s11 + $0x90] ss:$12 sps:$4 sm:$0xff]  }
 0x43e   : > { %5530 = vmatpush3.bf16.msra.mxu0 %v5890_v46  ;;  %v2496_v31 = vpack.c.bf16 %v2476_v58, %v2475_v56  ;;  %v2481_v55 = vmul.f32 %v8001_v19, %v7910_v43  ;;  %v2482_v59 = vmul.f32 %v8001_v19, %v7914_v39  ;;  %v2483_v48 = vmul.f32 %v8001_v19, %v7917_v24  ;;  %v5909_v43 = vld [vmem:[%s9440_s11 + $0x94] ss:$12 sps:$4 sm:$0xff]   ;;  %v5910_v39 = vld [vmem:[%s9440_s11 + $0x98] ss:$12 sps:$4 sm:$0xff]  }
 0x43f   : > { %5531 = vmatprep.subr.bf16.mxu0 %v5894_v21  ;;  %v2497_v28 = vpack.c.bf16 %v2478_v20, %v2477_v30  ;;  %v2498_v61 = vpack.c.bf16 %v2480_v53, %v2479_v16  ;;  %v2484_v22 = vmul.f32 %v8001_v19, %v7920_v36  ;;  %2938 = vmatprep.subr.bf16.mxu1 %v5909_v43  ;;  %v5911_v24 = vld [vmem:[%s9440_s11 + $0xa8] ss:$12 sps:$4 sm:$0xff]   ;;  %v5913_v36 = vld [vmem:[%s9440_s11 + $0xac] ss:$12 sps:$4 sm:$0xff]   ;;  %v8104_v19 = vld [vmem:[%s9439_s10] ss:$0 sm:$0xff] }
 0x440   : > { %v2499_v42 = vpack.c.bf16 %v2482_v59, %v2481_v55  ;;  %2939 = vmatpush1.bf16.msra.mxu1 %v5907_v38  ;;  %v5932_v56 = vld [vmem:[%s9442_s13 + $0x54] ss:$8 sps:$4 sm:$0xff]   ;;  %v5935_v55 = vld [vmem:[%s9442_s13 + $0x64] ss:$8 sps:$4 sm:$0xff]  }
 0x441   : > { %5500 = vmatmul.mubr.bf16.gmra.mrb[8].mxu0 %v2488_v62  ;;  %v2500_v3 = vpack.c.bf16 %v2484_v22, %v2483_v48  ;;  %2940 = vmatprep.subr.bf16.mxu1 %v5913_v36  ;;  %v5918_v62 = vld [vmem:[%s9442_s13 + $0x10] ss:$8 sps:$4 sm:$0xff]   ;;  %v5933_v22 = vld [vmem:[%s9442_s13 + $0x60] ss:$8 sps:$4 sm:$0xff]  }
 0x442   : > { %5503 = vmatprep.mubr.bf16.mxu0 %v2489_v34  ;;  %5532 = vmatpush3.bf16.msra.mxu0 %v5894_v21 }
 0x443   : > { %5533 = vmatprep.subr.bf16.mxu0 %v5898_v47 }
 0x444   : > { %2941 = vmatpush1.bf16.msra.mxu1 %v5911_v24 }
 0x446   : > { %5534 = vmatpush3.bf16.msra.mxu0 %v5898_v47 }
 0x447   : > { %5535 = vmatprep.subr.bf16.mxu0 %v5902_v0 }
 0x449   : > { %5504 = vmatmul.mubr.bf16.gmra.mrb[12].mxu0 %v2490_v45 }
 0x44a   : > { %5507 = vmatprep.mubr.bf16.mxu0 %v2491_v18  ;;  %5536 = vmatpush3.bf16.msra.mxu0 %v5902_v0  ;;  %v5921_v18 = vld [vmem:[%s9442_s13 + $0x20] ss:$8 sps:$4 sm:$0xff]  }
 0x44b   : > { %5537 = vmatprep.subr.bf16.mxu0 %v5906_v63 }
 0x44e   : > { %5538 = vmatpush3.bf16.msra.mxu0 %v5906_v63  ;;  %v5926_v63 = vld [vmem:[%s9442_s13 + $0x34] ss:$8 sps:$4 sm:$0xff]  }
 0x44f   : > { %5539 = vmatprep.subr.bf16.mxu0 %v5910_v39 }
 0x451   : > { %5508 = vmatmul.mubr.bf16.gmra.mrb[16].mxu0 %v2492_v33 }
 0x452   : > { %5511 = vmatprep.mubr.bf16.mxu0 %v2493_v51  ;;  %5540 = vmatpush3.bf16.msra.mxu0 %v5910_v39 }
 0x453   : > { %5541 = vmatprep.subr.bf16.mxu0 %v5914_v4 }
 0x456   : > { %5542 = vmatpush3.bf16.msra.mxu0 %v5914_v4 }
 0x457   : > { %4300 = vmatprep.subr.bf16.mxu0 %v5917_v23 }
 0x459   : > { %5512 = vmatmul.mubr.bf16.gmra.mrb[20].mxu0 %v2494_v1 }
 0x45a   : > { %5515 = vmatprep.mubr.bf16.mxu0 %v2495_v14  ;;  %v5927_v14 = vld [vmem:[%s9442_s13 + $0x40] ss:$8 sps:$4 sm:$0xff]  }
 0x461   : > { %5516 = vmatmul.mubr.bf16.gmra.mrb[24].mxu0 %v2496_v31  ;;  %v5930_v31 = vld [vmem:[%s9442_s13 + $0x50] ss:$8 sps:$4 sm:$0xff]  }
 0x462   : > { %5519 = vmatprep.mubr.bf16.mxu0 %v2497_v28 }
 0x469   : > { %5520 = vmatmul.mubr.bf16.gmra.mrb[28].mxu0 %v2498_v61 }
 0x46a   : > { %5523 = vmatprep.mubr.bf16.mxu0 %v2499_v42 }
 0x471   : > { %5524 = vmatmul.mubr.bf16.gmra.mrb[32].mxu0 %v2500_v3 }
 0x50c   : > { %v5497_v52 = vpop.f32.mrb[4].mxu0 }
 0x50d   : > { %v2606_v49 = vpop.f32.mrb[5].mxu0  ;;  %v2615_v11 = vadd.f32 %v5497_v52, %v8104_v19 }
 0x50e   : > { %v5498_v25 = vpop.f32.mrb[6].mxu0  ;;  %v2607_v2 = vadd.f32 %v8104_v19, %v2606_v49 }
 0x50f   : > { %v2618_v5 = vadd.f32 %v5498_v25, %v8104_v19  ;;  %v2609_v50 = vpop.f32.mrb[7].mxu0 }
 0x510   : > { %v2610_v37 = vadd.f32 %v8104_v19, %v2609_v50 }
 0x511   : > { %v2734_v10 = vpack.c.bf16 %v2618_v5, %v2615_v11 }
 0x512   : > { %v2733_v46 = vpack.c.bf16 %v2610_v37, %v2607_v2 }
 0x514   : > { %v5501_v32 = vpop.f32.mrb[8].mxu0  ;;  %2959 = vmatmul.mubr.bf16.vlgmr.msra.gmra.mrb[132].mxu1 %v2733_v46  ;;  %5543 = vmatprep.mubr.bf16.mxu0 %v2733_v46 }
 0x515   : > { %v2622_v60 = vpop.f32.mrb[9].mxu0  ;;  %5544 = vmatmul.mubr.bf16.vlgmr.msra.gmra.mrb[36].mxu0 %v2734_v10  ;;  %2968 = vmatprep.mubr.bf16.mxu1 %v9457_v27  ;;  %v2631_v34 = vadd.f32 %v5501_v32, %v8104_v19 }
 0x516   : > { %v5502_v21 = vpop.f32.mrb[10].mxu0  ;;  %4301 = vmatpush1.bf16.msra.mxu0 %v5915_v9  ;;  %v2623_v15 = vadd.f32 %v8104_v19, %v2622_v60 }
 0x517   : > { %v2634_v47 = vadd.f32 %v5502_v21, %v8104_v19  ;;  %v2625_v26 = vpop.f32.mrb[11].mxu0  ;;  %4302 = vmatprep.subr.bf16.mxu0 %v5920_v44 }
 0x518   : > { %v2626_v7 = vadd.f32 %v8104_v19, %v2625_v26 }
 0x519   : > { %v2736_v0 = vpack.c.bf16 %v2634_v47, %v2631_v34 }
 0x51a   : > { %v2735_v45 = vpack.c.bf16 %v2626_v7, %v2623_v15  ;;  %4303 = vmatpush1.bf16.msra.mxu0 %v5918_v62 }
 0x51b   : > { %4304 = vmatprep.subr.bf16.mxu0 %v5923_v57 }
 0x51c   : > { %v5505_v41 = vpop.f32.mrb[12].mxu0  ;;  %2969 = vmatmul.mubr.bf16.gmra.mrb[136].mxu1 %v2734_v10  ;;  %5547 = vmatprep.mubr.bf16.mxu0 %v2735_v45 }
 0x51d   : > { %v2638_v6 = vpop.f32.mrb[13].mxu0  ;;  %5548 = vmatmul.mubr.bf16.gmra.mrb[40].mxu0 %v2736_v0  ;;  %2978 = vmatprep.mubr.bf16.mxu1 %v9457_v27  ;;  %v2647_v35 = vadd.f32 %v5505_v41, %v8104_v19 }
 0x51e   : > { %v5506_v12 = vpop.f32.mrb[14].mxu0  ;;  %4305 = vmatpush1.bf16.msra.mxu0 %v5921_v18  ;;  %v2639_v17 = vadd.f32 %v8104_v19, %v2638_v6 }
 0x51f   : > { %v2650_v33 = vadd.f32 %v5506_v12, %v8104_v19  ;;  %v2641_v51 = vpop.f32.mrb[15].mxu0  ;;  %4306 = vmatprep.subr.bf16.mxu0 %v5926_v63 }
 0x520   : > { %v2642_v29 = vadd.f32 %v8104_v19, %v2641_v51  ;;  %v5936_v51 = vld [vmem:[%s9442_s13 + $0x70] ss:$8 sps:$4 sm:$0xff]  }
 0x521   : > { %v2738_v8 = vpack.c.bf16 %v2650_v33, %v2647_v35 }
 0x522   : > { %v2737_v1 = vpack.c.bf16 %v2642_v29, %v2639_v17  ;;  %4307 = vmatpush1.bf16.msra.mxu0 %v5924_v13  ;;  %v5939_v17 = vld [vmem:[%s9442_s13 + $0x80] ss:$8 sps:$4 sm:$0xff]   ;;  %v5944_v29 = vld [vmem:[%s9442_s13 + $0x94] ss:$8 sps:$4 sm:$0xff]  }
 0x523   : > { %4308 = vmatprep.subr.bf16.mxu0 %v5929_v54  ;;  %v5941_v54 = vld [vmem:[%s9442_s13 + $0x84] ss:$8 sps:$4 sm:$0xff]  }
 0x524   : > { %v5509_v58 = vpop.f32.mrb[16].mxu0  ;;  %2979 = vmatmul.mubr.bf16.gmra.mrb[140].mxu1 %v2735_v45  ;;  %5551 = vmatprep.mubr.bf16.mxu0 %v2737_v1 }
 0x525   : > { %v2654_v30 = vpop.f32.mrb[17].mxu0  ;;  %5552 = vmatmul.mubr.bf16.gmra.mrb[44].mxu0 %v2738_v8  ;;  %2988 = vmatprep.mubr.bf16.mxu1 %v9457_v27  ;;  %v2663_v28 = vadd.f32 %v5509_v58, %v8104_v19  ;;  %v5948_v58 = vld [vmem:[%s9442_s13 + $0xb0] ss:$8 sps:$4 sm:$0xff]  }
 0x526   : > { %v5510_v20 = vpop.f32.mrb[18].mxu0  ;;  %4309 = vmatpush1.bf16.msra.mxu0 %v5927_v14  ;;  %v2655_v59 = vadd.f32 %v8104_v19, %v2654_v30  ;;  %v5945_v14 = vld [vmem:[%s9442_s13 + $0xa0] ss:$8 sps:$4 sm:$0xff]   ;;  %v5953_v30 = vld [vmem:[%s9442_s13 + $0xc4] ss:$8 sps:$4 sm:$0xff]  }
 0x527   : > { %v2666_v16 = vadd.f32 %v5510_v20, %v8104_v19  ;;  %v2657_v53 = vpop.f32.mrb[19].mxu0  ;;  %4310 = vmatprep.subr.bf16.mxu0 %v5932_v56  ;;  %v5950_v56 = vld [vmem:[%s9442_s13 + $0xb4] ss:$8 sps:$4 sm:$0xff]   ;;  %v5951_v20 = vld [vmem:[%s9442_s13 + $0xc0] ss:$8 sps:$4 sm:$0xff]  }
 0x528   : > { %v2658_v61 = vadd.f32 %v8104_v19, %v2657_v53  ;;  %v5957_v53 = vld [vmem:[%s9442_s13 + $0xe0] ss:$8 sps:$4 sm:$0xff]  }
 0x529   : > { %v2740_v42 = vpack.c.bf16 %v2666_v16, %v2663_v28  ;;  %v5954_v28 = vld [vmem:[%s9442_s13 + $0xd0] ss:$8 sps:$4 sm:$0xff]   ;;  %v5959_v16 = vld [vmem:[%s9442_s13 + $0xe4] ss:$8 sps:$4 sm:$0xff]  }
 0x52a   : > { %v2739_v48 = vpack.c.bf16 %v2658_v61, %v2655_v59  ;;  %4311 = vmatpush1.bf16.msra.mxu0 %v5930_v31  ;;  %v5956_v31 = vld [vmem:[%s9442_s13 + $0xd4] ss:$8 sps:$4 sm:$0xff]   ;;  %v5960_v59 = vld [vmem:[%s9442_s13 + $0xf0] ss:$8 sps:$4 sm:$0xff]   ;;  %v5965_v61 = vld [vmem:[%s9442_s13 + $0x104] ss:$8 sps:$4 sm:$0xff]  }
 0x52b   : > { %4312 = vmatprep.subr.bf16.mxu0 %v5935_v55  ;;  %v5962_v55 = vld [vmem:[%s9442_s13 + $0xf4] ss:$8 sps:$4 sm:$0xff]  }
 0x52c   : > { %v5513_v3 = vpop.f32.mrb[20].mxu0  ;;  %2989 = vmatmul.mubr.bf16.gmra.mrb[144].mxu1 %v2736_v0  ;;  %5555 = vmatprep.mubr.bf16.mxu0 %v2739_v48 }
 0x52d   : > { %v2670_v38 = vpop.f32.mrb[21].mxu0  ;;  %5556 = vmatmul.mubr.bf16.gmra.mrb[48].mxu0 %v2740_v42  ;;  %2998 = vmatprep.mubr.bf16.mxu1 %v9457_v27  ;;  %v2679_v39 = vadd.f32 %v5513_v3, %v8104_v19 }
 0x52e   : > { %v5514_v43 = vpop.f32.mrb[22].mxu0  ;;  %4313 = vmatpush1.bf16.msra.mxu0 %v5933_v22  ;;  %v2671_v4 = vadd.f32 %v8104_v19, %v2670_v38  ;;  %v9601_v22 = vld [vmem:[#allocation10_spill] sm:$0xff]  ;;  %v9602_v38 = vld [vmem:[#allocation9_spill] sm:$0xff] }
 0x52f   : > { %v2682_v24 = vadd.f32 %v5514_v43, %v8104_v19  ;;  %v2673_v36 = vpop.f32.mrb[23].mxu0  ;;  %v9603_v43 = vsub.s32 2, %v9602_v38 }
 0x530   : > { %v2674_v52 = vadd.f32 %v8104_v19, %v2673_v36 }
 0x531   : > { %v2742_v23 = vpack.c.bf16 %v2682_v24, %v2679_v39 }
 0x532   : > { %v2741_v49 = vpack.c.bf16 %v2674_v52, %v2671_v4 }
 0x534   : > { %v5517_v25 = vpop.f32.mrb[24].mxu0  ;;  %2999 = vmatmul.mubr.bf16.gmra.mrb[148].mxu1 %v2737_v1  ;;  %5559 = vmatprep.mubr.bf16.mxu0 %v2741_v49  ;;  %v5947_v1 = vld [vmem:[%s9442_s13 + $0xa4] ss:$8 sps:$4 sm:$0xff]  }
 0x535   : > { %v2686_v11 = vpop.f32.mrb[25].mxu0  ;;  %5560 = vmatmul.mubr.bf16.gmra.mrb[52].mxu0 %v2742_v23  ;;  %3008 = vmatprep.mubr.bf16.mxu1 %v9457_v27  ;;  %v2695_v50 = vadd.f32 %v5517_v25, %v8104_v19 }
 0x536   : > { %v5518_v5 = vpop.f32.mrb[26].mxu0  ;;  %v2687_v10 = vadd.f32 %v8104_v19, %v2686_v11 }
 0x537   : > { %v2698_v2 = vadd.f32 %v5518_v5, %v8104_v19  ;;  %v2689_v37 = vpop.f32.mrb[27].mxu0 }
 0x538   : > { %v2690_v46 = vadd.f32 %v8104_v19, %v2689_v37 }
 0x539   : > { %v2744_v9 = vpack.c.bf16 %v2698_v2, %v2695_v50 }
 0x53a   : > { %v2743_v44 = vpack.c.bf16 %v2690_v46, %v2687_v10 }
 0x53c   : > { %v5521_v32 = vpop.f32.mrb[28].mxu0  ;;  %3009 = vmatmul.mubr.bf16.gmra.mrb[152].mxu1 %v2738_v8  ;;  %5563 = vmatprep.mubr.bf16.mxu0 %v2743_v44  ;;  %v5942_v8 = vld [vmem:[%s9442_s13 + $0x90] ss:$8 sps:$4 sm:$0xff]  }
 0x53d   : > { %v2702_v60 = vpop.f32.mrb[29].mxu0  ;;  %5564 = vmatmul.mubr.bf16.gmra.mrb[56].mxu0 %v2744_v9  ;;  %3018 = vmatprep.mubr.bf16.mxu1 %v9457_v27  ;;  %v2711_v62 = vadd.f32 %v5521_v32, %v8104_v19 }
 0x53e   : > { %v5522_v21 = vpop.f32.mrb[30].mxu0  ;;  %v2703_v26 = vadd.f32 %v8104_v19, %v2702_v60 }
 0x53f   : > { %v2714_v34 = vadd.f32 %v5522_v21, %v8104_v19  ;;  %v2705_v47 = vpop.f32.mrb[31].mxu0 }
 0x540   : > { %v2706_v57 = vadd.f32 %v8104_v19, %v2705_v47 }
 0x541   : > { %v2746_v15 = vpack.c.bf16 %v2714_v34, %v2711_v62 }
 0x542   : > { %v2745_v7 = vpack.c.bf16 %v2706_v57, %v2703_v26 }
 0x544   : > { %v5525_v0 = vpop.f32.mrb[32].mxu0  ;;  %3019 = vmatmul.mubr.bf16.gmra.mrb[156].mxu1 %v2739_v48  ;;  %5567 = vmatprep.mubr.bf16.mxu0 %v2745_v7 }
 0x545   : > { %v2718_v45 = vpop.f32.mrb[33].mxu0  ;;  %5568 = vmatmul.mubr.bf16.gmra.mrb[60].mxu0 %v2746_v15  ;;  %3028 = vmatprep.mubr.bf16.mxu1 %v9457_v27  ;;  %v2727_v63 = vadd.f32 %v5525_v0, %v8104_v19 }
 0x546   : > { %v5526_v18 = vpop.f32.mrb[34].mxu0  ;;  %v2719_v12 = vadd.f32 %v8104_v19, %v2718_v45 }
 0x547   : > { %v2730_v41 = vadd.f32 %v5526_v18, %v8104_v19  ;;  %v2721_v6 = vpop.f32.mrb[35].mxu0 }
 0x548   : > { %v2722_v13 = vadd.f32 %v8104_v19, %v2721_v6  ;;  %v5938_v19 = vld [vmem:[%s9442_s13 + $0x74] ss:$8 sps:$4 sm:$0xff]  }
 0x549   : > { %v2748_v35 = vpack.c.bf16 %v2730_v41, %v2727_v63  ;;  %4314 = vmatprep.subr.bf16.mxu0 %v5938_v19 }
 0x54a   : > { %v2747_v33 = vpack.c.bf16 %v2722_v13, %v2719_v12  ;;  %4315 = vmatpush1.bf16.msra.mxu0 %v5936_v51 }
 0x54b   : > { %4316 = vmatprep.subr.bf16.mxu0 %v5941_v54 }
 0x54c   : > { %3029 = vmatmul.mubr.bf16.gmra.mrb[160].mxu1 %v2740_v42  ;;  %5571 = vmatprep.mubr.bf16.mxu0 %v2747_v33  ;;  %v2781_v42 = vld [vmem:[%s9441_s12] sm:$0x7] }
 0x54d   : > { %5572 = vmatmul.mubr.bf16.gmra.mrb[64].mxu0 %v2748_v35  ;;  %3038 = vmatprep.mubr.bf16.mxu1 %v9457_v27  ;;  %v8256_v48 = vrot.slane %v2781_v42, %v9599_v40  ;;  %v8259_v3 = vrot.slane %v2781_v42, %v9601_v22  ;;  %v8263_v39 = vrot.slane %v2781_v42, %v9603_v43 }
 0x54e   : > { %4317 = vmatpush1.bf16.msra.mxu0 %v5939_v17 }
 0x54f   : > { %4318 = vmatprep.subr.bf16.mxu0 %v5944_v29 }
 0x552   : > { %4319 = vmatpush1.bf16.msra.mxu0 %v5942_v8 }
 0x553   : > { %4320 = vmatprep.subr.bf16.mxu0 %v5947_v1 }
 0x554   : > { %3039 = vmatmul.mubr.bf16.gmra.mrb[164].mxu1 %v2741_v49 }
 0x555   : > { %3048 = vmatprep.mubr.bf16.mxu1 %v9457_v27 }
 0x556   : > { %4321 = vmatpush1.bf16.msra.mxu0 %v5945_v14 }
 0x557   : > { %4322 = vmatprep.subr.bf16.mxu0 %v5950_v56 }
 0x55a   : > { %4323 = vmatpush1.bf16.msra.mxu0 %v5948_v58 }
 0x55b   : > { %4324 = vmatprep.subr.bf16.mxu0 %v5953_v30 }
 0x55c   : > { %3049 = vmatmul.mubr.bf16.gmra.mrb[168].mxu1 %v2742_v23 }
 0x55d   : > { %3058 = vmatprep.mubr.bf16.mxu1 %v9457_v27 }
 0x55e   : > { %4325 = vmatpush1.bf16.msra.mxu0 %v5951_v20 }
 0x55f   : > { %4326 = vmatprep.subr.bf16.mxu0 %v5956_v31 }
 0x562   : > { %4327 = vmatpush1.bf16.msra.mxu0 %v5954_v28 }
 0x563   : > { %4328 = vmatprep.subr.bf16.mxu0 %v5959_v16 }
 0x564   : > { %3059 = vmatmul.mubr.bf16.gmra.mrb[172].mxu1 %v2743_v44 }
 0x565   : > { %3068 = vmatprep.mubr.bf16.mxu1 %v9457_v27 }
 0x566   : > { %4329 = vmatpush1.bf16.msra.mxu0 %v5957_v53 }
 0x567   : > { %4330 = vmatprep.subr.bf16.mxu0 %v5962_v55 }
 0x56a   : > { %4331 = vmatpush1.bf16.msra.mxu0 %v5960_v59 }
 0x56b   : > { %4493 = vmatprep.subr.bf16.mxu0 %v5965_v61 }
 0x56c   : > { %3069 = vmatmul.mubr.bf16.gmra.mrb[176].mxu1 %v2744_v9 }
 0x56d   : > { %3078 = vmatprep.mubr.bf16.mxu1 %v9457_v27 }
 0x574   : > { %3079 = vmatmul.mubr.bf16.gmra.mrb[180].mxu1 %v2745_v7 }
 0x575   : > { %3088 = vmatprep.mubr.bf16.mxu1 %v9457_v27 }
 0x57c   : > { %3089 = vmatmul.mubr.bf16.gmra.mrb[184].mxu1 %v2746_v15 }
 0x57d   : > { %3098 = vmatprep.mubr.bf16.mxu1 %v9457_v27 }
 0x584   : > { %3099 = vmatmul.mubr.bf16.gmra.mrb[188].mxu1 %v2747_v33 }
 0x585   : > { %3108 = vmatprep.mubr.bf16.mxu1 %v9457_v27 }
 0x58c   : > { %3109 = vmatmul.mubr.bf16.gmra.mrb[192].mxu1 %v2748_v35 }
 0x5e7   : > { %v2960_v24 = vpop.f32.mrb[132].mxu1 }
 0x5e8   : > { %v8266_v36 = vadd.f32 %v2960_v24, %v8256_v48  ;;  %v2962_v4 = vpop.f32.mrb[133].mxu1  ;;  %v5545_v52 = vpop.f32.mrb[36].mxu0 }
 0x5e9   : > { %v8269_v23 = vadd.f32 %v2962_v4, %v8259_v3  ;;  %v8272_v49 = vadd.f32 %v5545_v52, %v8263_v39  ;;  %v2964_v25 = vpop.f32.mrb[134].mxu1  ;;  %v3153_v11 = vpop.f32.mrb[37].mxu0 }
 0x5ea   : > { %v4998_v5 = vmul.f32 -1.442695, %v8266_v36  ;;  %v8276_v50 = vadd.f32 %v2964_v25, %v8256_v48  ;;  %v8279_v2 = vadd.f32 %v3153_v11, %v8263_v39  ;;  %v2966_v37 = vpop.f32.mrb[135].mxu1  ;;  %v5546_v10 = vpop.f32.mrb[38].mxu0 }
 0x5eb   : > { %v4999_v46 = vmul.f32 -1.442695, %v8269_v23  ;;  %v5006_v9 = vmul.f32 -1.442695, %v8272_v49  ;;  %v8284_v44 = vadd.f32 %v2966_v37, %v8259_v3  ;;  %v8287_v32 = vadd.f32 %v5546_v10, %v8263_v39  ;;  %v3156_v60 = vpop.f32.mrb[39].mxu0 }
 0x5ec   : > { %6139 = vpow2.f32 %v4998_v5  ;;  %v5001_v21 = vmul.f32 -1.442695, %v8276_v50  ;;  %v5000_v62 = vmul.f32 -1.442695, %v8279_v2  ;;  %v8292_v34 = vadd.f32 %v3156_v60, %v8263_v39 }
 0x5ed   : > { %6141 = vpow2.f32 %v4999_v46  ;;  %v5002_v47 = vmul.f32 -1.442695, %v8284_v44  ;;  %v5009_v26 = vmul.f32 -1.442695, %v8287_v32 }
 0x5ee   : > { %6143 = vpow2.f32 %v5006_v9  ;;  %v5003_v57 = vmul.f32 -1.442695, %v8292_v34 }
 0x5ef   : > { %6145 = vpow2.f32 %v5001_v21  ;;  %v2970_v15 = vpop.f32.mrb[136].mxu1 }
 0x5f0   : > { %6147 = vpow2.f32 %v5000_v62  ;;  %v8298_v7 = vadd.f32 %v2970_v15, %v8256_v48  ;;  %v2972_v0 = vpop.f32.mrb[137].mxu1  ;;  %v5549_v45 = vpop.f32.mrb[40].mxu0 }
 0x5f1   : > { %6149 = vpow2.f32 %v5002_v47  ;;  %v8301_v18 = vadd.f32 %v2972_v0, %v8259_v3  ;;  %v8304_v63 = vadd.f32 %v5549_v45, %v8263_v39  ;;  %v2974_v41 = vpop.f32.mrb[138].mxu1  ;;  %v3169_v6 = vpop.f32.mrb[41].mxu0 }
 0x5f2   : > { %6151 = vpow2.f32 %v5009_v26  ;;  %v5004_v12 = vmul.f32 -1.442695, %v8298_v7  ;;  %v8308_v13 = vadd.f32 %v2974_v41, %v8256_v48  ;;  %v8311_v35 = vadd.f32 %v3169_v6, %v8263_v39  ;;  %v2976_v33 = vpop.f32.mrb[139].mxu1  ;;  %v5550_v19 = vpop.f32.mrb[42].mxu0 }
 0x5f3   : > { %6153 = vpow2.f32 %v5003_v57  ;;  %v5005_v51 = vmul.f32 -1.442695, %v8301_v18  ;;  %v5018_v54 = vmul.f32 -1.442695, %v8304_v63  ;;  %v3172_v17 = vpop.f32.mrb[43].mxu0  ;;  %v8320_v10 = vadd.f32 %v2976_v33, %v8259_v3 }
 0x5f4   : > { %6155 = vpow2.f32 %v5004_v12  ;;  %v5007_v29 = vmul.f32 -1.442695, %v8308_v13  ;;  %v5012_v8 = vmul.f32 -1.442695, %v8311_v35  ;;  %v8323_v62 = vadd.f32 %v5550_v19, %v8263_v39 }
 0x5f5   : > { %6157 = vpow2.f32 %v5005_v51  ;;  %v8326_v15 = vadd.f32 %v3172_v17, %v8263_v39  ;;  %v5008_v12 = vmul.f32 -1.442695, %v8320_v10 }
 0x5f6   : > { %v6140_v1 = vpop.eup %6139  ;;  %6159 = vpow2.f32 %v5018_v54 }
 0x5f7   : > { %v6142_v14 = vpop.eup %6141  ;;  %v3568_v56 = vadd.f32 1.0, %v6140_v1  ;;  %6161 = vpow2.f32 %v5007_v29  ;;  %v2980_v58 = vpop.f32.mrb[140].mxu1 }
 0x5f8   : > { %v6144_v30 = vpop.eup %6143  ;;  %v3569_v20 = vadd.f32 1.0, %v6142_v14  ;;  %6163 = vpow2.f32 %v5012_v8  ;;  %v2982_v31 = vpop.f32.mrb[141].mxu1  ;;  %v8332_v33 = vadd.f32 %v2980_v58, %v8256_v48 }
 0x5f9   : > { %v5553_v28 = vpop.f32.mrb[44].mxu0  ;;  %v6146_v16 = vpop.eup %6145  ;;  %6165 = vrcp.f32 %v3568_v56  ;;  %v3576_v53 = vadd.f32 1.0, %v6144_v30  ;;  %v8339_v17 = vadd.f32 %v2982_v31, %v8259_v3  ;;  %v5021_v30 = vmul.f32 -1.442695, %v8323_v62 }
 0x5fa   : > { %v2984_v55 = vpop.f32.mrb[142].mxu1  ;;  %v3185_v59 = vpop.f32.mrb[45].mxu0  ;;  %6167 = vrcp.f32 %v3569_v20  ;;  %v3571_v42 = vadd.f32 1.0, %v6146_v16  ;;  %v8342_v8 = vadd.f32 %v5553_v28, %v8263_v39 }
 0x5fb   : > { %v6148_v61 = vpop.eup %6147  ;;  %v2986_v38 = vpop.f32.mrb[143].mxu1  ;;  %6169 = vrcp.f32 %v3576_v53  ;;  %v5015_v53 = vmul.f32 -1.442695, %v8326_v15  ;;  %v8353_v31 = vadd.f32 %v2984_v55, %v8256_v48 }
 0x5fc   : > { %v5554_v43 = vpop.f32.mrb[46].mxu0  ;;  %v6150_v24 = vpop.eup %6149  ;;  %v3570_v4 = vadd.f32 1.0, %v6148_v61  ;;  %6171 = vrcp.f32 %v3571_v42  ;;  %v5010_v61 = vmul.f32 -1.442695, %v8332_v33  ;;  %v8359_v42 = vadd.f32 %v3185_v59, %v8263_v39 }
 0x5fd   : > { %v8317_v52 = vpop.f32.mrb[47].mxu0  ;;  %v6152_v25 = vpop.eup %6151  ;;  %v3572_v11 = vadd.f32 1.0, %v6150_v24  ;;  %v8373_v59 = vadd.f32 %v5554_v43, %v8263_v39 }
 0x5fe   : > { %v6154_v5 = vpop.eup %6153  ;;  %6173 = vrcp.f32 %v3570_v4  ;;  %v3579_v37 = vadd.f32 1.0, %v6152_v25  ;;  %v5011_v4 = vmul.f32 -1.442695, %v8339_v17  ;;  %v5030_v25 = vmul.f32 -1.442695, %v8342_v8 }
 0x5ff   : > { %v6156_v46 = vpop.eup %6155  ;;  %6175 = vrcp.f32 %v3572_v11  ;;  %v3573_v9 = vadd.f32 1.0, %v6154_v5  ;;  %v2990_v47 = vpop.f32.mrb[144].mxu1  ;;  %v8364_v11 = vadd.f32 %v2986_v38, %v8259_v3  ;;  %v8380_v38 = vadd.f32 %v8317_v52, %v8263_v39 }
 0x600   : > { %v6158_v60 = vpop.eup %6157  ;;  %6177 = vrcp.f32 %v3579_v37  ;;  %v3574_v21 = vadd.f32 1.0, %v6156_v46  ;;  %v2992_v0 = vpop.f32.mrb[145].mxu1 }
 0x601   : > { %v6160_v26 = vpop.eup %6159  ;;  %6179 = vrcp.f32 %v3573_v9  ;;  %v3575_v57 = vadd.f32 1.0, %v6158_v60  ;;  %v8328_v45 = vpop.f32.mrb[48].mxu0  ;;  %v5013_v60 = vmul.f32 -1.442695, %v8353_v31 }
 0x602   : > { %v6162_v41 = vpop.eup %6161  ;;  %6181 = vrcp.f32 %v3574_v21  ;;  %v3588_v6 = vadd.f32 1.0, %v6160_v26  ;;  %v8334_v19 = vpop.f32.mrb[146].mxu1  ;;  %v5024_v26 = vmul.f32 -1.442695, %v8359_v42 }
 0x603   : > { %v8336_v51 = vpop.f32.mrb[49].mxu0  ;;  %v6164_v54 = vpop.eup %6163  ;;  %6183 = vrcp.f32 %v3575_v57  ;;  %v3577_v29 = vadd.f32 1.0, %v6162_v41  ;;  %v8392_v57 = vadd.f32 %v2990_v47, %v8256_v48 }
 0x604   : > { %v8344_v1 = vpop.f32.mrb[147].mxu1  ;;  %v8346_v14 = vpop.f32.mrb[50].mxu0  ;;  %6185 = vrcp.f32 %v3588_v6  ;;  %v3582_v58 = vadd.f32 1.0, %v6164_v54  ;;  %v8400_v54 = vadd.f32 %v2992_v0, %v8259_v3 }
 0x605   : > { %v6166_v56 = vpop.eup %6165  ;;  %v8349_v20 = vpop.f32.mrb[51].mxu0  ;;  %6187 = vrcp.f32 %v3577_v29  ;;  %9604 = vst [vmem:[#allocation13_spill] sm:$0xff] %v8392_v57 }
 0x606   : > { %v6168_v16 = vpop.eup %6167  ;;  %6189 = vrcp.f32 %v3582_v58  ;;  %v8367_v55 = vmul.f32 %v6166_v56, %v8266_v36  ;;  %9605 = vst [vmem:[#allocation14_spill] sm:$0xff] %v8400_v54 }
 0x607   : > { %v8355_v28 = vpop.eup %6169  ;;  %6191 = vpow2.f32 %v5008_v12  ;;  %v8375_v46 = vpop.f32.mrb[148].mxu1  ;;  %v5014_v12 = vmul.f32 -1.442695, %v8364_v11 }
 0x608   : > { %v6172_v24 = vpop.eup %6171  ;;  %6193 = vpow2.f32 %v5021_v30  ;;  %v8382_v21 = vpop.f32.mrb[149].mxu1 }
 0x609   : > { %v6174_v5 = vpop.eup %6173  ;;  %v8370_v37 = vmul.f32 %v6172_v24, %v8276_v50  ;;  %6195 = vpow2.f32 %v5015_v53  ;;  %v8384_v36 = vpop.f32.mrb[52].mxu0  ;;  %v5033_v53 = vmul.f32 -1.442695, %v8373_v59 }
 0x60a   : > { %v6176_v9 = vpop.eup %6175  ;;  %6197 = vpow2.f32 %v5010_v61  ;;  %v8394_v41 = vpop.f32.mrb[150].mxu1  ;;  %v8409_v47 = vmul.f32 %v6174_v5, %v8279_v2  ;;  %v3857_v5 = vmul.f32 %v6168_v16, %v8269_v23 }
 0x60b   : > { %v8386_v50 = vpop.eup %6177  ;;  %v3952_v43 = vpack.c.bf16 %v8370_v37, %v8367_v55  ;;  %v8396_v6 = vpop.f32.mrb[53].mxu0  ;;  %6199 = vpow2.f32 %v5011_v4  ;;  %v3860_v0 = vmul.f32 %v6176_v9, %v8284_v44  ;;  %v5027_v4 = vmul.f32 -1.442695, %v8380_v38 }
 0x60c   : > { %v6180_v52 = vpop.eup %6179  ;;  %v8402_v29 = vpop.f32.mrb[151].mxu1  ;;  %9606 = vst [vmem:[#allocation15_spill] sm:$0xff] %v8409_v47  ;;  %6201 = vpow2.f32 %v5030_v25  ;;  %v5017_v37 = vmul.f32 -1.442695, %v8400_v54 }
 0x60d   : > { %v8404_v56 = vpop.f32.mrb[54].mxu0  ;;  %v8406_v58 = vpop.eup %6181  ;;  %v8412_v30 = vmul.f32 %v6180_v52, %v8292_v34  ;;  %6203 = vpow2.f32 %v5013_v60  ;;  %v5016_v34 = vmul.f32 -1.442695, %v8392_v57  ;;  %v3953_v60 = vpack.c.bf16 %v3860_v0, %v3857_v5 }
 0x60e   : > { %v8415_v61 = vpop.f32.mrb[55].mxu0  ;;  %v8417_v24 = vpop.eup %6183  ;;  %6205 = vpow2.f32 %v5024_v26  ;;  %v5963_v26 = vld [vmem:[%s9442_s13 + $0x100] ss:$8 sps:$4 sm:$0xff]   ;;  %v8463_v57 = vadd.f32 %v8328_v45, %v8263_v39 }
 0x60f   : > { %9607 = vst [vmem:[#allocation16_spill] sm:$0xff] %v8412_v30  ;;  %v8421_v55 = vpop.eup %6185  ;;  %6207 = vpow2.f32 %v5014_v12  ;;  %v8430_v44 = vpop.f32.mrb[152].mxu1  ;;  %4332 = vmatprep.mubr.bf16.mxu0 %v3953_v60  ;;  %v5969_v45 = vld [vmem:[%s9442_s13 + $0x120] ss:$8 sps:$4 sm:$0xff]  }
 0x610   : > { %v6188_v25 = vpop.eup %6187  ;;  %6209 = vpow2.f32 %v5033_v53  ;;  %v8435_v2 = vpop.f32.mrb[153].mxu1  ;;  %v5968_v53 = vld [vmem:[%s9442_s13 + $0x114] ss:$8 sps:$4 sm:$0xff]   ;;  %4333 = vmatmul.mubr.bf16.vlgmr.msra.gmra.mrb[68].mxu0 %v3952_v43 }
 0x611   : > { %v8428_v52 = vpop.eup %6189  ;;  %6211 = vpow2.f32 %v5027_v4  ;;  %v8437_v27 = vpop.f32.mrb[56].mxu0  ;;  %4494 = vmatpush1.bf16.msra.mxu0 %v5963_v26 }
 0x612   : > { %v6192_v9 = vpop.eup %6191  ;;  %6213 = vpow2.f32 %v5016_v34  ;;  %v8439_v12 = vpop.f32.mrb[154].mxu1  ;;  %4495 = vmatprep.subr.bf16.mxu0 %v5968_v53 }
 0x613   : > { %v6194_v23 = vpop.eup %6193  ;;  %v3578_v16 = vadd.f32 1.0, %v6192_v9  ;;  %6215 = vpow2.f32 %v5017_v37  ;;  %v8444_v0 = vpop.f32.mrb[57].mxu0  ;;  %v5966_v37 = vld [vmem:[%s9442_s13 + $0x110] ss:$8 sps:$4 sm:$0xff]  }
 0x614   : > { %v6196_v22 = vpop.eup %6195  ;;  %v3591_v4 = vadd.f32 1.0, %v6194_v23  ;;  %v8446_v5 = vpop.f32.mrb[155].mxu1 }
 0x615   : > { %v6198_v40 = vpop.eup %6197  ;;  %6217 = vrcp.f32 %v3578_v16  ;;  %v3585_v47 = vadd.f32 1.0, %v6196_v22  ;;  %v8448_v9 = vpop.f32.mrb[58].mxu0  ;;  %v5971_v22 = vld [vmem:[%s9442_s13 + $0x124] ss:$8 sps:$4 sm:$0xff]   ;;  %v8459_v16 = vmul.f32 %v6188_v25, %v8308_v13  ;;  %v8473_v13 = vadd.f32 %v8334_v19, %v8256_v48  ;;  %4496 = vmatpush1.bf16.msra.mxu0 %v5966_v37  ;;  %v5974_v19 = vld [vmem:[%s9442_s13 + $0x134] ss:$8 sps:$4 sm:$0xff]  }
 0x616   : > { %v6200_v34 = vpop.eup %6199  ;;  %6219 = vrcp.f32 %v3591_v4  ;;  %v3580_v30 = vadd.f32 1.0, %v6198_v40  ;;  %v8450_v54 = vpop.f32.mrb[59].mxu0  ;;  %4497 = vmatprep.subr.bf16.mxu0 %v5971_v22  ;;  %v8498_v22 = vadd.f32 %v8344_v1, %v8259_v3  ;;  %v5972_v1 = vld [vmem:[%s9442_s13 + $0x130] ss:$8 sps:$4 sm:$0xff]  }
 0x617   : > { %9608 = vst [vmem:[#allocation17_spill] sm:$0xff] %v8450_v54  ;;  %v6202_v60 = vpop.eup %6201  ;;  %6221 = vrcp.f32 %v3585_v47  ;;  %v3581_v23 = vadd.f32 1.0, %v6200_v34  ;;  %v8465_v47 = vpop.f32.mrb[156].mxu1  ;;  %v8469_v34 = vmul.f32 %v8406_v58, %v8298_v7  ;;  %v8482_v7 = vadd.f32 %v8336_v51, %v8263_v39 }
 0x618   : > { %v6204_v43 = vpop.eup %6203  ;;  %6223 = vrcp.f32 %v3580_v30  ;;  %v3600_v40 = vadd.f32 1.0, %v6202_v60  ;;  %v8475_v30 = vpop.f32.mrb[157].mxu1 }
 0x619   : > { %v6206_v26 = vpop.eup %6205  ;;  %6225 = vrcp.f32 %v3581_v23  ;;  %v3583_v4 = vadd.f32 1.0, %v6204_v43  ;;  %v8484_v58 = vpop.f32.mrb[60].mxu0  ;;  %v3955_v43 = vpack.c.bf16 %v8459_v16, %v8469_v34  ;;  %v5019_v34 = vmul.f32 -1.442695, %v8473_v13  ;;  %4498 = vmatpush1.bf16.msra.mxu0 %v5969_v45 }
 0x61a   : > { %v6208_v53 = vpop.eup %6207  ;;  %6227 = vrcp.f32 %v3600_v40  ;;  %v3594_v54 = vadd.f32 1.0, %v6206_v26  ;;  %9609 = vst [vmem:[#allocation18_spill] sm:$0xff] %v8484_v58  ;;  %v8491_v40 = vpop.f32.mrb[158].mxu1  ;;  %4499 = vmatprep.subr.bf16.mxu0 %v5974_v19  ;;  %v8537_v19 = vadd.f32 %v8384_v36, %v8263_v39  ;;  %v8549_v36 = vadd.f32 %v8394_v41, %v8256_v48 }
 0x61b   : > { %v6210_v25 = vpop.eup %6209  ;;  %6229 = vrcp.f32 %v3583_v4  ;;  %v3584_v60 = vadd.f32 1.0, %v6208_v53  ;;  %v8493_v26 = vpop.f32.mrb[61].mxu0  ;;  %v5042_v53 = vmul.f32 -1.442695, %v8463_v57 }
 0x61c   : > { %v6212_v23 = vpop.eup %6211  ;;  %6231 = vrcp.f32 %v3594_v54  ;;  %v3603_v37 = vadd.f32 1.0, %v6210_v25  ;;  %9610 = vst [vmem:[#allocation19_spill] sm:$0xff] %v8493_v26  ;;  %v8500_v58 = vpop.f32.mrb[159].mxu1  ;;  %v8507_v26 = vadd.f32 %v8346_v14, %v8263_v39  ;;  %v3863_v14 = vmul.f32 %v8417_v24, %v8301_v18  ;;  %9615 = vst [vmem:[#allocation24_spill] sm:$0xff] %v8537_v19 }
 0x61d   : > { %v6214_v4 = vpop.eup %6213  ;;  %6233 = vrcp.f32 %v3584_v60  ;;  %v3597_v51 = vadd.f32 1.0, %v6212_v23  ;;  %9611 = vst [vmem:[#allocation20_spill] sm:$0xff] %v8500_v58  ;;  %v8502_v54 = vpop.f32.mrb[62].mxu0  ;;  %4500 = vmatpush1.bf16.msra.mxu0 %v5972_v1 }
 0x61e   : > { %9612 = vst [vmem:[#allocation21_spill] sm:$0xff] %v8502_v54  ;;  %v6216_v25 = vpop.eup %6215  ;;  %6235 = vrcp.f32 %v3603_v37  ;;  %v3586_v16 = vadd.f32 1.0, %v6214_v4  ;;  %v8509_v60 = vpop.f32.mrb[63].mxu0  ;;  %v5036_v54 = vmul.f32 -1.442695, %v8482_v7  ;;  %v8517_v37 = vadd.f32 %v8349_v20, %v8263_v39 }
 0x61f   : > { %9613 = vst [vmem:[#allocation22_spill] sm:$0xff] %v8509_v60  ;;  %v6218_v23 = vpop.eup %6217  ;;  %6237 = vrcp.f32 %v3597_v51  ;;  %v3587_v58 = vadd.f32 1.0, %v6216_v25  ;;  %v8526_v60 = vadd.f32 %v8375_v46, %v8256_v48  ;;  %v5020_v25 = vmul.f32 -1.442695, %v8498_v22  ;;  %v8539_v18 = vpop.f32.mrb[160].mxu1 }
 0x620   : > { %v8519_v4 = vpop.eup %6219  ;;  %v3866_v45 = vmul.f32 %v6218_v23, %v8320_v10  ;;  %6239 = vrcp.f32 %v3586_v16  ;;  %v8533_v20 = vadd.f32 %v8382_v21, %v8259_v3  ;;  %9616 = vst [vmem:[#allocation25_spill] sm:$0xff] %v8539_v18  ;;  %v5045_v46 = vmul.f32 -1.442695, %v8507_v26  ;;  %v8542_v16 = vpop.f32.mrb[161].mxu1 }
 0x621   : > { %v8528_v51 = vpop.eup %6221  ;;  %6241 = vrcp.f32 %v3587_v58  ;;  %9617 = vst [vmem:[#allocation26_spill] sm:$0xff] %v8542_v16  ;;  %v8544_v58 = vpop.f32.mrb[64].mxu0  ;;  %v5039_v21 = vmul.f32 -1.442695, %v8517_v37  ;;  %v8553_v18 = vadd.f32 %v8396_v6, %v8263_v39  ;;  %v5022_v1 = vmul.f32 -1.442695, %v8526_v60 }
 0x622   : > { %9614 = vst [vmem:[#allocation23_spill] sm:$0xff] %v8533_v20  ;;  %v6224_v10 = vpop.eup %6223  ;;  %6243 = vpow2.f32 %v5042_v53  ;;  %v3956_v24 = vpack.c.bf16 %v3866_v45, %v3863_v14  ;;  %9618 = vst [vmem:[#allocation27_spill] sm:$0xff] %v8544_v58  ;;  %v8555_v53 = vpop.f32.mrb[162].mxu1  ;;  %v5023_v16 = vmul.f32 -1.442695, %v8533_v20 }
 0x623   : > { %v6226_v23 = vpop.eup %6225  ;;  %6245 = vpow2.f32 %v5019_v34  ;;  %9619 = vst [vmem:[#allocation28_spill] sm:$0xff] %v8553_v18  ;;  %9620 = vst [vmem:[#allocation29_spill] sm:$0xff] %v8555_v53  ;;  %v8557_v14 = vpop.f32.mrb[65].mxu0  ;;  %v5054_v6 = vmul.f32 -1.442695, %v8537_v19  ;;  %v8570_v53 = vadd.f32 %v8402_v29, %v8259_v3 }
 0x624   : > { %9621 = vst [vmem:[#allocation30_spill] sm:$0xff] %v8557_v14  ;;  %v8559_v45 = vpop.eup %6227  ;;  %6247 = vpow2.f32 %v5036_v54  ;;  %4342 = vmatprep.mubr.bf16.mxu0 %v3956_v24  ;;  %v8562_v34 = vpop.f32.mrb[163].mxu1  ;;  %v3868_v24 = vmul.f32 %v6224_v10, %v8332_v33  ;;  %v5025_v19 = vmul.f32 -1.442695, %v8549_v36  ;;  %v5048_v29 = vmul.f32 -1.442695, %v8553_v18 }
 0x625   : > { %9622 = vst [vmem:[#allocation31_spill] sm:$0xff] %v8562_v34  ;;  %v8564_v58 = vpop.f32.mrb[66].mxu0  ;;  %v6230_v41 = vpop.eup %6229  ;;  %6249 = vpow2.f32 %v5020_v25  ;;  %4343 = vmatmul.mubr.bf16.gmra.mrb[72].mxu0 %v3955_v43  ;;  %v8580_v25 = vadd.f32 %v8404_v56, %v8263_v39  ;;  %v5975_v43 = vld [vmem:[%s9442_s13 + $0x140] ss:$8 sps:$4 sm:$0xff]   ;;  %v3869_v33 = vmul.f32 %v6226_v23, %v8339_v17  ;;  %v5977_v56 = vld [vmem:[%s9442_s13 + $0x144] ss:$8 sps:$4 sm:$0xff]  }
 0x626   : > { %9623 = vst [vmem:[#allocation32_spill] sm:$0xff] %v8564_v58  ;;  %v8572_v14 = vpop.f32.mrb[67].mxu0  ;;  %v8574_v54 = vpop.eup %6231  ;;  %v3871_v34 = vmul.f32 %v6230_v41, %v8353_v31  ;;  %6251 = vpow2.f32 %v5045_v46  ;;  %4501 = vmatprep.subr.bf16.mxu0 %v5977_v56 }
 0x627   : > { %9624 = vst [vmem:[#allocation33_spill] sm:$0xff] %v8572_v14  ;;  %v6234_v58 = vpop.eup %6233  ;;  %6253 = vpow2.f32 %v5039_v21  ;;  %v5026_v21 = vmul.f32 -1.442695, %v8570_v53  ;;  %v8593_v41 = vpop.f32.mrb[164].mxu1  ;;  %v5057_v20 = vmul.f32 -1.442695, %v8580_v25  ;;  %4502 = vmatpush1.bf16.msra.mxu0 %v5975_v43  ;;  %v8620_v43 = vmul.f32 %v8355_v28, %v8272_v49 }
 0x628   : > { %v6236_v14 = vpop.eup %6235  ;;  %v3872_v31 = vmul.f32 %v6234_v58, %v8364_v11  ;;  %6255 = vpow2.f32 %v5022_v1  ;;  %v3958_v10 = vpack.c.bf16 %v3871_v34, %v3868_v24  ;;  %v8598_v23 = vpop.f32.mrb[165].mxu1  ;;  %v8604_v58 = vadd.f32 %v8415_v61, %v8263_v39 }
 0x629   : > { %v6238_v46 = vpop.eup %6237  ;;  %6257 = vpow2.f32 %v5023_v16  ;;  %v8606_v16 = vpop.f32.mrb[166].mxu1  ;;  %v8612_v24 = vmul.f32 %v8386_v50, %v8287_v32  ;;  %9627 = vst [vmem:[#allocation36_spill] sm:$0xff] %v8620_v43  ;;  %v8628_v50 = vmul.f32 %v8428_v52, %v8311_v35  ;;  %v8635_v49 = vmul.f32 %v8519_v4, %v8323_v62 }
 0x62a   : > { %v8595_v18 = vpop.eup %6239  ;;  %6259 = vpow2.f32 %v5054_v6  ;;  %v3959_v17 = vpack.c.bf16 %v3872_v31, %v3869_v33  ;;  %v8608_v34 = vpop.f32.mrb[167].mxu1  ;;  %v8639_v28 = vadd.f32 %v8430_v44, %v8256_v48  ;;  %v8649_v4 = vadd.f32 %v8435_v2, %v8259_v3 }
 0x62b   : > { %v8600_v11 = vpop.eup %6241  ;;  %6261 = vpow2.f32 %v5025_v19  ;;  %9625 = vst [vmem:[#allocation34_spill] sm:$0xff] %v8612_v24  ;;  %v8616_v19 = vmul.f32 %v8528_v51, %v8326_v15  ;;  %9629 = vst [vmem:[#allocation38_spill] sm:$0xff] %v8628_v50  ;;  %v8631_v51 = vmul.f32 -1.442695, %v8604_v58  ;;  %v8653_v44 = vadd.f32 %v8437_v27, %v8263_v39  ;;  %v9664_v43 = vld [vmem:[#allocation30_spill] sm:$0xff] }
 0x62c   : > { %v6244_v1 = vpop.eup %6243  ;;  %6263 = vpow2.f32 %v5048_v29  ;;  %4352 = vmatprep.mubr.bf16.mxu0 %v3959_v17  ;;  %v8624_v29 = vmul.f32 %v8421_v55, %v8304_v63  ;;  %9630 = vst [vmem:[#allocation39_spill] sm:$0xff] %v8635_v49  ;;  %v8667_v27 = vadd.f32 %v8439_v12, %v8256_v48  ;;  %v9640_v49 = vld [vmem:[#allocation18_spill] sm:$0xff]  ;;  %v8861_v24 = vadd.f32 %v9664_v43, %v8263_v39 }
 0x62d   : > { %v6246_v6 = vpop.eup %6245  ;;  %9626 = vst [vmem:[#allocation35_spill] sm:$0xff] %v8616_v19  ;;  %v3612_v33 = vadd.f32 1.0, %v6244_v1  ;;  %6265 = vpow2.f32 %v5026_v21  ;;  %4353 = vmatmul.mubr.bf16.gmra.mrb[76].mxu0 %v3958_v10  ;;  %v8745_v50 = vadd.f32 %v9640_v49, %v8263_v39  ;;  %v9666_v43 = vld [vmem:[#allocation32_spill] sm:$0xff] }
 0x62e   : > { %v6248_v61 = vpop.eup %6247  ;;  %9628 = vst [vmem:[#allocation37_spill] sm:$0xff] %v8624_v29  ;;  %v3589_v31 = vadd.f32 1.0, %v6246_v6  ;;  %6267 = vpow2.f32 %v5057_v20  ;;  %v8658_v6 = vmul.f32 %v6236_v14, %v8373_v59 }
 0x62f   : > { %v6250_v32 = vpop.eup %6249  ;;  %6269 = vrcp.f32 %v3612_v33  ;;  %v3606_v15 = vadd.f32 1.0, %v6248_v61  ;;  %v8641_v52 = vpop.f32.mrb[168].mxu1  ;;  %v8661_v33 = vmul.f32 %v6238_v46, %v8380_v38  ;;  %v8675_v38 = vmul.f32 %v8559_v45, %v8342_v8 }
 0x630   : > { %v6252_v10 = vpop.eup %6251  ;;  %6271 = vrcp.f32 %v3589_v31  ;;  %v3590_v63 = vadd.f32 1.0, %v6250_v32  ;;  %v8655_v17 = vpop.f32.mrb[169].mxu1  ;;  %9631 = vst [vmem:[#allocation40_spill] sm:$0xff] %v8658_v6  ;;  %v8679_v46 = vmul.f32 %v8574_v54, %v8359_v42  ;;  %v8724_v6 = vadd.f32 %v8475_v30, %v8259_v3 }
 0x631   : > { %v6254_v55 = vpop.eup %6253  ;;  %6273 = vrcp.f32 %v3606_v15  ;;  %v3615_v35 = vadd.f32 1.0, %v6252_v10  ;;  %9632 = vst [vmem:[#allocation41_spill] sm:$0xff] %v8661_v33  ;;  %v8663_v31 = vpop.f32.mrb[170].mxu1  ;;  %9633 = vst [vmem:[#allocation42_spill] sm:$0xff] %v8675_v38 }
 0x632   : > { %v6256_v21 = vpop.eup %6255  ;;  %6275 = vrcp.f32 %v3590_v63  ;;  %v3609_v62 = vadd.f32 1.0, %v6254_v55  ;;  %v8669_v15 = vpop.f32.mrb[171].mxu1  ;;  %9634 = vst [vmem:[#allocation43_spill] sm:$0xff] %v8679_v46  ;;  %v8683_v55 = vadd.f32 %v8444_v0, %v8263_v39  ;;  %v8696_v0 = vadd.f32 %v8448_v9, %v8263_v39 }
 0x633   : > { %v6258_v1 = vpop.eup %6257  ;;  %6277 = vrcp.f32 %v3615_v35  ;;  %v3592_v61 = vadd.f32 1.0, %v6256_v21  ;;  %v8687_v35 = vadd.f32 %v8446_v5, %v8259_v3 }
 0x634   : > { %v6260_v32 = vpop.eup %6259  ;;  %6279 = vrcp.f32 %v3609_v62  ;;  %v3593_v2 = vadd.f32 1.0, %v6258_v1  ;;  %v5028_v1 = vmul.f32 -1.442695, %v8639_v28  ;;  %v5069_v38 = vmul.f32 -1.442695, %v8696_v0 }
 0x635   : > { %v6262_v14 = vpop.eup %6261  ;;  %6281 = vrcp.f32 %v3592_v61  ;;  %v3624_v10 = vadd.f32 1.0, %v6260_v32  ;;  %v5029_v32 = vmul.f32 -1.442695, %v8649_v4  ;;  %v5032_v56 = vmul.f32 -1.442695, %v8687_v35 }
 0x636   : > { %v6264_v63 = vpop.eup %6263  ;;  %6283 = vrcp.f32 %v3593_v2  ;;  %v3595_v12 = vadd.f32 1.0, %v6262_v14  ;;  %v5066_v2 = vmul.f32 -1.442695, %v8653_v44 }
 0x637   : > { %v6266_v21 = vpop.eup %6265  ;;  %6285 = vrcp.f32 %v3624_v10  ;;  %v3618_v8 = vadd.f32 1.0, %v6264_v63  ;;  %v8700_v14 = vpop.f32.mrb[172].mxu1  ;;  %v5031_v63 = vmul.f32 -1.442695, %v8667_v27 }
 0x638   : > { %v6268_v54 = vpop.eup %6267  ;;  %6287 = vrcp.f32 %v3595_v12  ;;  %v3596_v62 = vadd.f32 1.0, %v6266_v21  ;;  %v5060_v12 = vmul.f32 -1.442695, %v8683_v55  ;;  %v9635_v21 = vld [vmem:[#allocation17_spill] sm:$0xff]  ;;  %v8708_v9 = vpop.f32.mrb[173].mxu1 }
 0x639   : > { %v6270_v5 = vpop.eup %6269  ;;  %6289 = vrcp.f32 %v3618_v8  ;;  %v3627_v61 = vadd.f32 1.0, %v6268_v54  ;;  %v8706_v45 = vadd.f32 %v9635_v21, %v8263_v39  ;;  %v9636_v54 = vld [vmem:[#allocation13_spill] sm:$0xff]  ;;  %v8720_v21 = vadd.f32 %v8465_v47, %v8256_v48  ;;  %v5980_v47 = vld [vmem:[%s9442_s13 + $0x154] ss:$8 sps:$4 sm:$0xff]  }
 0x63a   : > { %v6272_v10 = vpop.eup %6271  ;;  %6291 = vrcp.f32 %v3596_v62  ;;  %v3874_v42 = vmul.f32 %v8595_v18, %v9636_v54  ;;  %v8714_v62 = vpop.f32.mrb[174].mxu1  ;;  %v8738_v33 = vmul.f32 %v6270_v5, %v8463_v57  ;;  %4503 = vmatprep.subr.bf16.mxu0 %v5980_v47 }
 0x63b   : > { %v6274_v8 = vpop.eup %6273  ;;  %v3877_v59 = vmul.f32 %v6272_v10, %v8473_v13  ;;  %6293 = vrcp.f32 %v3627_v61  ;;  %v8726_v18 = vpop.f32.mrb[175].mxu1  ;;  %v5978_v13 = vld [vmem:[%s9442_s13 + $0x150] ss:$8 sps:$4 sm:$0xff]   ;;  %v9637_v10 = vld [vmem:[#allocation14_spill] sm:$0xff]  ;;  %v5034_v5 = vmul.f32 -1.442695, %v8720_v21 }
 0x63c   : > { %v6276_v20 = vpop.eup %6275  ;;  %6295 = vpow2.f32 %v8631_v51  ;;  %v3875_v51 = vmul.f32 %v8600_v11, %v9637_v10  ;;  %9638 = vst [vmem:[#allocation44_spill] sm:$0xff] %v8738_v33  ;;  %4504 = vmatpush1.bf16.msra.mxu0 %v5978_v13 }
 0x63d   : > { %v6278_v61 = vpop.eup %6277  ;;  %v3878_v54 = vmul.f32 %v6276_v20, %v8498_v22  ;;  %6297 = vpow2.f32 %v5028_v1  ;;  %v3961_v46 = vpack.c.bf16 %v3877_v59, %v3874_v42  ;;  %v8748_v22 = vmul.f32 %v6274_v8, %v8482_v7  ;;  %v5981_v7 = vld [vmem:[%s9442_s13 + $0x160] ss:$8 sps:$4 sm:$0xff]  }
 0x63e   : > { %v6280_v30 = vpop.eup %6279  ;;  %v8741_v29 = vmul.f32 %v6278_v61, %v8507_v26  ;;  %6299 = vpow2.f32 %v5029_v32  ;;  %v5063_v26 = vmul.f32 -1.442695, %v8706_v45  ;;  %v8756_v42 = vadd.f32 %v8491_v40, %v8256_v48  ;;  %v5986_v40 = vld [vmem:[%s9442_s13 + $0x174] ss:$8 sps:$4 sm:$0xff]  }
 0x63f   : > { %v6282_v11 = vpop.eup %6281  ;;  %9641 = vst [vmem:[#allocation46_spill] sm:$0xff] %v8748_v22  ;;  %v8751_v20 = vmul.f32 %v6280_v30, %v8517_v37  ;;  %6301 = vpow2.f32 %v5066_v2  ;;  %v3962_v59 = vpack.c.bf16 %v3878_v54, %v3875_v51  ;;  %v5983_v37 = vld [vmem:[%s9442_s13 + $0x164] ss:$8 sps:$4 sm:$0xff]   ;;  %v8767_v32 = vpop.f32.mrb[176].mxu1  ;;  %v5035_v8 = vmul.f32 -1.442695, %v8724_v6 }
 0x640   : > { %9639 = vst [vmem:[#allocation45_spill] sm:$0xff] %v8741_v29  ;;  %v6284_v57 = vpop.eup %6283  ;;  %6303 = vpow2.f32 %v5031_v63  ;;  %v8775_v13 = vpop.f32.mrb[177].mxu1  ;;  %4505 = vmatprep.subr.bf16.mxu0 %v5983_v37  ;;  %v3880_v61 = vmul.f32 %v6282_v11, %v8526_v60  ;;  %v5078_v51 = vmul.f32 -1.442695, %v8745_v50  ;;  %v9643_v60 = vld [vmem:[#allocation23_spill] sm:$0xff] }
 0x641   : > { %9642 = vst [vmem:[#allocation47_spill] sm:$0xff] %v8751_v20  ;;  %v6286_v1 = vpop.eup %6285  ;;  %6305 = vpow2.f32 %v5060_v12  ;;  %4362 = vmatprep.mubr.bf16.mxu0 %v3962_v59  ;;  %v8782_v54 = vpop.f32.mrb[178].mxu1  ;;  %4506 = vmatpush1.bf16.msra.mxu0 %v5981_v7  ;;  %v3881_v11 = vmul.f32 %v6284_v57, %v9643_v60 }
 0x642   : > { %v6288_v63 = vpop.eup %6287  ;;  %6307 = vpow2.f32 %v5032_v56  ;;  %4363 = vmatmul.mubr.bf16.gmra.mrb[80].mxu0 %v3961_v46  ;;  %v5037_v56 = vmul.f32 -1.442695, %v8756_v42  ;;  %v8785_v30 = vpop.f32.mrb[179].mxu1  ;;  %v5984_v46 = vld [vmem:[%s9442_s13 + $0x170] ss:$8 sps:$4 sm:$0xff]   ;;  %4507 = vmatprep.subr.bf16.mxu0 %v5986_v40 }
 0x643   : > { %v8777_v12 = vpop.eup %6289  ;;  %v3883_v10 = vmul.f32 %v6288_v63, %v8549_v36  ;;  %6309 = vpow2.f32 %v5069_v38  ;;  %v9644_v63 = vld [vmem:[#allocation24_spill] sm:$0xff] }
 0x644   : > { %v6292_v47 = vpop.eup %6291  ;;  %6311 = vpow2.f32 %v5063_v26  ;;  %v8793_v26 = vmul.f32 %v6286_v1, %v9644_v63  ;;  %v9651_v63 = vld [vmem:[#allocation21_spill] sm:$0xff] }
 0x645   : > { %v6294_v59 = vpop.eup %6293  ;;  %v3884_v36 = vmul.f32 %v6292_v47, %v8570_v53  ;;  %6313 = vpow2.f32 %v5034_v5  ;;  %v3964_v38 = vpack.c.bf16 %v3883_v10, %v3880_v61  ;;  %4508 = vmatpush1.bf16.msra.mxu0 %v5984_v46  ;;  %v9657_v53 = vld [vmem:[#allocation27_spill] sm:$0xff] }
 0x646   : > { %v6296_v37 = vpop.eup %6295  ;;  %9645 = vst [vmem:[#allocation48_spill] sm:$0xff] %v8793_v26  ;;  %v8796_v49 = vmul.f32 %v6294_v59, %v8580_v25  ;;  %6315 = vpow2.f32 %v5035_v8  ;;  %v9650_v59 = vld [vmem:[#allocation20_spill] sm:$0xff]  ;;  %v8841_v26 = vadd.f32 %v9657_v53, %v8263_v39 }
 0x647   : > { %v6298_v7 = vpop.eup %6297  ;;  %v3621_v2 = vadd.f32 1.0, %v6296_v37  ;;  %6317 = vpow2.f32 %v5078_v51  ;;  %v3965_v33 = vpack.c.bf16 %v3884_v36, %v3881_v11  ;;  %v8800_v1 = vpop.f32.mrb[180].mxu1  ;;  %v8814_v60 = vadd.f32 %v9650_v59, %v8259_v3  ;;  %v9654_v59 = vld [vmem:[#allocation25_spill] sm:$0xff] }
 0x648   : > { %9646 = vst [vmem:[#allocation49_spill] sm:$0xff] %v8796_v49  ;;  %v6300_v29 = vpop.eup %6299  ;;  %v3598_v22 = vadd.f32 1.0, %v6298_v7  ;;  %6319 = vpow2.f32 %v5037_v56  ;;  %v8802_v8 = vpop.f32.mrb[181].mxu1  ;;  %v8818_v7 = vadd.f32 %v9651_v63, %v8263_v39 }
 0x649   : > { %v6302_v57 = vpop.eup %6301  ;;  %6321 = vrcp.f32 %v3621_v2  ;;  %v3599_v5 = vadd.f32 1.0, %v6300_v29  ;;  %4372 = vmatprep.mubr.bf16.mxu0 %v3965_v33  ;;  %v8804_v51 = vpop.f32.mrb[182].mxu1  ;;  %v9648_v2 = vld [vmem:[#allocation19_spill] sm:$0xff] }
 0x64a   : > { %v6304_v25 = vpop.eup %6303  ;;  %6323 = vrcp.f32 %v3598_v22  ;;  %v3636_v40 = vadd.f32 1.0, %v6302_v57  ;;  %4373 = vmatmul.mubr.bf16.gmra.mrb[84].mxu0 %v3964_v38  ;;  %9647 = vst [vmem:[#allocation50_spill] sm:$0xff] %v8804_v51  ;;  %v8808_v29 = vadd.f32 %v9648_v2, %v8263_v39  ;;  %v8810_v33 = vpop.f32.mrb[183].mxu1 }
 0x64b   : > { %v6306_v61 = vpop.eup %6305  ;;  %6325 = vrcp.f32 %v3599_v5  ;;  %v3601_v10 = vadd.f32 1.0, %v6304_v25  ;;  %9649 = vst [vmem:[#allocation51_spill] sm:$0xff] %v8810_v33 }
 0x64c   : > { %v6308_v47 = vpop.eup %6307  ;;  %6327 = vrcp.f32 %v3636_v40  ;;  %v3630_v56 = vadd.f32 1.0, %v6306_v61  ;;  %v5072_v25 = vmul.f32 -1.442695, %v8808_v29 }
 0x64d   : > { %v6310_v46 = vpop.eup %6309  ;;  %6329 = vrcp.f32 %v3601_v10  ;;  %v3602_v22 = vadd.f32 1.0, %v6308_v47  ;;  %v5038_v10 = vmul.f32 -1.442695, %v8814_v60  ;;  %v9652_v47 = vld [vmem:[#allocation22_spill] sm:$0xff] }
 0x64e   : > { %v6312_v11 = vpop.eup %6311  ;;  %6331 = vrcp.f32 %v3630_v56  ;;  %v3639_v36 = vadd.f32 1.0, %v6310_v46  ;;  %v8824_v56 = vadd.f32 %v9652_v47, %v8263_v39  ;;  %v5081_v47 = vmul.f32 -1.442695, %v8818_v7 }
 0x64f   : > { %v6314_v38 = vpop.eup %6313  ;;  %6333 = vrcp.f32 %v3602_v22  ;;  %v3633_v37 = vadd.f32 1.0, %v6312_v11  ;;  %v8826_v2 = vpop.f32.mrb[184].mxu1  ;;  %v8830_v11 = vadd.f32 %v9654_v59, %v8256_v48  ;;  %v9659_v59 = vld [vmem:[#allocation28_spill] sm:$0xff] }
 0x650   : > { %v6316_v57 = vpop.eup %6315  ;;  %6335 = vrcp.f32 %v3639_v36  ;;  %v3604_v5 = vadd.f32 1.0, %v6314_v38  ;;  %9653 = vst [vmem:[#allocation52_spill] sm:$0xff] %v8826_v2  ;;  %v9655_v36 = vld [vmem:[#allocation26_spill] sm:$0xff]  ;;  %v8847_v49 = vmul.f32 %v8777_v12, %v9659_v59  ;;  %v5075_v53 = vmul.f32 -1.442695, %v8824_v56 }
 0x651   : > { %v6318_v40 = vpop.eup %6317  ;;  %6337 = vrcp.f32 %v3633_v37  ;;  %v3605_v61 = vadd.f32 1.0, %v6316_v57  ;;  %v8834_v38 = vadd.f32 %v9655_v36, %v8259_v3  ;;  %v8836_v37 = vpop.f32.mrb[185].mxu1 }
 0x652   : > { %v6320_v46 = vpop.eup %6319  ;;  %6339 = vrcp.f32 %v3604_v5  ;;  %v3648_v22 = vadd.f32 1.0, %v6318_v40  ;;  %9656 = vst [vmem:[#allocation53_spill] sm:$0xff] %v8836_v37  ;;  %v8843_v5 = vpop.f32.mrb[186].mxu1  ;;  %9660 = vst [vmem:[#allocation55_spill] sm:$0xff] %v8847_v49 }
 0x653   : > { %v6322_v63 = vpop.eup %6321  ;;  %6341 = vrcp.f32 %v3605_v61  ;;  %v3607_v57 = vadd.f32 1.0, %v6320_v46  ;;  %9658 = vst [vmem:[#allocation54_spill] sm:$0xff] %v8843_v5  ;;  %v9662_v61 = vld [vmem:[#allocation29_spill] sm:$0xff]  ;;  %v8856_v20 = vpop.f32.mrb[187].mxu1  ;;  %v8874_v5 = vadd.f32 %v9666_v43, %v8263_v39  ;;  %v8886_v43 = vadd.f32 %v8593_v41, %v8256_v48 }
 0x654   : > { %v6324_v40 = vpop.eup %6323  ;;  %v8850_v36 = vmul.f32 %v6322_v63, %v8604_v58  ;;  %6343 = vrcp.f32 %v3648_v22  ;;  %v8854_v46 = vadd.f32 %v9662_v61, %v8256_v48  ;;  %9663 = vst [vmem:[#allocation57_spill] sm:$0xff] %v8856_v20  ;;  %v5040_v58 = vmul.f32 -1.442695, %v8830_v11 }
 0x655   : > { %v6326_v19 = vpop.eup %6325  ;;  %6345 = vrcp.f32 %v3607_v57  ;;  %v5041_v22 = vmul.f32 -1.442695, %v8834_v38  ;;  %v5090_v61 = vmul.f32 -1.442695, %v8841_v26  ;;  %v9665_v57 = vld [vmem:[#allocation31_spill] sm:$0xff]  ;;  %v3886_v37 = vmul.f32 %v6324_v40, %v8639_v28 }
 0x656   : > { %9661 = vst [vmem:[#allocation56_spill] sm:$0xff] %v8850_v36  ;;  %v6328_v12 = vpop.eup %6327  ;;  %6347 = vpow2.f32 %v5072_v25  ;;  %v8870_v20 = vadd.f32 %v9665_v57, %v8259_v3  ;;  %v5043_v63 = vmul.f32 -1.442695, %v8854_v46  ;;  %v9667_v36 = vld [vmem:[#allocation33_spill] sm:$0xff]  ;;  %v5093_v41 = vmul.f32 -1.442695, %v8874_v5 }
 0x657   : > { %v6330_v59 = vpop.eup %6329  ;;  %6349 = vpow2.f32 %v5038_v10  ;;  %v5084_v10 = vmul.f32 -1.442695, %v8861_v24  ;;  %v8882_v57 = vadd.f32 %v9667_v36, %v8263_v39  ;;  %v8888_v33 = vpop.f32.mrb[188].mxu1 }
 0x658   : > { %v6332_v25 = vpop.eup %6331  ;;  %v3889_v2 = vmul.f32 %v6330_v59, %v8667_v27  ;;  %6351 = vpow2.f32 %v5081_v47  ;;  %9668 = vst [vmem:[#allocation58_spill] sm:$0xff] %v8888_v33  ;;  %v3887_v27 = vmul.f32 %v6326_v19, %v8649_v4  ;;  %v5044_v39 = vmul.f32 -1.442695, %v8870_v20 }
 0x659   : > { %v6334_v49 = vpop.eup %6333  ;;  %6353 = vpow2.f32 %v5075_v53  ;;  %v8892_v53 = vpop.f32.mrb[189].mxu1  ;;  %v8902_v19 = vmul.f32 %v6332_v25, %v8683_v55  ;;  %v5046_v55 = vmul.f32 -1.442695, %v8886_v43 }
 0x65a   : > { %v6336_v28 = vpop.eup %6335  ;;  %v3890_v47 = vmul.f32 %v6334_v49, %v8687_v35  ;;  %6355 = vpow2.f32 %v5040_v58  ;;  %v3967_v40 = vpack.c.bf16 %v3889_v2, %v3886_v37  ;;  %v8899_v36 = vpop.f32.mrb[190].mxu1  ;;  %v8912_v2 = vmul.f32 %v6328_v12, %v8653_v44 }
 0x65b   : > { %v6338_v59 = vpop.eup %6337  ;;  %v8895_v51 = vmul.f32 %v6336_v28, %v8696_v0  ;;  %6357 = vpow2.f32 %v5041_v22  ;;  %9670 = vst [vmem:[#allocation60_spill] sm:$0xff] %v8902_v19  ;;  %v8907_v49 = vpop.f32.mrb[191].mxu1  ;;  %v5087_v37 = vmul.f32 -1.442695, %v8882_v57 }
 0x65c   : > { %v6340_v33 = vpop.eup %6339  ;;  %v8905_v4 = vmul.f32 %v6338_v59, %v8706_v45  ;;  %6359 = vpow2.f32 %v5090_v61  ;;  %v3968_v35 = vpack.c.bf16 %v3890_v47, %v3887_v27  ;;  %9671 = vst [vmem:[#allocation12_spill] sm:$0xff] %v8912_v2 }
 0x65d   : > { %9669 = vst [vmem:[#allocation59_spill] sm:$0xff] %v8895_v51  ;;  %v8909_v0 = vpop.eup %6341  ;;  %6361 = vpow2.f32 %v5043_v63  ;;  %v8923_v12 = vmul.f32 %v6340_v33, %v8720_v21 }
 0x65e   : > { %v8915_v58 = vpop.eup %6343  ;;  %6363 = vpow2.f32 %v5084_v10  ;;  %4382 = vmatprep.mubr.bf16.mxu0 %v3968_v35  ;;  %v3893_v2 = vmul.f32 %v8909_v0, %v8724_v6 }
 0x65f   : > { %v6346_v22 = vpop.eup %6345  ;;  %6365 = vpow2.f32 %v5044_v39  ;;  %4383 = vmatmul.mubr.bf16.gmra.mrb[88].mxu0 %v3967_v40  ;;  %v8928_v28 = vpop.f32.mrb[192].mxu1  ;;  %v8986_v51 = vmul.f32 %v8915_v58, %v8745_v50  ;;  %v9003_v50 = vadd.f32 %v8726_v18, %v8259_v3 }
 0x660   : > { %v6348_v44 = vpop.eup %6347  ;;  %v8926_v63 = vmul.f32 %v6346_v22, %v8756_v42  ;;  %6367 = vpow2.f32 %v5093_v41  ;;  %v8932_v59 = vpop.f32.mrb[193].mxu1 }
 0x661   : > { %v6350_v25 = vpop.eup %6349  ;;  %v3642_v10 = vadd.f32 1.0, %v6348_v44  ;;  %6369 = vpow2.f32 %v5087_v37  ;;  %v8934_v33 = vpop.f32.mrb[194].mxu1 }
 0x662   : > { %v6352_v27 = vpop.eup %6351  ;;  %v3608_v47 = vadd.f32 1.0, %v6350_v25  ;;  %6371 = vpow2.f32 %v5046_v55  ;;  %v8936_v35 = vpop.f32.mrb[195].mxu1 }
 0x663   : > { %v6354_v39 = vpop.eup %6353  ;;  %6373 = vrcp.f32 %v3642_v10  ;;  %v3651_v21 = vadd.f32 1.0, %v6352_v27  ;;  %v8940_v10 = vadd.f32 %v8598_v23, %v8259_v3  ;;  %v8956_v23 = vadd.f32 %v8655_v17, %v8259_v3 }
 0x664   : > { %v6356_v42 = vpop.eup %6355  ;;  %6375 = vrcp.f32 %v3608_v47  ;;  %v3645_v41 = vadd.f32 1.0, %v6354_v39  ;;  %v8944_v47 = vadd.f32 %v8606_v16, %v8256_v48  ;;  %v8948_v39 = vadd.f32 %v8608_v34, %v8259_v3 }
 0x665   : > { %v6358_v37 = vpop.eup %6357  ;;  %6377 = vrcp.f32 %v3651_v21  ;;  %v3610_v22 = vadd.f32 1.0, %v6356_v42  ;;  %v8960_v16 = vadd.f32 %v8663_v31, %v8256_v48  ;;  %v8964_v34 = vadd.f32 %v8669_v15, %v8259_v3 }
 0x666   : > { %v6360_v44 = vpop.eup %6359  ;;  %6379 = vrcp.f32 %v3645_v41  ;;  %v3611_v55 = vadd.f32 1.0, %v6358_v37  ;;  %v8952_v41 = vadd.f32 %v8641_v52, %v8256_v48  ;;  %v5047_v52 = vmul.f32 -1.442695, %v8940_v10 }
 0x667   : > { %v6362_v25 = vpop.eup %6361  ;;  %6381 = vrcp.f32 %v3610_v22  ;;  %v3660_v61 = vadd.f32 1.0, %v6360_v44  ;;  %v5053_v15 = vmul.f32 -1.442695, %v8956_v23 }
 0x668   : > { %v6364_v27 = vpop.eup %6363  ;;  %6383 = vrcp.f32 %v3611_v55  ;;  %v3613_v45 = vadd.f32 1.0, %v6362_v25  ;;  %v5049_v25 = vmul.f32 -1.442695, %v8944_v47 }
 0x669   : > { %v6366_v21 = vpop.eup %6365  ;;  %6385 = vrcp.f32 %v3660_v61  ;;  %v3654_v42 = vadd.f32 1.0, %v6364_v27 }
 0x66a   : > { %v6368_v37 = vpop.eup %6367  ;;  %6387 = vrcp.f32 %v3613_v45  ;;  %v3614_v22 = vadd.f32 1.0, %v6366_v21  ;;  %v5050_v45 = vmul.f32 -1.442695, %v8948_v39  ;;  %v5052_v21 = vmul.f32 -1.442695, %v8952_v41 }
 0x66b   : > { %v6370_v61 = vpop.eup %6369  ;;  %6389 = vrcp.f32 %v3654_v42  ;;  %v3663_v44 = vadd.f32 1.0, %v6368_v37  ;;  %v5055_v42 = vmul.f32 -1.442695, %v8960_v16  ;;  %v5056_v37 = vmul.f32 -1.442695, %v8964_v34 }
 0x66c   : > { %v6372_v55 = vpop.eup %6371  ;;  %6391 = vrcp.f32 %v3614_v22  ;;  %v3657_v17 = vadd.f32 1.0, %v6370_v61  ;;  %v8975_v22 = vadd.f32 %v8700_v14, %v8256_v48  ;;  %v8993_v14 = vadd.f32 %v8714_v62, %v8256_v48 }
 0x66d   : > { %v6374_v27 = vpop.eup %6373  ;;  %6393 = vrcp.f32 %v3663_v44  ;;  %v3616_v31 = vadd.f32 1.0, %v6372_v55  ;;  %v8982_v55 = vadd.f32 %v8708_v9, %v8259_v3 }
 0x66e   : > { %v6376_v40 = vpop.eup %6375  ;;  %6395 = vrcp.f32 %v3657_v17 }
 0x66f   : > { %v6378_v61 = vpop.eup %6377  ;;  %v3896_v44 = vmul.f32 %v6376_v40, %v8814_v60  ;;  %6397 = vrcp.f32 %v3616_v31  ;;  %v8996_v60 = vmul.f32 %v6374_v27, %v8808_v29  ;;  %v5059_v18 = vmul.f32 -1.442695, %v8982_v55 }
 0x670   : > { %v6380_v17 = vpop.eup %6379  ;;  %v8989_v19 = vmul.f32 %v6378_v61, %v8818_v7  ;;  %6399 = vpow2.f32 %v5047_v52  ;;  %v9007_v7 = vadd.f32 %v8767_v32, %v8256_v48  ;;  %v9672_v52 = vpack.c.bf16 %v8926_v63, %v8923_v12 }
 0x671   : > { %v6382_v6 = vpop.eup %6381  ;;  %v8999_v9 = vmul.f32 %v6380_v17, %v8824_v56  ;;  %6401 = vpow2.f32 %v5049_v25  ;;  %v3971_v0 = vpack.c.bf16 %v3896_v44, %v3893_v2  ;;  %v5058_v56 = vmul.f32 -1.442695, %v8975_v22 }
 0x672   : > { %v6384_v40 = vpop.eup %6383  ;;  %6403 = vpow2.f32 %v5050_v45  ;;  %v3993_v62 = vpack.c.bf16 %v8989_v19, %v8986_v51  ;;  %v9020_v32 = vadd.f32 %v8775_v13, %v8259_v3  ;;  %v3898_v45 = vmul.f32 %v6382_v6, %v8830_v11  ;;  %v9718_v19 = vld [vmem:[#allocation10_spill] sm:$0xff] }
 0x673   : > { %v6386_v29 = vpop.eup %6385  ;;  %6405 = vpow2.f32 %v5052_v21  ;;  %4392 = vmatprep.mubr.bf16.mxu0 %v3971_v0  ;;  %v3990_v2 = vpack.c.bf16 %v8999_v9, %v8996_v60  ;;  %v5061_v31 = vmul.f32 -1.442695, %v8993_v14  ;;  %v5064_v61 = vmul.f32 -1.442695, %v9007_v7  ;;  %v4048_v60 = vld [vmem:[%s9443_s14] sm:$0x3] }
 0x674   : > { %v6388_v58 = vpop.eup %6387  ;;  %6407 = vpow2.f32 %v5053_v15  ;;  %4393 = vmatmul.mubr.bf16.gmra.mrb[92].mxu0 %v9672_v52  ;;  %v5062_v15 = vmul.f32 -1.442695, %v9003_v50  ;;  %v3899_v63 = vmul.f32 %v6384_v40, %v8834_v38  ;;  %v9030_v11 = vmul.f32 %v6386_v29, %v8841_v26  ;;  %v9717_v9 = vld [vmem:[#allocation11_spill] sm:$0xff] }
 0x675   : > { %v6390_v25 = vpop.eup %6389  ;;  %v3901_v27 = vmul.f32 %v6388_v58, %v8854_v46  ;;  %6409 = vpow2.f32 %v5055_v42  ;;  %v5065_v42 = vmul.f32 -1.442695, %v9020_v32  ;;  %v9240_v51 = vrot.slane %v4048_v60, %v9717_v9 }
 0x676   : > { %v6392_v21 = vpop.eup %6391  ;;  %6411 = vpow2.f32 %v5056_v37  ;;  %v9039_v6 = vmul.f32 %v6390_v25, %v8861_v24 }
 0x677   : > { %v6394_v12 = vpop.eup %6393  ;;  %v3902_v13 = vmul.f32 %v6392_v21, %v8870_v20  ;;  %6413 = vpow2.f32 %v5058_v56  ;;  %v3973_v44 = vpack.c.bf16 %v3901_v27, %v3898_v45 }
 0x678   : > { %v6396_v17 = vpop.eup %6395  ;;  %v9033_v46 = vmul.f32 %v6394_v12, %v8874_v5  ;;  %6415 = vpow2.f32 %v5059_v18 }
 0x679   : > { %v9036_v37 = vpop.eup %6397  ;;  %v9042_v38 = vmul.f32 %v6396_v17, %v8882_v57  ;;  %6417 = vpow2.f32 %v5061_v31  ;;  %v3974_v20 = vpack.c.bf16 %v3902_v13, %v3899_v63  ;;  %v9054_v13 = vadd.f32 %v8785_v30, %v8259_v3 }
 0x67a   : > { %v6400_v0 = vpop.eup %6399  ;;  %6419 = vpow2.f32 %v5062_v15 }
 0x67b   : > { %v6402_v5 = vpop.eup %6401  ;;  %v3617_v40 = vadd.f32 1.0, %v6400_v0  ;;  %6421 = vpow2.f32 %v5064_v61  ;;  %4402 = vmatprep.mubr.bf16.mxu0 %v3974_v20  ;;  %v3996_v29 = vpack.c.bf16 %v9042_v38, %v9039_v6  ;;  %v9050_v61 = vadd.f32 %v8782_v54, %v8256_v48 }
 0x67c   : > { %v6404_v56 = vpop.eup %6403  ;;  %v3619_v24 = vadd.f32 1.0, %v6402_v5  ;;  %6423 = vpow2.f32 %v5065_v42  ;;  %4403 = vmatmul.mubr.bf16.gmra.mrb[96].mxu0 %v3973_v44  ;;  %v9058_v42 = vadd.f32 %v8800_v1, %v8256_v48  ;;  %v9062_v54 = vadd.f32 %v8802_v8, %v8259_v3  ;;  %v9673_v5 = vld [vmem:[#allocation50_spill] sm:$0xff]  ;;  %v9675_v8 = vld [vmem:[#allocation52_spill] sm:$0xff] }
 0x67d   : > { %v6406_v57 = vpop.eup %6405  ;;  %6425 = vrcp.f32 %v3617_v40  ;;  %v3620_v58 = vadd.f32 1.0, %v6404_v56  ;;  %v9066_v40 = vadd.f32 %v9673_v5, %v8256_v48  ;;  %v3904_v5 = vmul.f32 %v9036_v37, %v8886_v43  ;;  %v9678_v43 = vld [vmem:[#allocation57_spill] sm:$0xff] }
 0x67e   : > { %v6408_v18 = vpop.eup %6407  ;;  %6427 = vrcp.f32 %v3619_v24  ;;  %v3622_v52 = vadd.f32 1.0, %v6406_v57  ;;  %v5067_v24 = vmul.f32 -1.442695, %v9050_v61  ;;  %v9674_v57 = vld [vmem:[#allocation51_spill] sm:$0xff]  ;;  %v9099_v37 = vadd.f32 %v9678_v43, %v8259_v3 }
 0x67f   : > { %v6410_v25 = vpop.eup %6409  ;;  %6429 = vrcp.f32 %v3620_v58  ;;  %v3623_v45 = vadd.f32 1.0, %v6408_v18  ;;  %v9071_v1 = vadd.f32 %v9674_v57, %v8259_v3 }
 0x680   : > { %v6412_v27 = vpop.eup %6411  ;;  %6431 = vrcp.f32 %v3622_v52  ;;  %v3625_v31 = vadd.f32 1.0, %v6410_v25  ;;  %v5068_v52 = vmul.f32 -1.442695, %v9054_v13  ;;  %v9076_v25 = vadd.f32 %v9675_v8, %v8256_v48 }
 0x681   : > { %v6414_v21 = vpop.eup %6413  ;;  %6433 = vrcp.f32 %v3623_v45  ;;  %v3626_v15 = vadd.f32 1.0, %v6412_v27 }
 0x682   : > { %v6416_v12 = vpop.eup %6415  ;;  %6435 = vrcp.f32 %v3625_v31  ;;  %v3628_v63 = vadd.f32 1.0, %v6414_v21  ;;  %v5070_v31 = vmul.f32 -1.442695, %v9058_v42  ;;  %v9676_v21 = vld [vmem:[#allocation53_spill] sm:$0xff]  ;;  %v5076_v8 = vmul.f32 -1.442695, %v9076_v25 }
 0x683   : > { %v6418_v44 = vpop.eup %6417  ;;  %6437 = vrcp.f32 %v3626_v15  ;;  %v3629_v17 = vadd.f32 1.0, %v6416_v12  ;;  %v9081_v15 = vadd.f32 %v9676_v21, %v8259_v3 }
 0x684   : > { %v6420_v20 = vpop.eup %6419  ;;  %6439 = vrcp.f32 %v3628_v63  ;;  %v3631_v0 = vadd.f32 1.0, %v6418_v44  ;;  %v5071_v63 = vmul.f32 -1.442695, %v9062_v54  ;;  %v5073_v44 = vmul.f32 -1.442695, %v9066_v40 }
 0x685   : > { %v6422_v30 = vpop.eup %6421  ;;  %6441 = vrcp.f32 %v3629_v17  ;;  %v3632_v56 = vadd.f32 1.0, %v6420_v20  ;;  %v9677_v17 = vld [vmem:[#allocation54_spill] sm:$0xff]  ;;  %v5077_v26 = vmul.f32 -1.442695, %v9081_v15 }
 0x686   : > { %v6424_v58 = vpop.eup %6423  ;;  %6443 = vrcp.f32 %v3631_v0  ;;  %v3634_v18 = vadd.f32 1.0, %v6422_v30  ;;  %v9087_v20 = vadd.f32 %v9677_v17, %v8256_v48 }
 0x687   : > { %v6426_v45 = vpop.eup %6425  ;;  %6445 = vrcp.f32 %v3632_v56  ;;  %v3635_v27 = vadd.f32 1.0, %v6424_v58  ;;  %v5074_v56 = vmul.f32 -1.442695, %v9071_v1 }
 0x688   : > { %v6428_v12 = vpop.eup %6427  ;;  %6447 = vrcp.f32 %v3634_v18  ;;  %v3905_v58 = vmul.f32 %v6426_v45, %v8940_v10  ;;  %v9679_v10 = vld [vmem:[#allocation58_spill] sm:$0xff] }
 0x689   : > { %v6430_v0 = vpop.eup %6429  ;;  %v3907_v30 = vmul.f32 %v6428_v12, %v8944_v47  ;;  %6449 = vrcp.f32 %v3635_v27  ;;  %v5079_v12 = vmul.f32 -1.442695, %v9087_v20 }
 0x68a   : > { %v6432_v57 = vpop.eup %6431  ;;  %v3908_v18 = vmul.f32 %v6430_v0, %v8948_v39  ;;  %6451 = vpow2.f32 %v5067_v24  ;;  %v9104_v39 = vadd.f32 %v9679_v10, %v8256_v48  ;;  %v9110_v0 = vadd.f32 %v8892_v53, %v8259_v3 }
 0x68b   : > { %v6434_v21 = vpop.eup %6433  ;;  %6453 = vpow2.f32 %v5068_v52  ;;  %v3976_v17 = vpack.c.bf16 %v3907_v30, %v3904_v5  ;;  %v3910_v45 = vmul.f32 %v6432_v57, %v8952_v41  ;;  %v5080_v41 = vmul.f32 -1.442695, %v9099_v37 }
 0x68c   : > { %v6436_v47 = vpop.eup %6435  ;;  %6455 = vpow2.f32 %v5070_v31  ;;  %v3977_v27 = vpack.c.bf16 %v3908_v18, %v3905_v58  ;;  %v3911_v31 = vmul.f32 %v6434_v21, %v8956_v23  ;;  %v9116_v58 = vadd.f32 %v8899_v36, %v8256_v48 }
 0x68d   : > { %v6438_v24 = vpop.eup %6437  ;;  %v3913_v52 = vmul.f32 %v6436_v47, %v8960_v16  ;;  %6457 = vpow2.f32 %v5071_v63  ;;  %v5082_v57 = vmul.f32 -1.442695, %v9104_v39  ;;  %v5083_v36 = vmul.f32 -1.442695, %v9110_v0 }
 0x68e   : > { %v6440_v5 = vpop.eup %6439  ;;  %v3914_v30 = vmul.f32 %v6438_v24, %v8964_v34  ;;  %6459 = vpow2.f32 %v5073_v44  ;;  %4412 = vmatprep.mubr.bf16.mxu0 %v3977_v27 }
 0x68f   : > { %v6442_v18 = vpop.eup %6441  ;;  %6461 = vpow2.f32 %v5074_v56  ;;  %4413 = vmatmul.mubr.bf16.gmra.mrb[100].mxu0 %v3976_v17  ;;  %v3979_v16 = vpack.c.bf16 %v3913_v52, %v3910_v45  ;;  %v3916_v34 = vmul.f32 %v6440_v5, %v8975_v22 }
 0x690   : > { %v6444_v63 = vpop.eup %6443  ;;  %6463 = vpow2.f32 %v5076_v8  ;;  %v3980_v53 = vpack.c.bf16 %v3914_v30, %v3911_v31  ;;  %v3917_v56 = vmul.f32 %v6442_v18, %v8982_v55  ;;  %v5085_v8 = vmul.f32 -1.442695, %v9116_v58 }
 0x691   : > { %v6446_v23 = vpop.eup %6445  ;;  %v3919_v44 = vmul.f32 %v6444_v63, %v8993_v14  ;;  %6465 = vpow2.f32 %v5077_v26 }
 0x692   : > { %v6448_v21 = vpop.eup %6447  ;;  %v3920_v17 = vmul.f32 %v6446_v23, %v9003_v50  ;;  %6467 = vpow2.f32 %v5079_v12  ;;  %4422 = vmatprep.mubr.bf16.mxu0 %v3980_v53 }
 0x693   : > { %v6450_v43 = vpop.eup %6449  ;;  %6469 = vpow2.f32 %v5080_v41  ;;  %v3982_v47 = vpack.c.bf16 %v3919_v44, %v3916_v34  ;;  %v9132_v34 = vadd.f32 %v8928_v28, %v8256_v48 }
 0x694   : > { %v6452_v27 = vpop.eup %6451  ;;  %6471 = vpow2.f32 %v5082_v57  ;;  %v3983_v22 = vpack.c.bf16 %v3920_v17, %v3917_v56  ;;  %v9128_v57 = vadd.f32 %v8907_v49, %v8259_v3  ;;  %v9136_v56 = vadd.f32 %v8932_v59, %v8259_v3 }
 0x695   : > { %v6454_v10 = vpop.eup %6453  ;;  %v3637_v14 = vadd.f32 1.0, %v6452_v27  ;;  %6473 = vpow2.f32 %v5083_v36  ;;  %v9140_v49 = vadd.f32 %v8934_v33, %v8256_v48 }
 0x696   : > { %v6456_v26 = vpop.eup %6455  ;;  %v3638_v24 = vadd.f32 1.0, %v6454_v10  ;;  %6475 = vpow2.f32 %v5085_v8  ;;  %v5086_v28 = vmul.f32 -1.442695, %v9128_v57  ;;  %v5089_v48 = vmul.f32 -1.442695, %v9136_v56 }
 0x697   : > { %v6458_v45 = vpop.eup %6457  ;;  %6477 = vrcp.f32 %v3637_v14  ;;  %v3640_v55 = vadd.f32 1.0, %v6456_v26  ;;  %4423 = vmatmul.mubr.bf16.gmra.mrb[104].mxu0 %v3979_v16  ;;  %v5088_v14 = vmul.f32 -1.442695, %v9132_v34 }
 0x698   : > { %v6460_v50 = vpop.eup %6459  ;;  %6479 = vrcp.f32 %v3638_v24  ;;  %v3641_v12 = vadd.f32 1.0, %v6458_v45  ;;  %4432 = vmatprep.mubr.bf16.mxu0 %v3983_v22  ;;  %v9145_v22 = vadd.f32 %v8936_v35, %v8259_v3  ;;  %v3923_v45 = vmul.f32 %v6450_v43, %v9020_v32 }
 0x699   : > { %v6462_v52 = vpop.eup %6461  ;;  %6481 = vrcp.f32 %v3640_v55  ;;  %v3643_v5 = vadd.f32 1.0, %v6460_v50  ;;  %v5091_v3 = vmul.f32 -1.442695, %v9140_v49 }
 0x69a   : > { %v6464_v31 = vpop.eup %6463  ;;  %6483 = vrcp.f32 %v3641_v12  ;;  %v3644_v30 = vadd.f32 1.0, %v6462_v52  ;;  %v5092_v50 = vmul.f32 -1.442695, %v9145_v22 }
 0x69b   : > { %v6466_v18 = vpop.eup %6465  ;;  %6485 = vrcp.f32 %v3643_v5  ;;  %v3646_v41 = vadd.f32 1.0, %v6464_v31 }
 0x69c   : > { %v6468_v63 = vpop.eup %6467  ;;  %6487 = vrcp.f32 %v3644_v30  ;;  %v3647_v53 = vadd.f32 1.0, %v6466_v18 }
 0x69d   : > { %v6470_v16 = vpop.eup %6469  ;;  %6489 = vrcp.f32 %v3646_v41  ;;  %v3649_v23 = vadd.f32 1.0, %v6468_v63 }
 0x69e   : > { %v6472_v44 = vpop.eup %6471  ;;  %6491 = vrcp.f32 %v3647_v53  ;;  %v3650_v36 = vadd.f32 1.0, %v6470_v16 }
 0x69f   : > { %v6474_v17 = vpop.eup %6473  ;;  %6493 = vrcp.f32 %v3649_v23  ;;  %v3652_v8 = vadd.f32 1.0, %v6472_v44  ;;  %4433 = vmatmul.mubr.bf16.gmra.mrb[108].mxu0 %v3982_v47  ;;  %v3922_v47 = vmul.f32 %v6448_v21, %v9007_v7 }
 0x6a0   : > { %v6476_v27 = vpop.eup %6475  ;;  %6495 = vrcp.f32 %v3650_v36  ;;  %v3653_v23 = vadd.f32 1.0, %v6474_v17 }
 0x6a1   : > { %v6478_v10 = vpop.eup %6477  ;;  %6497 = vrcp.f32 %v3652_v8  ;;  %v3655_v59 = vadd.f32 1.0, %v6476_v27 }
 0x6a2   : > { %v6480_v26 = vpop.eup %6479  ;;  %v3925_v24 = vmul.f32 %v6478_v10, %v9050_v61 }
 0x6a3   : > { %v6482_v33 = vpop.eup %6481  ;;  %v3926_v55 = vmul.f32 %v6480_v26, %v9054_v13  ;;  %6499 = vrcp.f32 %v3655_v59 }
 0x6a4   : > { %v6484_v35 = vpop.eup %6483  ;;  %6501 = vpow2.f32 %v5086_v28  ;;  %v3985_v12 = vpack.c.bf16 %v3925_v24, %v3922_v47  ;;  %v3928_v61 = vmul.f32 %v6482_v33, %v9058_v42 }
 0x6a5   : > { %v6486_v52 = vpop.eup %6485  ;;  %6503 = vpow2.f32 %v5088_v14  ;;  %v3986_v7 = vpack.c.bf16 %v3926_v55, %v3923_v45  ;;  %v3929_v13 = vmul.f32 %v6484_v35, %v9062_v54 }
 0x6a6   : > { %v6488_v21 = vpop.eup %6487  ;;  %v3931_v5 = vmul.f32 %v6486_v52, %v9066_v40  ;;  %6505 = vpow2.f32 %v5089_v48 }
 0x6a7   : > { %v6490_v32 = vpop.eup %6489  ;;  %v3932_v43 = vmul.f32 %v6488_v21, %v9071_v1  ;;  %6507 = vpow2.f32 %v5091_v3  ;;  %4442 = vmatprep.mubr.bf16.mxu0 %v3986_v7 }
 0x6a8   : > { %v6492_v31 = vpop.eup %6491  ;;  %6509 = vpow2.f32 %v5092_v50  ;;  %4443 = vmatmul.mubr.bf16.gmra.mrb[112].mxu0 %v3985_v12  ;;  %v3988_v30 = vpack.c.bf16 %v3931_v5, %v3928_v61  ;;  %v3934_v53 = vmul.f32 %v6490_v32, %v9076_v25  ;;  %v9682_v5 = vld [vmem:[#allocation15_spill] sm:$0xff] }
 0x6a9   : > { %v6494_v18 = vpop.eup %6493  ;;  %v3989_v41 = vpack.c.bf16 %v3932_v43, %v3929_v13  ;;  %v3935_v16 = vmul.f32 %v6492_v31, %v9081_v15  ;;  %6511 = vrcp.f32 %v3653_v23  ;;  %v9690_v31 = vld [vmem:[#allocation39_spill] sm:$0xff]  ;;  %v9700_v23 = vld [vmem:[#allocation46_spill] sm:$0xff] }
 0x6aa   : > { %v6496_v63 = vpop.eup %6495  ;;  %v3937_v42 = vmul.f32 %v6494_v18, %v9087_v20 }
 0x6ab   : > { %v6498_v40 = vpop.eup %6497  ;;  %v3938_v54 = vmul.f32 %v6496_v63, %v9099_v37  ;;  %4452 = vmatprep.mubr.bf16.mxu0 %v3989_v41  ;;  %v9693_v41 = vld [vmem:[#allocation41_spill] sm:$0xff]  ;;  %v9694_v63 = vld [vmem:[#allocation43_spill] sm:$0xff] }
 0x6ac   : > { %v3991_v1 = vpack.c.bf16 %v3937_v42, %v3934_v53  ;;  %v3940_v27 = vmul.f32 %v6498_v40, %v9104_v39  ;;  %v9695_v53 = vpack.c.bf16 %v9693_v41, %v9694_v63  ;;  %v9696_v42 = vld [vmem:[#allocation40_spill] sm:$0xff]  ;;  %v9697_v40 = vld [vmem:[#allocation42_spill] sm:$0xff] }
 0x6ad   : > { %v6500_v44 = vpop.eup %6499  ;;  %v3992_v36 = vpack.c.bf16 %v3938_v54, %v3935_v16  ;;  %v9698_v16 = vpack.c.bf16 %v9696_v42, %v9697_v40  ;;  %v9699_v54 = vld [vmem:[#allocation47_spill] sm:$0xff] }
 0x6ae   : > { %v6502_v8 = vpop.eup %6501  ;;  %v3943_v28 = vmul.f32 %v6500_v44, %v9116_v58  ;;  %v9702_v44 = vld [vmem:[#allocation45_spill] sm:$0xff] }
 0x6af   : > { %v6504_v10 = vpop.eup %6503  ;;  %v3656_v25 = vadd.f32 1.0, %v6502_v8 }
 0x6b0   : > { %v6506_v59 = vpop.eup %6505  ;;  %v3658_v20 = vadd.f32 1.0, %v6504_v10  ;;  %4453 = vmatmul.mubr.bf16.gmra.mrb[116].mxu0 %v3988_v30  ;;  %v3994_v14 = vpack.c.bf16 %v3943_v28, %v3940_v27  ;;  %v9691_v30 = vld [vmem:[#allocation37_spill] sm:$0xff]  ;;  %v9705_v27 = vld [vmem:[#allocation56_spill] sm:$0xff]  ;;  %v9706_v28 = vld [vmem:[#allocation55_spill] sm:$0xff] }
 0x6b1   : > { %v6508_v15 = vpop.eup %6507  ;;  %6513 = vrcp.f32 %v3656_v25  ;;  %v3659_v37 = vadd.f32 1.0, %v6506_v59  ;;  %4462 = vmatprep.mubr.bf16.mxu0 %v3992_v36  ;;  %v9692_v18 = vpack.c.bf16 %v9690_v31, %v9691_v30  ;;  %v9703_v36 = vld [vmem:[#allocation44_spill] sm:$0xff]  ;;  %v9707_v10 = vpack.c.bf16 %v9705_v27, %v9706_v28  ;;  %v9708_v25 = vld [vmem:[#allocation49_spill] sm:$0xff] }
 0x6b2   : > { %v6510_v17 = vpop.eup %6509  ;;  %6515 = vrcp.f32 %v3658_v20  ;;  %v3661_v26 = vadd.f32 1.0, %v6508_v15  ;;  %v9704_v8 = vpack.c.bf16 %v9702_v44, %v9703_v36  ;;  %v9709_v59 = vld [vmem:[#allocation48_spill] sm:$0xff] }
 0x6b3   : > { %6517 = vrcp.f32 %v3659_v37  ;;  %v3662_v47 = vadd.f32 1.0, %v6510_v17  ;;  %v6512_v39 = vpop.eup %6511  ;;  %v9710_v20 = vpack.c.bf16 %v9708_v25, %v9709_v59  ;;  %v9713_v37 = vld [vmem:[#allocation59_spill] sm:$0xff]  ;;  %v9714_v17 = vld [vmem:[#allocation12_spill] sm:$0xff] }
 0x6b4   : > { %6519 = vrcp.f32 %v3661_v26  ;;  %v3941_v48 = vmul.f32 %v6512_v39, %v9110_v0  ;;  %v9680_v0 = vmov 0   ;;  %v9715_v26 = vpack.c.bf16 %v9713_v37, %v9714_v17 }
 0x6b5   : > { %6521 = vrcp.f32 %v3662_v47 }
 0x6b8   : > { %4463 = vmatmul.mubr.bf16.gmra.mrb[120].mxu0 %v3991_v1  ;;  %v9701_v1 = vpack.c.bf16 %v9699_v54, %v9700_v23 }
 0x6bb   : > { %v6514_v58 = vpop.eup %6513 }
 0x6bc   : > { %v6516_v24 = vpop.eup %6515  ;;  %v3944_v33 = vmul.f32 %v6514_v58, %v9128_v57  ;;  %v9681_v57 = vld [vmem:[#allocation16_spill] sm:$0xff] }
 0x6bd   : > { %v6518_v45 = vpop.eup %6517  ;;  %v3946_v50 = vmul.f32 %v6516_v24, %v9132_v34  ;;  %v9683_v32 = vpack.c.bf16 %v9681_v57, %v9682_v5  ;;  %v9684_v34 = vld [vmem:[#allocation34_spill] sm:$0xff] }
 0x6be   : > { %v6520_v55 = vpop.eup %6519  ;;  %v3995_v3 = vpack.c.bf16 %v3944_v33, %v3941_v48  ;;  %v3947_v52 = vmul.f32 %v6518_v45, %v9136_v56  ;;  %v9687_v56 = vld [vmem:[#allocation35_spill] sm:$0xff] }
 0x6bf   : > { %v6522_v35 = vpop.eup %6521  ;;  %v3949_v12 = vmul.f32 %v6520_v55, %v9140_v49  ;;  %v9685_v49 = vld [vmem:[#allocation36_spill] sm:$0xff] }
 0x6c0   : > { %v3950_v7 = vmul.f32 %v6522_v35, %v9145_v22  ;;  %4472 = vmatprep.mubr.bf16.mxu0 %v3995_v3  ;;  %v9686_v13 = vpack.c.bf16 %v9684_v34, %v9685_v49  ;;  %v9688_v22 = vld [vmem:[#allocation38_spill] sm:$0xff] }
 0x6c1   : > { %4473 = vmatmul.mubr.bf16.gmra.mrb[124].mxu0 %v3994_v14  ;;  %v3997_v21 = vpack.c.bf16 %v3949_v12, %v3946_v50  ;;  %v9689_v43 = vpack.c.bf16 %v9687_v56, %v9688_v22  ;;  %v9711_v14 = vld [vmem:[#allocation60_spill] sm:$0xff] }
 0x6c2   : > { %v3998_v61 = vpack.c.bf16 %v3950_v7, %v3947_v52  ;;  %v9712_v15 = vpack.c.bf16 %v8905_v4, %v9711_v14  ;;  %v9716_v4 = vpack.c.bf16 %v9033_v46, %v9030_v11 }
 0x6c4   : > { %4482 = vmatprep.mubr.bf16.mxu0 %v3998_v61 }
 0x6c9   : > { %4483 = vmatmul.mubr.bf16.gmra.mrb[128].mxu0 %v3997_v21 }
 0x6ca   : > { %4525 = vmatprep.mubr.bf16.mxu0 %v9680_v0 }
 0x6d1   : > { %4526 = vmatmul.mubr.bf16.vlgmr.msra.gmra.mrb[68].mxu0 %v9683_v32 }
 0x6d2   : > { %4535 = vmatprep.mubr.bf16.mxu0 %v9680_v0 }
 0x6d9   : > { %4536 = vmatmul.mubr.bf16.gmra.mrb[72].mxu0 %v9686_v13 }
 0x6da   : > { %4545 = vmatprep.mubr.bf16.mxu0 %v9680_v0 }
 0x6e1   : > { %4546 = vmatmul.mubr.bf16.gmra.mrb[76].mxu0 %v9689_v43 }
 0x6e2   : > { %4555 = vmatprep.mubr.bf16.mxu0 %v9680_v0 }
 0x6e9   : > { %4556 = vmatmul.mubr.bf16.gmra.mrb[80].mxu0 %v9692_v18 }
 0x6ea   : > { %4565 = vmatprep.mubr.bf16.mxu0 %v9680_v0 }
 0x6f1   : > { %4566 = vmatmul.mubr.bf16.gmra.mrb[84].mxu0 %v9695_v53 }
 0x6f2   : > { %4575 = vmatprep.mubr.bf16.mxu0 %v9680_v0 }
 0x6f9   : > { %4576 = vmatmul.mubr.bf16.gmra.mrb[88].mxu0 %v9698_v16 }
 0x6fa   : > { %4585 = vmatprep.mubr.bf16.mxu0 %v9680_v0 }
 0x701   : > { %4586 = vmatmul.mubr.bf16.gmra.mrb[92].mxu0 %v9701_v1 }
 0x702   : > { %4595 = vmatprep.mubr.bf16.mxu0 %v9680_v0 }
 0x709   : > { %4596 = vmatmul.mubr.bf16.gmra.mrb[96].mxu0 %v9704_v8 }
 0x70a   : > { %4605 = vmatprep.mubr.bf16.mxu0 %v9680_v0 }
 0x711   : > { %4606 = vmatmul.mubr.bf16.gmra.mrb[100].mxu0 %v9707_v10 }
 0x712   : > { %4615 = vmatprep.mubr.bf16.mxu0 %v9680_v0 }
 0x719   : > { %4616 = vmatmul.mubr.bf16.gmra.mrb[104].mxu0 %v9710_v20 }
 0x71a   : > { %4625 = vmatprep.mubr.bf16.mxu0 %v9680_v0 }
 0x721   : > { %4626 = vmatmul.mubr.bf16.gmra.mrb[108].mxu0 %v9712_v15 }
 0x722   : > { %4635 = vmatprep.mubr.bf16.mxu0 %v9680_v0 }
 0x729   : > { %4636 = vmatmul.mubr.bf16.gmra.mrb[112].mxu0 %v9715_v26 }
 0x72a   : > { %4645 = vmatprep.mubr.bf16.mxu0 %v9680_v0 }
 0x731   : > { %4646 = vmatmul.mubr.bf16.gmra.mrb[116].mxu0 %v3990_v2 }
 0x732   : > { %4655 = vmatprep.mubr.bf16.mxu0 %v9680_v0 }
 0x739   : > { %4656 = vmatmul.mubr.bf16.gmra.mrb[120].mxu0 %v3993_v62  ;;  %v9245_v62 = vrot.slane %v4048_v60, %v9718_v19 }
 0x73a   : > { %4665 = vmatprep.mubr.bf16.mxu0 %v9680_v0 }
 0x741   : > { %4666 = vmatmul.mubr.bf16.gmra.mrb[124].mxu0 %v3996_v29 }
 0x742   : > { %4675 = vmatprep.mubr.bf16.mxu0 %v9680_v0 }
 0x749   : > { %4676 = vmatmul.mubr.bf16.gmra.mrb[128].mxu0 %v9716_v4 }
 0x7a4   : > { %v4527_v2 = vpop.f32.mrb[68].mxu0 }
 0x7a5   : > { %v5575_v6 = vadd.f32 %v4527_v2, %v9240_v51  ;;  %v4529_v38 = vpop.f32.mrb[69].mxu0 }
 0x7a6   : > { %v5576_v11 = vadd.f32 %v4529_v38, %v9245_v62  ;;  %v4531_v46 = vpop.f32.mrb[70].mxu0 }
 0x7a7   : > { %4686 = vst [vmem:[%s9249_s0] sm:$0xff] %v5575_v6  ;;  %v5577_v29 = vadd.f32 %v4531_v46, %v9240_v51  ;;  %v4533_v47 = vpop.f32.mrb[71].mxu0 }
 0x7a8   : > { %4687 = vst [vmem:[%s9249_s0 + $0x8] sm:$0xff] %v5576_v11  ;;  %v5578_v39 = vadd.f32 %v4533_v47, %v9245_v62 }
 0x7a9   : > { %4688 = vst [vmem:[%s9249_s0 + $0x10] sm:$0xff] %v5577_v29 }
 0x7aa   : > { %4689 = vst [vmem:[%s9249_s0 + $0x18] sm:$0xff] %v5578_v39 }
 0x7ac   : > { %v4537_v58 = vpop.f32.mrb[72].mxu0 }
 0x7ad   : > { %v5579_v24 = vadd.f32 %v4537_v58, %v9240_v51  ;;  %v4539_v48 = vpop.f32.mrb[73].mxu0 }
 0x7ae   : > { %v5580_v33 = vadd.f32 %v4539_v48, %v9245_v62  ;;  %v4541_v45 = vpop.f32.mrb[74].mxu0 }
 0x7af   : > { %4690 = vst [vmem:[%s9249_s0 + $0x20] sm:$0xff] %v5579_v24  ;;  %v5581_v55 = vadd.f32 %v4541_v45, %v9240_v51  ;;  %v4543_v3 = vpop.f32.mrb[75].mxu0 }
 0x7b0   : > { %4691 = vst [vmem:[%s9249_s0 + $0x28] sm:$0xff] %v5580_v33  ;;  %v5582_v35 = vadd.f32 %v4543_v3, %v9245_v62 }
 0x7b1   : > { %4692 = vst [vmem:[%s9249_s0 + $0x30] sm:$0xff] %v5581_v55 }
 0x7b2   : > { %4693 = vst [vmem:[%s9249_s0 + $0x38] sm:$0xff] %v5582_v35 }
 0x7b4   : > { %v4547_v50 = vpop.f32.mrb[76].mxu0 }
 0x7b5   : > { %v5583_v12 = vadd.f32 %v4547_v50, %v9240_v51  ;;  %v4549_v52 = vpop.f32.mrb[77].mxu0 }
 0x7b6   : > { %v5584_v7 = vadd.f32 %v4549_v52, %v9245_v62  ;;  %v4551_v21 = vpop.f32.mrb[78].mxu0 }
 0x7b7   : > { %4694 = vst [vmem:[%s9249_s0 + $0x40] sm:$0xff] %v5583_v12  ;;  %v5585_v61 = vadd.f32 %v4551_v21, %v9240_v51  ;;  %v4553_v0 = vpop.f32.mrb[79].mxu0 }
 0x7b8   : > { %4695 = vst [vmem:[%s9249_s0 + $0x48] sm:$0xff] %v5584_v7  ;;  %v5586_v57 = vadd.f32 %v4553_v0, %v9245_v62 }
 0x7b9   : > { %4696 = vst [vmem:[%s9249_s0 + $0x50] sm:$0xff] %v5585_v61 }
 0x7ba   : > { %4697 = vst [vmem:[%s9249_s0 + $0x58] sm:$0xff] %v5586_v57 }
 0x7bc   : > { %v4557_v5 = vpop.f32.mrb[80].mxu0 }
 0x7bd   : > { %v5587_v32 = vadd.f32 %v4557_v5, %v9240_v51  ;;  %v4559_v34 = vpop.f32.mrb[81].mxu0 }
 0x7be   : > { %v5588_v49 = vadd.f32 %v4559_v34, %v9245_v62  ;;  %v4561_v13 = vpop.f32.mrb[82].mxu0 }
 0x7bf   : > { %4698 = vst [vmem:[%s9249_s0 + $0x60] sm:$0xff] %v5587_v32  ;;  %v5589_v56 = vadd.f32 %v4561_v13, %v9240_v51  ;;  %v4563_v22 = vpop.f32.mrb[83].mxu0 }
 0x7c0   : > { %4699 = vst [vmem:[%s9249_s0 + $0x68] sm:$0xff] %v5588_v49  ;;  %v5590_v43 = vadd.f32 %v4563_v22, %v9245_v62 }
 0x7c1   : > { %4700 = vst [vmem:[%s9249_s0 + $0x70] sm:$0xff] %v5589_v56 }
 0x7c2   : > { %4701 = vst [vmem:[%s9249_s0 + $0x78] sm:$0xff] %v5590_v43 }
 0x7c4   : > { %v4567_v31 = vpop.f32.mrb[84].mxu0 }
 0x7c5   : > { %v5591_v30 = vadd.f32 %v4567_v31, %v9240_v51  ;;  %v4569_v18 = vpop.f32.mrb[85].mxu0 }
 0x7c6   : > { %v5592_v41 = vadd.f32 %v4569_v18, %v9245_v62  ;;  %v4571_v63 = vpop.f32.mrb[86].mxu0 }
 0x7c7   : > { %4702 = vst [vmem:[%s9249_s0 + $0x80] sm:$0xff] %v5591_v30  ;;  %v5593_v53 = vadd.f32 %v4571_v63, %v9240_v51  ;;  %v4573_v42 = vpop.f32.mrb[87].mxu0 }
 0x7c8   : > { %4703 = vst [vmem:[%s9249_s0 + $0x88] sm:$0xff] %v5592_v41  ;;  %v5594_v40 = vadd.f32 %v4573_v42, %v9245_v62 }
 0x7c9   : > { %4704 = vst [vmem:[%s9249_s0 + $0x90] sm:$0xff] %v5593_v53 }
 0x7ca   : > { %4705 = vst [vmem:[%s9249_s0 + $0x98] sm:$0xff] %v5594_v40 }
 0x7cc   : > { %v4577_v16 = vpop.f32.mrb[88].mxu0 }
 0x7cd   : > { %v5595_v54 = vadd.f32 %v4577_v16, %v9240_v51  ;;  %v4579_v23 = vpop.f32.mrb[89].mxu0 }
 0x7ce   : > { %v5596_v1 = vadd.f32 %v4579_v23, %v9245_v62  ;;  %v4581_v44 = vpop.f32.mrb[90].mxu0 }
 0x7cf   : > { %4706 = vst [vmem:[%s9249_s0 + $0xa0] sm:$0xff] %v5595_v54  ;;  %v5597_v36 = vadd.f32 %v4581_v44, %v9240_v51  ;;  %v4583_v8 = vpop.f32.mrb[91].mxu0 }
 0x7d0   : > { %4707 = vst [vmem:[%s9249_s0 + $0xa8] sm:$0xff] %v5596_v1  ;;  %v5598_v27 = vadd.f32 %v4583_v8, %v9245_v62 }
 0x7d1   : > { %4708 = vst [vmem:[%s9249_s0 + $0xb0] sm:$0xff] %v5597_v36 }
 0x7d2   : > { %4709 = vst [vmem:[%s9249_s0 + $0xb8] sm:$0xff] %v5598_v27 }
 0x7d4   : > { %v4587_v28 = vpop.f32.mrb[92].mxu0 }
 0x7d5   : > { %v5599_v10 = vadd.f32 %v4587_v28, %v9240_v51  ;;  %v4589_v25 = vpop.f32.mrb[93].mxu0 }
 0x7d6   : > { %v5600_v59 = vadd.f32 %v4589_v25, %v9245_v62  ;;  %v4591_v20 = vpop.f32.mrb[94].mxu0 }
 0x7d7   : > { %4710 = vst [vmem:[%s9249_s0 + $0xc0] sm:$0xff] %v5599_v10  ;;  %v5601_v14 = vadd.f32 %v4591_v20, %v9240_v51  ;;  %v4593_v15 = vpop.f32.mrb[95].mxu0 }
 0x7d8   : > { %4711 = vst [vmem:[%s9249_s0 + $0xc8] sm:$0xff] %v5600_v59  ;;  %v5602_v37 = vadd.f32 %v4593_v15, %v9245_v62 }
 0x7d9   : > { %4712 = vst [vmem:[%s9249_s0 + $0xd0] sm:$0xff] %v5601_v14 }
 0x7da   : > { %4713 = vst [vmem:[%s9249_s0 + $0xd8] sm:$0xff] %v5602_v37 }
 0x7dc   : > { %v4597_v17 = vpop.f32.mrb[96].mxu0 }
 0x7dd   : > { %v5603_v26 = vadd.f32 %v4597_v17, %v9240_v51  ;;  %v4599_v4 = vpop.f32.mrb[97].mxu0 }
 0x7de   : > { %v5604_v60 = vadd.f32 %v4599_v4, %v9245_v62  ;;  %v4601_v9 = vpop.f32.mrb[98].mxu0 }
 0x7df   : > { %4714 = vst [vmem:[%s9249_s0 + $0xe0] sm:$0xff] %v5603_v26  ;;  %v5605_v19 = vadd.f32 %v4601_v9, %v9240_v51  ;;  %v4603_v2 = vpop.f32.mrb[99].mxu0 }
 0x7e0   : > { %4715 = vst [vmem:[%s9249_s0 + $0xe8] sm:$0xff] %v5604_v60  ;;  %v5606_v6 = vadd.f32 %v4603_v2, %v9245_v62 }
 0x7e1   : > { %4716 = vst [vmem:[%s9249_s0 + $0xf0] sm:$0xff] %v5605_v19 }
 0x7e2   : > { %4717 = vst [vmem:[%s9249_s0 + $0xf8] sm:$0xff] %v5606_v6 }
 0x7e4   : > { %v4607_v38 = vpop.f32.mrb[100].mxu0 }
 0x7e5   : > { %v5607_v11 = vadd.f32 %v4607_v38, %v9240_v51  ;;  %v4609_v46 = vpop.f32.mrb[101].mxu0 }
 0x7e6   : > { %v5608_v29 = vadd.f32 %v4609_v46, %v9245_v62  ;;  %v4611_v47 = vpop.f32.mrb[102].mxu0 }
 0x7e7   : > { %4718 = vst [vmem:[%s9249_s0 + $0x100] sm:$0xff] %v5607_v11  ;;  %v5609_v39 = vadd.f32 %v4611_v47, %v9240_v51  ;;  %v4613_v58 = vpop.f32.mrb[103].mxu0 }
 0x7e8   : > { %4719 = vst [vmem:[%s9249_s0 + $0x108] sm:$0xff] %v5608_v29  ;;  %v5610_v24 = vadd.f32 %v4613_v58, %v9245_v62 }
 0x7e9   : > { %4720 = vst [vmem:[%s9249_s0 + $0x110] sm:$0xff] %v5609_v39 }
 0x7ea   : > { %4721 = vst [vmem:[%s9249_s0 + $0x118] sm:$0xff] %v5610_v24 }
 0x7ec   : > { %v4617_v48 = vpop.f32.mrb[104].mxu0 }
 0x7ed   : > { %v5611_v33 = vadd.f32 %v4617_v48, %v9240_v51  ;;  %v4619_v45 = vpop.f32.mrb[105].mxu0 }
 0x7ee   : > { %v5612_v55 = vadd.f32 %v4619_v45, %v9245_v62  ;;  %v4621_v3 = vpop.f32.mrb[106].mxu0 }
 0x7ef   : > { %4722 = vst [vmem:[%s9249_s0 + $0x120] sm:$0xff] %v5611_v33  ;;  %v5613_v35 = vadd.f32 %v4621_v3, %v9240_v51  ;;  %v4623_v50 = vpop.f32.mrb[107].mxu0 }
 0x7f0   : > { %4723 = vst [vmem:[%s9249_s0 + $0x128] sm:$0xff] %v5612_v55  ;;  %v5614_v12 = vadd.f32 %v4623_v50, %v9245_v62 }
 0x7f1   : > { %4724 = vst [vmem:[%s9249_s0 + $0x130] sm:$0xff] %v5613_v35 }
 0x7f2   : > { %4725 = vst [vmem:[%s9249_s0 + $0x138] sm:$0xff] %v5614_v12 }
 0x7f4   : > { %v4627_v52 = vpop.f32.mrb[108].mxu0 }
 0x7f5   : > { %v5615_v7 = vadd.f32 %v4627_v52, %v9240_v51  ;;  %v4629_v21 = vpop.f32.mrb[109].mxu0 }
 0x7f6   : > { %v5616_v61 = vadd.f32 %v4629_v21, %v9245_v62  ;;  %v4631_v0 = vpop.f32.mrb[110].mxu0 }
 0x7f7   : > { %4726 = vst [vmem:[%s9249_s0 + $0x140] sm:$0xff] %v5615_v7  ;;  %v5617_v57 = vadd.f32 %v4631_v0, %v9240_v51  ;;  %v4633_v5 = vpop.f32.mrb[111].mxu0 }
 0x7f8   : > { %4727 = vst [vmem:[%s9249_s0 + $0x148] sm:$0xff] %v5616_v61  ;;  %v5618_v32 = vadd.f32 %v4633_v5, %v9245_v62 }
 0x7f9   : > { %4728 = vst [vmem:[%s9249_s0 + $0x150] sm:$0xff] %v5617_v57 }
 0x7fa   : > { %4729 = vst [vmem:[%s9249_s0 + $0x158] sm:$0xff] %v5618_v32 }
 0x7fc   : > { %v4637_v34 = vpop.f32.mrb[112].mxu0 }
 0x7fd   : > { %v5619_v49 = vadd.f32 %v4637_v34, %v9240_v51  ;;  %v4639_v13 = vpop.f32.mrb[113].mxu0 }
 0x7fe   : > { %v5620_v56 = vadd.f32 %v4639_v13, %v9245_v62  ;;  %v4641_v22 = vpop.f32.mrb[114].mxu0 }
 0x7ff   : > { %4730 = vst [vmem:[%s9249_s0 + $0x160] sm:$0xff] %v5619_v49  ;;  %v5621_v43 = vadd.f32 %v4641_v22, %v9240_v51  ;;  %v4643_v31 = vpop.f32.mrb[115].mxu0 }
 0x800   : > { %4731 = vst [vmem:[%s9249_s0 + $0x168] sm:$0xff] %v5620_v56  ;;  %v5622_v30 = vadd.f32 %v4643_v31, %v9245_v62 }
 0x801   : > { %4732 = vst [vmem:[%s9249_s0 + $0x170] sm:$0xff] %v5621_v43 }
 0x802   : > { %4733 = vst [vmem:[%s9249_s0 + $0x178] sm:$0xff] %v5622_v30 }
 0x804   : > { %v4647_v18 = vpop.f32.mrb[116].mxu0 }
 0x805   : > { %v5623_v41 = vadd.f32 %v4647_v18, %v9240_v51  ;;  %v4649_v63 = vpop.f32.mrb[117].mxu0 }
 0x806   : > { %v5624_v53 = vadd.f32 %v4649_v63, %v9245_v62  ;;  %v4651_v42 = vpop.f32.mrb[118].mxu0 }
 0x807   : > { %4734 = vst [vmem:[%s9249_s0 + $0x180] sm:$0xff] %v5623_v41  ;;  %v5625_v40 = vadd.f32 %v4651_v42, %v9240_v51  ;;  %v4653_v16 = vpop.f32.mrb[119].mxu0 }
 0x808   : > { %4735 = vst [vmem:[%s9249_s0 + $0x188] sm:$0xff] %v5624_v53  ;;  %v5626_v54 = vadd.f32 %v4653_v16, %v9245_v62 }
 0x809   : > { %4736 = vst [vmem:[%s9249_s0 + $0x190] sm:$0xff] %v5625_v40 }
 0x80a   : > { %4737 = vst [vmem:[%s9249_s0 + $0x198] sm:$0xff] %v5626_v54 }
 0x80c   : > { %v4657_v23 = vpop.f32.mrb[120].mxu0 }
 0x80d   : > { %v5627_v1 = vadd.f32 %v4657_v23, %v9240_v51  ;;  %v4659_v44 = vpop.f32.mrb[121].mxu0 }
 0x80e   : > { %v5628_v36 = vadd.f32 %v4659_v44, %v9245_v62  ;;  %v4661_v8 = vpop.f32.mrb[122].mxu0 }
 0x80f   : > { %4738 = vst [vmem:[%s9249_s0 + $0x1a0] sm:$0xff] %v5627_v1  ;;  %v5629_v27 = vadd.f32 %v4661_v8, %v9240_v51  ;;  %v4663_v28 = vpop.f32.mrb[123].mxu0 }
 0x810   : > { %4739 = vst [vmem:[%s9249_s0 + $0x1a8] sm:$0xff] %v5628_v36  ;;  %v5630_v10 = vadd.f32 %v4663_v28, %v9245_v62 }
 0x811   : > { %4740 = vst [vmem:[%s9249_s0 + $0x1b0] sm:$0xff] %v5629_v27 }
 0x812   : > { %4741 = vst [vmem:[%s9249_s0 + $0x1b8] sm:$0xff] %v5630_v10 }
 0x814   : > { %v4667_v25 = vpop.f32.mrb[124].mxu0 }
 0x815   : > { %v5631_v59 = vadd.f32 %v4667_v25, %v9240_v51  ;;  %v4669_v20 = vpop.f32.mrb[125].mxu0 }
 0x816   : > { %v5632_v14 = vadd.f32 %v4669_v20, %v9245_v62  ;;  %v4671_v15 = vpop.f32.mrb[126].mxu0 }
 0x817   : > { %4742 = vst [vmem:[%s9249_s0 + $0x1c0] sm:$0xff] %v5631_v59  ;;  %v5633_v37 = vadd.f32 %v4671_v15, %v9240_v51  ;;  %v4673_v17 = vpop.f32.mrb[127].mxu0 }
 0x818   : > { %4743 = vst [vmem:[%s9249_s0 + $0x1c8] sm:$0xff] %v5632_v14  ;;  %v5634_v26 = vadd.f32 %v4673_v17, %v9245_v62 }
 0x819   : > { %4744 = vst [vmem:[%s9249_s0 + $0x1d0] sm:$0xff] %v5633_v37 }
 0x81a   : > { %4745 = vst [vmem:[%s9249_s0 + $0x1d8] sm:$0xff] %v5634_v26 }
 0x81c   : > { %v4677_v4 = vpop.f32.mrb[128].mxu0 }
 0x81d   : > { %v5635_v60 = vadd.f32 %v4677_v4, %v9240_v51  ;;  %v4679_v9 = vpop.f32.mrb[129].mxu0 }
 0x81e   : > { %v5636_v19 = vadd.f32 %v4679_v9, %v9245_v62  ;;  %v4681_v2 = vpop.f32.mrb[130].mxu0 }
 0x81f   : > { %4746 = vst [vmem:[%s9249_s0 + $0x1e0] sm:$0xff] %v5635_v60  ;;  %v5637_v6 = vadd.f32 %v4681_v2, %v9240_v51  ;;  %v4683_v38 = vpop.f32.mrb[131].mxu0 }
 0x820   : > { %4747 = vst [vmem:[%s9249_s0 + $0x1e8] sm:$0xff] %v5636_v19  ;;  %v5638_v11 = vadd.f32 %v4683_v38, %v9245_v62 }
 0x821   : > { %4748 = vst [vmem:[%s9249_s0 + $0x1f0] sm:$0xff] %v5637_v6 }
 0x822   : > { %4749 = vst [vmem:[%s9249_s0 + $0x1f8] sm:$0xff] %v5638_v11 }
 0x823   : > { %6546 = shalt.err (!%p6543_p3)
}
 0x824   : > { %s6547_s24 = scalar_lea.hbm %s9378_s16, 8192  ;;  %s6551_s26 = scalar_lea.hbm %s9444_s15, 16384 }
 0x825   : > { %p6548_p4 = scmp.ne.s32.totalorder %s9378_s16, %s6547_s24  ;;  %p6552_p9 = scmp.lt.u32.totalorder %s9378_s16, %s9444_s15 }
 0x826   : > { %p6553_p10 = scmp.lt.u32.totalorder %s6551_s26, %s6547_s24  ;;  %p6555_p12 = scmp.lt.u32.totalorder %s6547_s24, %s9378_s16 }
 0x827   : > { %p6549_p7 = pnand %p6548_p4, %p6721_p5 }
 0x828   : > { %p6554_p11 = por %p6553_p10, %p6552_p9 }
 0x829   : > { %p6550_p8 = pneg %p6549_p7 }
 0x82a   : > { %p6556_p13 = por %p6555_p12, %p6554_p11 }
 0x82c   : > { %p6557_p0 = pnand %p6556_p13, %p6550_p8 }
 0x82e   : > { %6560 = shalt.err (!%p6557_p0)
}
 0x82f   : > { %s6601_s17 = smov 256   ;;  %s6602_s27 = smov 16  }
 0x830   : > { %5703 = dma.vmem_to_hbm [thread:$0]  (%p6721_p5), %s9380_s25, 8192, %s9378_s16, %s9388_s22, %s6601_s17, %s6601_s17, %s6602_s27  }
 0x831 PF: > { %p5709_p1 = scmp.ge.s32.totalorder %s6595_s21, 2  ;;  %s4779_s0 = sand.u32 1, %s6583_s18  }
 0x832   : > { %s4780_s24 = scalar_lea.sflag [#allocation3], %s4779_s0 }
 0x833   : > { %p5706_p2 = pnand %p5709_p1, %p6725_p6 }
 0x835   : > { %6578 = dma.done.wait (!%p5706_p2), %s4780_s24, 8192  }
 0x836   : > { %6580 = vsyncadd (!%p5706_p2), %s4780_s24, 4294959104  ;;  %s9720_s21 = sld [smem:[#allocation6_spill]]  ;;  %s9721_s20 = sld [smem:[#allocation5_spill]] }
 0x837   : > { %s9722_s26 = sld [smem:[#allocation7_spill]]  ;;  %s9723_s18 = smov %s6587_s19 }
 0x83c   : > { %p25_p3 = scmp.ge.s32.totalorder %s9720_s21, 4   ;;  %s9724_s19 = smov %s9721_s20 }
 0x83d   : > { %s9725_s20 = smov %s9722_s26 }
 0x83e   :  { %27 = sbr.rel (!%p25_p3) target bundleno = 5 (0x5), region = 115 }
 0x845   :  { %4785 = vsyncpa [#allocation3], 1 }
 0x846   :  { %4787 = vsyncpa [#allocation3 + $0x1], 1 }

</bundles_post_ra>
